<compile_context>
chip_gen: v6e
topology: v6e:2x2x1
jax: 0.10.0
libtpu: 0.0.40
codegen_flags: <defaults>
</compile_context>

<pallas_src>
import math
from functools import partial

import jax
import jax.numpy as jnp
from jax.experimental import pallas as pl
from jax.experimental.pallas import tpu as pltpu


# ---------------------------------------------------------------------------
# Tiled matmul (+ bias) : bf16 MXU inputs, f32 accumulator scratch
# ---------------------------------------------------------------------------

def _matmul_kernel(x_ref, w_ref, b_ref, o_ref, acc_ref):
    @pl.when(pl.program_id(2) == 0)
    def _():
        acc_ref[...] = jnp.zeros_like(acc_ref)

    acc_ref[...] += jnp.dot(x_ref[...], w_ref[...],
                            preferred_element_type=jnp.float32)

    @pl.when(pl.program_id(2) == pl.num_programs(2) - 1)
    def _():
        o_ref[...] = (acc_ref[...] + b_ref[...]).astype(o_ref.dtype)


def _pick_tile(dim, prefs):
    for p in prefs:
        if dim % p == 0:
            return p
    return dim                     # small / ragged dims: use the full extent


def matmul_bias(x, w, bias):
    """(M,K) @ (K,N) + bias, tiled over (M, N, K) with K innermost ("arbitrary")."""
    M, K = x.shape
    N = w.shape[1]
    tm = _pick_tile(M, (256, 128))
    tn = _pick_tile(N, (256, 128))
    tk = _pick_tile(K, (512, 256, 128))
    return pl.pallas_call(
        _matmul_kernel,
        out_shape=jax.ShapeDtypeStruct((M, N), jnp.float32),
        grid=(M // tm, N // tn, K // tk),
        in_specs=[pl.BlockSpec((tm, tk), lambda i, j, k: (i, k)),
                  pl.BlockSpec((tk, tn), lambda i, j, k: (k, j)),
                  pl.BlockSpec((1, tn), lambda i, j, k: (0, j))],
        out_specs=pl.BlockSpec((tm, tn), lambda i, j, k: (i, j)),
        scratch_shapes=[pltpu.VMEM((tm, tn), jnp.float32)],
        compiler_params=pltpu.CompilerParams(
            dimension_semantics=("parallel", "parallel", "arbitrary"),
            vmem_limit_bytes=32 * 1024 * 1024),
    )(x.astype(jnp.bfloat16), w.astype(jnp.bfloat16), bias.astype(jnp.float32))


# ---------------------------------------------------------------------------
# Fused add + LayerNorm (also returns the residual, like fused_add_norm)
# ---------------------------------------------------------------------------

def _add_ln_kernel(h_ref, r_ref, g_ref, b_ref, y_ref, res_ref, *, eps):
    res = h_ref[0] + r_ref[0]                                   # (L, D)
    mu = jnp.mean(res, axis=-1, keepdims=True)
    var = jnp.mean(jnp.square(res - mu), axis=-1, keepdims=True)
    y_ref[0] = (res - mu) * jax.lax.rsqrt(var + eps) * g_ref[...] + b_ref[...]
    res_ref[0] = res


def add_layernorm(h, r, gamma, beta, eps):
    B, L, D = h.shape
    return pl.pallas_call(
        partial(_add_ln_kernel, eps=eps),
        out_shape=(jax.ShapeDtypeStruct((B, L, D), jnp.float32),
                   jax.ShapeDtypeStruct((B, L, D), jnp.float32)),
        grid=(B,),
        in_specs=[pl.BlockSpec((1, L, D), lambda i: (i, 0, 0)),
                  pl.BlockSpec((1, L, D), lambda i: (i, 0, 0)),
                  pl.BlockSpec((1, D), lambda i: (0, 0)),
                  pl.BlockSpec((1, D), lambda i: (0, 0))],
        out_specs=(pl.BlockSpec((1, L, D), lambda i: (i, 0, 0)),
                   pl.BlockSpec((1, L, D), lambda i: (i, 0, 0))),
        compiler_params=pltpu.CompilerParams(dimension_semantics=("parallel",)),
    )(h, r, gamma, beta)


# ---------------------------------------------------------------------------
# Packed depthwise conv1d + SiLU: fwd half causal, bwd half anti-causal
# (the backward direction of the layer pair is handled by index math, no flips)
# ---------------------------------------------------------------------------

def _conv_silu_kernel(xp_ref, w_ref, b_ref, o_ref, *, L):
    taps, C = w_ref.shape
    xp = xp_ref[0]                                              # (L + taps - 1, C)
    acc = jnp.zeros((L, C), jnp.float32) + b_ref[...]
    for s in range(taps):                                       # static unroll over taps
        acc = acc + xp[s:s + L, :] * w_ref[s:s + 1, :]
    o_ref[0] = acc * jax.nn.sigmoid(acc)                        # SiLU


def conv1d_silu_packed(x, w, b, d_conv):
    B, L, C = x.shape
    taps = w.shape[0]                                           # 2*K - 1 combined taps
    pad = d_conv - 1
    xp = jnp.pad(x, ((0, 0), (pad, pad), (0, 0)))               # zero pad both ends (glue)
    return pl.pallas_call(
        partial(_conv_silu_kernel, L=L),
        out_shape=jax.ShapeDtypeStruct((B, L, C), jnp.float32),
        grid=(B,),
        in_specs=[pl.BlockSpec((1, L + 2 * pad, C), lambda i: (i, 0, 0)),
                  pl.BlockSpec((taps, C), lambda i: (0, 0)),
                  pl.BlockSpec((1, C), lambda i: (0, 0))],
        out_specs=pl.BlockSpec((1, L, C), lambda i: (i, 0, 0)),
        compiler_params=pltpu.CompilerParams(dimension_semantics=("parallel",)),
    )(xp, w, b)


# ---------------------------------------------------------------------------
# Packed bidirectional selective scan + D skip + SiLU(z) gate
# fwd channels (lanes [0, d_inner)) run causally, bwd channels (lanes [d_inner, 2*d_inner))
# run anti-causally.  No MXU op and no transcendental beyond exp/sigmoid in the loop;
# softplus(delta + dt_bias) is hoisted into a vectorized pre-pass; state is carried in
# registers; B/C are supplied lane-dense and extracted per step with a one-hot lane
# reduction (VPU + XLU).
# ---------------------------------------------------------------------------

def _scan_kernel(u_ref, z_ref, delta_ref, bct_ref, a_ref, d_ref, dtb_ref,
                 o_ref, dl_ref, *, L, d_state, half):
    C = 2 * half
    # vectorized pre-pass: softplus(delta + dt_bias) for the whole block
    dl_ref[...] = jax.nn.softplus(delta_ref[0] + dtb_ref[...])

    a_mat = a_ref[...]                       # (d_state, C)   A^T packed [fwd | bwd]
    d_row = d_ref[...]                       # (1, C)
    bct = bct_ref[0]                         # (4*d_state, L) rows = [Bf; Cf; Bb; Cb]
    bct_f = bct[:2 * d_state, :]
    bct_b = bct[2 * d_state:, :]
    lane = jax.lax.broadcasted_iota(jnp.int32, (1, C), 1)
    is_fwd = lane < half                     # fwd channels live in the low lanes
    pos = jax.lax.broadcasted_iota(jnp.int32, (1, L), 1)

    def step(t, state):
        tb = L - 1 - t                       # backward stream walks tokens in reverse
        # packed per-step rows: fwd half from token t, bwd half from token L-1-t
        u_row = jnp.where(is_fwd, u_ref[0, pl.ds(t, 1), :], u_ref[0, pl.ds(tb, 1), :])
        z_row = jnp.where(is_fwd, z_ref[0, pl.ds(t, 1), :], z_ref[0, pl.ds(tb, 1), :])
        dl_row = jnp.where(is_fwd, dl_ref[pl.ds(t, 1), :], dl_ref[pl.ds(tb, 1), :])
        # B(t)/C(t) columns via one-hot lane reduction (no transpose, no MXU)
        col_f = jnp.sum(jnp.where(pos == t, bct_f, 0.0), axis=1, keepdims=True)
        col_b = jnp.sum(jnp.where(pos == tb, bct_b, 0.0), axis=1, keepdims=True)
        b_col = jnp.where(is_fwd, col_f[:d_state, :], col_b[:d_state, :])    # (d_state, C)
        c_col = jnp.where(is_fwd, col_f[d_state:, :], col_b[d_state:, :])    # (d_state, C)
        # selective-state recurrence (register-carried state)
        state = jnp.exp(dl_row * a_mat) * state + b_col * (dl_row * u_row)
        y = jnp.sum(c_col * state, axis=0, keepdims=True)                    # (1, C)
        y = (y + d_row * u_row) * (z_row * jax.nn.sigmoid(z_row))            # D skip + gate
        # scatter: fwd half -> token t, bwd half -> token L-1-t (blend into VMEM out block)
        row_t = o_ref[0, pl.ds(t, 1), :]
        o_ref[0, pl.ds(t, 1), :] = jnp.where(is_fwd, y, row_t)
        row_b = o_ref[0, pl.ds(tb, 1), :]
        o_ref[0, pl.ds(tb, 1), :] = jnp.where(is_fwd, row_b, y)
        return state

    jax.lax.fori_loop(0, L, step, jnp.zeros((d_state, C), jnp.float32))


def selective_scan_packed(u, xz, xdbl, bct, A, Dv, dt_bias, d_state):
    B, L, C = u.shape
    return pl.pallas_call(
        partial(_scan_kernel, L=L, d_state=d_state, half=C // 2),
        out_shape=jax.ShapeDtypeStruct((B, L, C), jnp.float32),
        grid=(B,),
        in_specs=[pl.BlockSpec((1, L, C), lambda i: (i, 0, 0)),            # u (conv+SiLU)
                  pl.BlockSpec((1, L, C), lambda i: (i, 0, 1)),            # z: lane-block 1 of xz
                  pl.BlockSpec((1, L, C), lambda i: (i, 0, 0)),            # delta: lane-block 0 of x_dbl
                  pl.BlockSpec((1, 4 * d_state, L), lambda i: (i, 0, 0)),  # [Bf;Cf;Bb;Cb]^T
                  pl.BlockSpec((d_state, C), lambda i: (0, 0)),            # A^T packed
                  pl.BlockSpec((1, C), lambda i: (0, 0)),                  # D packed
                  pl.BlockSpec((1, C), lambda i: (0, 0))],                 # dt bias packed
        out_specs=pl.BlockSpec((1, L, C), lambda i: (i, 0, 0)),
        scratch_shapes=[pltpu.VMEM((L, C), jnp.float32)],                  # softplus(delta+bias)
        compiler_params=pltpu.CompilerParams(dimension_semantics=("parallel",)),
    )(u, xz, xdbl, bct, A, Dv, dt_bias)


# ---------------------------------------------------------------------------
# One bidirectional Mamba layer pair (Block 2i forward + Block 2i+1 backward)
# ---------------------------------------------------------------------------

def mamba_pair(pp, hidden, residual, cfg):
    B, L, Dm = hidden.shape
    di, ds, K = cfg['d_inner'], cfg['d_state'], cfg['d_conv']
    C = 2 * di
    # fused add + LN statistics; both directions' LN affines are folded into in_proj
    xhat, res = add_layernorm(hidden, residual, pp['one'], pp['zero'], cfg['eps'])
    # packed in_proj for fwd+bwd: output columns [x_f | x_b | z_f | z_b]
    xz = matmul_bias(xhat.reshape(B * L, Dm), pp['w_in'], pp['b_in']).reshape(B, L, 2 * C)
    # depthwise conv (fwd causal / bwd anti-causal) + SiLU on packed channels
    u = conv1d_silu_packed(xz[:, :, :C], pp['w_conv'], pp['b_conv'], K)
    # packed x_proj with dt_proj fused: columns [dt_f | dt_b | Bf | Cf | Bb | Cb | 0-pad]
    xdbl = matmul_bias(u.reshape(B * L, C), pp['w_xdt'], pp['b_xdt']).reshape(B, L, 2 * C)
    bct = jnp.transpose(xdbl[:, :, C:C + 4 * ds], (0, 2, 1))               # (B, 4*ds, L)
    # bidirectional selective scan (+ D skip + SiLU(z) gate) in one pass
    y = selective_scan_packed(u, xz, xdbl, bct, pp['A'], pp['D'], pp['dt_bias'], ds)
    # stacked out_proj: contraction over 2*d_inner sums fwd and (re-aligned) bwd outputs
    out = matmul_bias(y.reshape(B * L, C), pp['w_out'], pp['b_out']).reshape(B, L, Dm)
    # reference residual algebra: residual_new = res_f + flip(res_b) = 2*(hidden+residual)
    return out, 2.0 * res


# ---------------------------------------------------------------------------
# VIMAttention forward (bidirectional Vim stack)
# ---------------------------------------------------------------------------

def vim_attention_forward(params, rgb_fea, ir_fea, cfg):
    bs, Dm, T, h, w = rgb_fea.shape
    M0 = T * h * w
    rgb = rgb_fea.reshape(bs, Dm, M0).transpose(0, 2, 1)
    ir = ir_fea.reshape(bs, Dm, M0).transpose(0, 2, 1)
    x = jnp.concatenate([rgb, ir], axis=1) + params['pos_embed']           # (bs, 2*M0, D)
    # TODO(synk): pos_drop / DropPath are eval-mode identities (no RNG dropout here).
    hidden = x
    residual = jnp.zeros_like(x)            # first pair: residual is None in the reference
    for pp in params['pairs']:
        hidden, residual = mamba_pair(pp, hidden, residual, cfg)
    normed, _ = add_layernorm(hidden, residual, params['norm_f_w'],
                              params['norm_f_b'], cfg['eps'])
    rgb_o = normed[:, :M0, :].transpose(0, 2, 1).reshape(bs, Dm, T, h, w)
    ir_o = normed[:, M0:, :].transpose(0, 2, 1).reshape(bs, Dm, T, h, w)
    return rgb_o, ir_o


# ---------------------------------------------------------------------------
# Deterministic parameter init (synthetic weights; shapes follow Mamba defaults)
# plus layer-pair packing (LN affine fold, dt_proj fold, fwd/bwd channel packing)
# ---------------------------------------------------------------------------

def _init_layer(key, d_model, d_inner, d_state, d_conv, dt_rank):
    ks = jax.random.split(key, 6)
    p = {}
    p['ln_w'] = jnp.ones((d_model,), jnp.float32)
    p['ln_b'] = jnp.zeros((d_model,), jnp.float32)
    p['in_proj_w'] = 0.02 * jax.random.normal(ks[0], (d_model, 2 * d_inner), jnp.float32)
    p['conv_w'] = 0.1 * jax.random.normal(ks[1], (d_conv, d_inner), jnp.float32)
    p['conv_b'] = jnp.zeros((d_inner,), jnp.float32)
    p['x_proj_w'] = 0.02 * jax.random.normal(ks[2], (d_inner, dt_rank + 2 * d_state),
                                             jnp.float32)
    p['dt_proj_w'] = (dt_rank ** -0.5) * jax.random.normal(ks[3], (dt_rank, d_inner),
                                                           jnp.float32)
    dt = jnp.exp(jax.random.uniform(ks[4], (d_inner,), jnp.float32)
                 * (math.log(0.1) - math.log(1e-3)) + math.log(1e-3))
    p['dt_proj_b'] = dt + jnp.log(-jnp.expm1(-dt))          # inverse softplus
    A = jnp.tile(jnp.arange(1, d_state + 1, dtype=jnp.float32)[None, :], (d_inner, 1))
    p['A_t'] = (-A).T                                       # (d_state, d_inner), A = -exp(A_log)
    p['D'] = jnp.ones((d_inner,), jnp.float32)
    p['out_proj_w'] = 0.02 * jax.random.normal(ks[5], (d_inner, d_model), jnp.float32)
    return p


def _pack_pair(lf, lb, d_model, d_inner, d_state, d_conv, dt_rank):
    di, ds, K = d_inner, d_state, d_conv
    C = 2 * di
    assert di >= 2 * ds, "packed x_proj padding assumes d_inner >= 2*d_state"

    def ln_folded_in_proj(lp):
        W = lp['in_proj_w']                                  # (d_model, 2*di) = [x | z]
        g = lp['ln_w'][:, None]
        b = lp['ln_b'][None, :]
        Wx, Wz = W[:, :di], W[:, di:]
        return g * Wx, g * Wz, b @ Wx, b @ Wz
    Wxf, Wzf, bxf, bzf = ln_folded_in_proj(lf)
    Wxb, Wzb, bxb, bzb = ln_folded_in_proj(lb)
    w_in = jnp.concatenate([Wxf, Wxb, Wzf, Wzb], axis=1)     # (d_model, 2*C)
    b_in = jnp.concatenate([bxf, bxb, bzf, bzb], axis=1)     # (1, 2*C)

    def xproj_dt_folded(lp):
        Wx = lp['x_proj_w']
        Wd = Wx[:, :dt_rank] @ lp['dt_proj_w']               # (di, di): dt_proj fused
        return Wd, Wx[:, dt_rank:dt_rank + ds], Wx[:, dt_rank + ds:]
    Wdf, WBf, WCf = xproj_dt_folded(lf)
    Wdb, WBb, WCb = xproj_dt_folded(lb)
    zdi = jnp.zeros((di, di), jnp.float32)
    zds = jnp.zeros((di, ds), jnp.float32)
    zpad = jnp.zeros((di, 2 * (di - 2 * ds)), jnp.float32)   # pad N to lane-dense 2*C
    top = jnp.concatenate([Wdf, zdi, WBf, WCf, zds, zds, zpad], axis=1)
    bot = jnp.concatenate([zdi, Wdb, zds, zds, WBb, WCb, zpad], axis=1)
    w_xdt = jnp.concatenate([top, bot], axis=0)              # (C, 2*C)
    b_xdt = jnp.zeros((1, 2 * C), jnp.float32)

    w_out = jnp.concatenate([lf['out_proj_w'], lb['out_proj_w']], axis=0)   # (C, d_model)
    b_out = jnp.zeros((1, d_model), jnp.float32)

    # combined conv taps: s in [0, K-1] -> causal fwd, s in [K-1, 2K-2] -> anti-causal bwd
    taps = 2 * K - 1
    w_conv = jnp.zeros((taps, C), jnp.float32)
    w_conv = w_conv.at[:K, :di].set(lf['conv_w'])
    w_conv = w_conv.at[K - 1:, di:].set(lb['conv_w'][::-1, :])
    b_conv = jnp.concatenate([lf['conv_b'], lb['conv_b']])[None, :]

    return dict(
        w_in=w_in.astype(jnp.bfloat16), b_in=b_in,
        w_xdt=w_xdt.astype(jnp.bfloat16), b_xdt=b_xdt,
        w_out=w_out.astype(jnp.bfloat16), b_out=b_out,
        w_conv=w_conv, b_conv=b_conv,
        A=jnp.concatenate([lf['A_t'], lb['A_t']], axis=1),                   # (ds, C)
        D=jnp.concatenate([lf['D'], lb['D']])[None, :],                      # (1, C)
        dt_bias=jnp.concatenate([lf['dt_proj_b'], lb['dt_proj_b']])[None, :],
        one=jnp.ones((1, d_model), jnp.float32),
        zero=jnp.zeros((1, d_model), jnp.float32),
    )


def init_params(key, d_model, n_layers, num_patches, d_inner, d_state, d_conv, dt_rank):
    keys = jax.random.split(key, n_layers + 1)
    raw = [_init_layer(keys[i], d_model, d_inner, d_state, d_conv, dt_rank)
           for i in range(n_layers)]
    pairs = [_pack_pair(raw[2 * i], raw[2 * i + 1], d_model, d_inner, d_state,
                        d_conv, dt_rank)
             for i in range(n_layers // 2)]
    pos_embed = 0.02 * jax.random.normal(keys[-1], (1, 2 * num_patches, d_model),
                                         jnp.float32)
    return {'pairs': pairs, 'pos_embed': pos_embed,
            'norm_f_w': jnp.ones((1, d_model), jnp.float32),
            'norm_f_b': jnp.zeros((1, d_model), jnp.float32)}


# ---------------------------------------------------------------------------

if __name__ == "__main__":
    bs, embed_dims, num_frames, H, W = 2, 32, 2, 4, 4
    n_layers = 4
    d_state, d_conv, expand = 16, 4, 2
    d_inner = expand * embed_dims
    dt_rank = math.ceil(embed_dims / 16)
    cfg = dict(n_layers=n_layers, d_inner=d_inner, d_state=d_state,
               dt_rank=dt_rank, d_conv=d_conv, eps=1e-5)

    key = jax.random.PRNGKey(0)
    k_in, k_par = jax.random.split(key)
    k_rgb, k_ir = jax.random.split(k_in)
    rgb_fea = jax.random.normal(k_rgb, (bs, embed_dims, num_frames, H, W), jnp.float32)
    ir_fea = jax.random.normal(k_ir, (bs, embed_dims, num_frames, H, W), jnp.float32)

    params = init_params(k_par, embed_dims, n_layers, num_frames * H * W,
                         d_inner, d_state, d_conv, dt_rank)

    fwd = jax.jit(lambda p, a, b: vim_attention_forward(p, a, b, cfg))
    rgb_out, ir_out = fwd(params, rgb_fea, ir_fea)
    jax.block_until_ready((rgb_out, ir_out))
    assert rgb_out.shape == (bs, embed_dims, num_frames, H, W)
    assert ir_out.shape == (bs, embed_dims, num_frames, H, W)
    assert bool(jnp.all(jnp.isfinite(rgb_out))) and bool(jnp.all(jnp.isfinite(ir_out)))
    print("KERNEL_OK")
</pallas_src>

<mosaic_0001>
module attributes {stable_mosaic.version = 11 : i64} {
  func.func @_add_ln_kernel(%arg0: i32, %arg1: memref<1x64x32xf32, #tpu.memory_space<vmem>>, %arg2: memref<1x64x32xf32, #tpu.memory_space<vmem>>, %arg3: memref<1x32xf32, #tpu.memory_space<vmem>>, %arg4: memref<1x32xf32, #tpu.memory_space<vmem>>, %arg5: memref<1x64x32xf32, #tpu.memory_space<vmem>>, %arg6: memref<1x64x32xf32, #tpu.memory_space<vmem>>) attributes {dimension_semantics = [#tpu.dimension_semantics<parallel>], iteration_bounds = array<i64: 2>, scalar_prefetch = 0 : i64, scratch_operands = 0 : i64, tpu.core_type = #tpu.core_type<tc>, window_params = [{transform_indices = @transform_0, window_bounds = array<i64: 1, 64, 32>}, {transform_indices = @transform_1, window_bounds = array<i64: 1, 64, 32>}, {pipeline_mode = #tpu.pipeline_mode<synchronous>, transform_indices = @transform_2, window_bounds = array<i64: 1, 32>}, {pipeline_mode = #tpu.pipeline_mode<synchronous>, transform_indices = @transform_3, window_bounds = array<i64: 1, 32>}, {transform_indices = @transform_4, window_bounds = array<i64: 1, 64, 32>}, {transform_indices = @transform_5, window_bounds = array<i64: 1, 64, 32>}]} {
    %c0 = arith.constant 0 : index
    %c0_0 = arith.constant 0 : index
    %c0_1 = arith.constant 0 : index
    %0 = vector.load %arg1[%c0, %c0_0, %c0_1] : memref<1x64x32xf32, #tpu.memory_space<vmem>>, vector<1x64x32xf32>
    %1 = vector.shape_cast %0 : vector<1x64x32xf32> to vector<64x32xf32>
    %c0_2 = arith.constant 0 : index
    %c0_3 = arith.constant 0 : index
    %c0_4 = arith.constant 0 : index
    %2 = vector.load %arg2[%c0_2, %c0_3, %c0_4] : memref<1x64x32xf32, #tpu.memory_space<vmem>>, vector<1x64x32xf32>
    %3 = vector.shape_cast %2 : vector<1x64x32xf32> to vector<64x32xf32>
    %4 = arith.addf %1, %3 : vector<64x32xf32>
    %cst = arith.constant dense<0.000000e+00> : vector<64xf32>
    %5 = vector.multi_reduction <add>, %4, %cst [1] : vector<64x32xf32> to vector<64xf32>
    %6 = vector.shape_cast %5 : vector<64xf32> to vector<64x1xf32>
    %cst_5 = arith.constant 3.200000e+01 : f32
    %7 = vector.broadcast %cst_5 : f32 to vector<64x1xf32>
    %8 = arith.divf %6, %7 : vector<64x1xf32>
    %9 = vector.broadcast %8 : vector<64x1xf32> to vector<64x32xf32>
    %10 = arith.subf %4, %9 : vector<64x32xf32>
    %11 = arith.mulf %10, %10 : vector<64x32xf32>
    %cst_6 = arith.constant dense<0.000000e+00> : vector<64xf32>
    %12 = vector.multi_reduction <add>, %11, %cst_6 [1] : vector<64x32xf32> to vector<64xf32>
    %13 = vector.shape_cast %12 : vector<64xf32> to vector<64x1xf32>
    %cst_7 = arith.constant 3.200000e+01 : f32
    %14 = vector.broadcast %cst_7 : f32 to vector<64x1xf32>
    %15 = arith.divf %13, %14 : vector<64x1xf32>
    %16 = vector.broadcast %8 : vector<64x1xf32> to vector<64x32xf32>
    %17 = arith.subf %4, %16 : vector<64x32xf32>
    %cst_8 = arith.constant 9.99999974E-6 : f32
    %18 = vector.broadcast %cst_8 : f32 to vector<64x1xf32>
    %19 = arith.addf %15, %18 : vector<64x1xf32>
    %20 = math.rsqrt %19 : vector<64x1xf32>
    %21 = vector.broadcast %20 : vector<64x1xf32> to vector<64x32xf32>
    %22 = arith.mulf %17, %21 : vector<64x32xf32>
    %c0_9 = arith.constant 0 : index
    %c0_10 = arith.constant 0 : index
    %23 = vector.load %arg3[%c0_9, %c0_10] : memref<1x32xf32, #tpu.memory_space<vmem>>, vector<1x32xf32>
    %24 = vector.broadcast %23 : vector<1x32xf32> to vector<64x32xf32>
    %25 = arith.mulf %22, %24 : vector<64x32xf32>
    %c0_11 = arith.constant 0 : index
    %c0_12 = arith.constant 0 : index
    %26 = vector.load %arg4[%c0_11, %c0_12] : memref<1x32xf32, #tpu.memory_space<vmem>>, vector<1x32xf32>
    %27 = vector.broadcast %26 : vector<1x32xf32> to vector<64x32xf32>
    %28 = arith.addf %25, %27 : vector<64x32xf32>
    %c0_13 = arith.constant 0 : index
    %c0_14 = arith.constant 0 : index
    %c0_15 = arith.constant 0 : index
    %29 = vector.load %arg5[%c0_13, %c0_14, %c0_15] : memref<1x64x32xf32, #tpu.memory_space<vmem>>, vector<1x64x32xf32>
    %30 = vector.shape_cast %29 : vector<1x64x32xf32> to vector<64x32xf32>
    %31 = vector.shape_cast %28 : vector<64x32xf32> to vector<1x64x32xf32>
    tpu.vector_store %arg5[%c0_13, %c0_14, %c0_15], %31 {strides = array<i32>} : memref<1x64x32xf32, #tpu.memory_space<vmem>>, vector<1x64x32xf32>,
    %c0_16 = arith.constant 0 : index
    %c0_17 = arith.constant 0 : index
    %c0_18 = arith.constant 0 : index
    %32 = vector.load %arg6[%c0_16, %c0_17, %c0_18] : memref<1x64x32xf32, #tpu.memory_space<vmem>>, vector<1x64x32xf32>
    %33 = vector.shape_cast %32 : vector<1x64x32xf32> to vector<64x32xf32>
    %34 = vector.shape_cast %4 : vector<64x32xf32> to vector<1x64x32xf32>
    tpu.vector_store %arg6[%c0_16, %c0_17, %c0_18], %34 {strides = array<i32>} : memref<1x64x32xf32, #tpu.memory_space<vmem>>, vector<1x64x32xf32>,
    return
  }
  func.func @transform_0(%arg0: i32) -> (i32, i32, i32) {
    %c0_i32 = arith.constant 0 : i32
    %c0_i32_0 = arith.constant 0 : i32
    %c0_i32_1 = arith.constant 0 : i32
    return %arg0, %c0_i32, %c0_i32_0 : i32, i32, i32
  }
  func.func @transform_1(%arg0: i32) -> (i32, i32, i32) {
    %c0_i32 = arith.constant 0 : i32
    %c0_i32_0 = arith.constant 0 : i32
    %c0_i32_1 = arith.constant 0 : i32
    return %arg0, %c0_i32, %c0_i32_0 : i32, i32, i32
  }
  func.func @transform_2(%arg0: i32) -> (i32, i32) {
    %c0_i32 = arith.constant 0 : i32
    %c0_i32_0 = arith.constant 0 : i32
    %c0_i32_1 = arith.constant 0 : i32
    return %c0_i32, %c0_i32_0 : i32, i32
  }
  func.func @transform_3(%arg0: i32) -> (i32, i32) {
    %c0_i32 = arith.constant 0 : i32
    %c0_i32_0 = arith.constant 0 : i32
    %c0_i32_1 = arith.constant 0 : i32
    return %c0_i32, %c0_i32_0 : i32, i32
  }
  func.func @transform_4(%arg0: i32) -> (i32, i32, i32) {
    %c0_i32 = arith.constant 0 : i32
    %c0_i32_0 = arith.constant 0 : i32
    %c0_i32_1 = arith.constant 0 : i32
    return %arg0, %c0_i32, %c0_i32_0 : i32, i32, i32
  }
  func.func @transform_5(%arg0: i32) -> (i32, i32, i32) {
    %c0_i32 = arith.constant 0 : i32
    %c0_i32_0 = arith.constant 0 : i32
    %c0_i32_1 = arith.constant 0 : i32
    return %arg0, %c0_i32, %c0_i32_0 : i32, i32, i32
  }
}

module attributes {stable_mosaic.version = 11 : i64} {
  func.func @_matmul_kernel(%arg0: i32, %arg1: i32, %arg2: i32, %arg3: memref<128x32xbf16, #tpu.memory_space<vmem>>, %arg4: memref<32x256xbf16, #tpu.memory_space<vmem>>, %arg5: memref<1x256xf32, #tpu.memory_space<vmem>>, %arg6: memref<128x256xf32, #tpu.memory_space<vmem>>, %arg7: memref<128x256xf32, #tpu.memory_space<vmem>>) attributes {dimension_semantics = [#tpu.dimension_semantics<parallel>, #tpu.dimension_semantics<parallel>, #tpu.dimension_semantics<arbitrary>], iteration_bounds = array<i64: 1, 1, 1>, scalar_prefetch = 0 : i64, scratch_operands = 1 : i64, tpu.core_type = #tpu.core_type<tc>, window_params = [{transform_indices = @transform_0, window_bounds = array<i64: 128, 32>}, {transform_indices = @transform_1, window_bounds = array<i64: 32, 256>}, {transform_indices = @transform_2, window_bounds = array<i64: 1, 256>}, {transform_indices = @transform_3, window_bounds = array<i64: 128, 256>}]} {
    %c0_i32 = arith.constant 0 : i32
    %0 = arith.cmpi eq, %arg2, %c0_i32 : i32
    %1 = arith.extui %0 : i1 to i32
    %c0_i32_0 = arith.constant 0 : i32
    %2 = arith.cmpi ne, %1, %c0_i32_0 : i32
    scf.if %2 {
      %cst_10 = arith.constant 0.000000e+00 : f32
      %12 = vector.broadcast %cst_10 : f32 to vector<128x256xf32>
      %c0_11 = arith.constant 0 : index
      %c0_12 = arith.constant 0 : index
      %13 = vector.load %arg7[%c0_11, %c0_12] : memref<128x256xf32, #tpu.memory_space<vmem>>, vector<128x256xf32>
      tpu.vector_store %arg7[%c0_11, %c0_12], %12 {strides = array<i32>} : memref<128x256xf32, #tpu.memory_space<vmem>>, vector<128x256xf32>,
    } else {
    }
    %c0 = arith.constant 0 : index
    %c0_1 = arith.constant 0 : index
    %3 = vector.load %arg7[%c0, %c0_1] : memref<128x256xf32, #tpu.memory_space<vmem>>, vector<128x256xf32>
    %c0_2 = arith.constant 0 : index
    %c0_3 = arith.constant 0 : index
    %4 = vector.load %arg3[%c0_2, %c0_3] : memref<128x32xbf16, #tpu.memory_space<vmem>>, vector<128x32xbf16>
    %c0_4 = arith.constant 0 : index
    %c0_5 = arith.constant 0 : index
    %5 = vector.load %arg4[%c0_4, %c0_5] : memref<32x256xbf16, #tpu.memory_space<vmem>>, vector<32x256xbf16>
    %cst = arith.constant dense<0.000000e+00> : vector<128x256xf32>
    %6 = tpu.matmul %4, %5, %cst {dimension_numbers = #tpu.dot_dimension_numbers<[1], [0], [0], [1], [0, 0, 1, 1], [], []>} : vector<128x32xbf16>, vector<32x256xbf16>, vector<128x256xf32> -> vector<128x256xf32>
    %7 = arith.addf %3, %6 : vector<128x256xf32>
    %c0_6 = arith.constant 0 : index
    %c0_7 = arith.constant 0 : index
    %8 = vector.load %arg7[%c0_6, %c0_7] : memref<128x256xf32, #tpu.memory_space<vmem>>, vector<128x256xf32>
    tpu.vector_store %arg7[%c0_6, %c0_7], %7 {strides = array<i32>} : memref<128x256xf32, #tpu.memory_space<vmem>>, vector<128x256xf32>,
    %c0_i32_8 = arith.constant 0 : i32
    %9 = arith.cmpi eq, %arg2, %c0_i32_8 : i32
    %10 = arith.extui %9 : i1 to i32
    %c0_i32_9 = arith.constant 0 : i32
    %11 = arith.cmpi ne, %10, %c0_i32_9 : i32
    scf.if %11 {
      %c0_10 = arith.constant 0 : index
      %c0_11 = arith.constant 0 : index
      %12 = vector.load %arg7[%c0_10, %c0_11] : memref<128x256xf32, #tpu.memory_space<vmem>>, vector<128x256xf32>
      %c0_12 = arith.constant 0 : index
      %c0_13 = arith.constant 0 : index
      %13 = vector.load %arg5[%c0_12, %c0_13] : memref<1x256xf32, #tpu.memory_space<vmem>>, vector<1x256xf32>
      %14 = vector.broadcast %13 : vector<1x256xf32> to vector<128x256xf32>
      %15 = arith.addf %12, %14 : vector<128x256xf32>
      %c0_14 = arith.constant 0 : index
      %c0_15 = arith.constant 0 : index
      %16 = vector.load %arg6[%c0_14, %c0_15] : memref<128x256xf32, #tpu.memory_space<vmem>>, vector<128x256xf32>
      tpu.vector_store %arg6[%c0_14, %c0_15], %15 {strides = array<i32>} : memref<128x256xf32, #tpu.memory_space<vmem>>, vector<128x256xf32>,
    } else {
    }
    return
  }
  func.func @transform_0(%arg0: i32, %arg1: i32, %arg2: i32) -> (i32, i32) {
    %c0_i32 = arith.constant 0 : i32
    return %arg0, %arg2 : i32, i32
  }
  func.func @transform_1(%arg0: i32, %arg1: i32, %arg2: i32) -> (i32, i32) {
    %c0_i32 = arith.constant 0 : i32
    return %arg2, %arg1 : i32, i32
  }
  func.func @transform_2(%arg0: i32, %arg1: i32, %arg2: i32) -> (i32, i32) {
    %c0_i32 = arith.constant 0 : i32
    %c0_i32_0 = arith.constant 0 : i32
    return %c0_i32, %arg1 : i32, i32
  }
  func.func @transform_3(%arg0: i32, %arg1: i32, %arg2: i32) -> (i32, i32) {
    %c0_i32 = arith.constant 0 : i32
    return %arg0, %arg1 : i32, i32
  }
}

module attributes {stable_mosaic.version = 11 : i64} {
  func.func @_conv_silu_kernel(%arg0: i32, %arg1: memref<1x70x128xf32, #tpu.memory_space<vmem>>, %arg2: memref<7x128xf32, #tpu.memory_space<vmem>>, %arg3: memref<1x128xf32, #tpu.memory_space<vmem>>, %arg4: memref<1x64x128xf32, #tpu.memory_space<vmem>>) attributes {dimension_semantics = [#tpu.dimension_semantics<parallel>], iteration_bounds = array<i64: 2>, scalar_prefetch = 0 : i64, scratch_operands = 0 : i64, tpu.core_type = #tpu.core_type<tc>, window_params = [{transform_indices = @transform_0, window_bounds = array<i64: 1, 70, 128>}, {pipeline_mode = #tpu.pipeline_mode<synchronous>, transform_indices = @transform_1, window_bounds = array<i64: 7, 128>}, {pipeline_mode = #tpu.pipeline_mode<synchronous>, transform_indices = @transform_2, window_bounds = array<i64: 1, 128>}, {transform_indices = @transform_3, window_bounds = array<i64: 1, 64, 128>}]} {
    %c0 = arith.constant 0 : index
    %c0_0 = arith.constant 0 : index
    %c0_1 = arith.constant 0 : index
    %0 = vector.load %arg1[%c0, %c0_0, %c0_1] : memref<1x70x128xf32, #tpu.memory_space<vmem>>, vector<1x70x128xf32>
    %1 = vector.shape_cast %0 : vector<1x70x128xf32> to vector<70x128xf32>
    %cst = arith.constant 0.000000e+00 : f32
    %2 = vector.broadcast %cst : f32 to vector<64x128xf32>
    %c0_2 = arith.constant 0 : index
    %c0_3 = arith.constant 0 : index
    %3 = vector.load %arg3[%c0_2, %c0_3] : memref<1x128xf32, #tpu.memory_space<vmem>>, vector<1x128xf32>
    %4 = vector.broadcast %3 : vector<1x128xf32> to vector<64x128xf32>
    %5 = arith.addf %2, %4 : vector<64x128xf32>
    %6 = vector.extract_strided_slice %1 {offsets = [0, 0], sizes = [64, 128], strides = [1, 1]} : vector<70x128xf32> to vector<64x128xf32>
    %c0_4 = arith.constant 0 : index
    %c0_5 = arith.constant 0 : index
    %7 = vector.load %arg2[%c0_4, %c0_5] : memref<7x128xf32, #tpu.memory_space<vmem>>, vector<1x128xf32>
    %8 = vector.broadcast %7 : vector<1x128xf32> to vector<64x128xf32>
    %9 = arith.mulf %6, %8 : vector<64x128xf32>
    %10 = arith.addf %5, %9 : vector<64x128xf32>
    %11 = vector.extract_strided_slice %1 {offsets = [1, 0], sizes = [64, 128], strides = [1, 1]} : vector<70x128xf32> to vector<64x128xf32>
    %c1 = arith.constant 1 : index
    %c0_6 = arith.constant 0 : index
    %12 = vector.load %arg2[%c1, %c0_6] : memref<7x128xf32, #tpu.memory_space<vmem>>, vector<1x128xf32>
    %13 = vector.broadcast %12 : vector<1x128xf32> to vector<64x128xf32>
    %14 = arith.mulf %11, %13 : vector<64x128xf32>
    %15 = arith.addf %10, %14 : vector<64x128xf32>
    %16 = vector.extract_strided_slice %1 {offsets = [2, 0], sizes = [64, 128], strides = [1, 1]} : vector<70x128xf32> to vector<64x128xf32>
    %c2 = arith.constant 2 : index
    %c0_7 = arith.constant 0 : index
    %17 = vector.load %arg2[%c2, %c0_7] : memref<7x128xf32, #tpu.memory_space<vmem>>, vector<1x128xf32>
    %18 = vector.broadcast %17 : vector<1x128xf32> to vector<64x128xf32>
    %19 = arith.mulf %16, %18 : vector<64x128xf32>
    %20 = arith.addf %15, %19 : vector<64x128xf32>
    %21 = vector.extract_strided_slice %1 {offsets = [3, 0], sizes = [64, 128], strides = [1, 1]} : vector<70x128xf32> to vector<64x128xf32>
    %c3 = arith.constant 3 : index
    %c0_8 = arith.constant 0 : index
    %22 = vector.load %arg2[%c3, %c0_8] : memref<7x128xf32, #tpu.memory_space<vmem>>, vector<1x128xf32>
    %23 = vector.broadcast %22 : vector<1x128xf32> to vector<64x128xf32>
    %24 = arith.mulf %21, %23 : vector<64x128xf32>
    %25 = arith.addf %20, %24 : vector<64x128xf32>
    %26 = vector.extract_strided_slice %1 {offsets = [4, 0], sizes = [64, 128], strides = [1, 1]} : vector<70x128xf32> to vector<64x128xf32>
    %c4 = arith.constant 4 : index
    %c0_9 = arith.constant 0 : index
    %27 = vector.load %arg2[%c4, %c0_9] : memref<7x128xf32, #tpu.memory_space<vmem>>, vector<1x128xf32>
    %28 = vector.broadcast %27 : vector<1x128xf32> to vector<64x128xf32>
    %29 = arith.mulf %26, %28 : vector<64x128xf32>
    %30 = arith.addf %25, %29 : vector<64x128xf32>
    %31 = vector.extract_strided_slice %1 {offsets = [5, 0], sizes = [64, 128], strides = [1, 1]} : vector<70x128xf32> to vector<64x128xf32>
    %c5 = arith.constant 5 : index
    %c0_10 = arith.constant 0 : index
    %32 = vector.load %arg2[%c5, %c0_10] : memref<7x128xf32, #tpu.memory_space<vmem>>, vector<1x128xf32>
    %33 = vector.broadcast %32 : vector<1x128xf32> to vector<64x128xf32>
    %34 = arith.mulf %31, %33 : vector<64x128xf32>
    %35 = arith.addf %30, %34 : vector<64x128xf32>
    %36 = vector.extract_strided_slice %1 {offsets = [6, 0], sizes = [64, 128], strides = [1, 1]} : vector<70x128xf32> to vector<64x128xf32>
    %c6 = arith.constant 6 : index
    %c0_11 = arith.constant 0 : index
    %37 = vector.load %arg2[%c6, %c0_11] : memref<7x128xf32, #tpu.memory_space<vmem>>, vector<1x128xf32>
    %38 = vector.broadcast %37 : vector<1x128xf32> to vector<64x128xf32>
    %39 = arith.mulf %36, %38 : vector<64x128xf32>
    %40 = arith.addf %35, %39 : vector<64x128xf32>
    %41 = arith.negf %40 : vector<64x128xf32>
    %42 = math.exp %41 : vector<64x128xf32>
    %cst_12 = arith.constant 1.000000e+00 : f32
    %43 = vector.broadcast %cst_12 : f32 to vector<64x128xf32>
    %44 = arith.addf %43, %42 : vector<64x128xf32>
    %45 = arith.divf %43, %44 : vector<64x128xf32>
    %46 = arith.mulf %40, %45 : vector<64x128xf32>
    %c0_13 = arith.constant 0 : index
    %c0_14 = arith.constant 0 : index
    %c0_15 = arith.constant 0 : index
    %47 = vector.load %arg4[%c0_13, %c0_14, %c0_15] : memref<1x64x128xf32, #tpu.memory_space<vmem>>, vector<1x64x128xf32>
    %48 = vector.shape_cast %47 : vector<1x64x128xf32> to vector<64x128xf32>
    %49 = vector.shape_cast %46 : vector<64x128xf32> to vector<1x64x128xf32>
    tpu.vector_store %arg4[%c0_13, %c0_14, %c0_15], %49 {strides = array<i32>} : memref<1x64x128xf32, #tpu.memory_space<vmem>>, vector<1x64x128xf32>,
    return
  }
  func.func @transform_0(%arg0: i32) -> (i32, i32, i32) {
    %c0_i32 = arith.constant 0 : i32
    %c0_i32_0 = arith.constant 0 : i32
    %c0_i32_1 = arith.constant 0 : i32
    return %arg0, %c0_i32, %c0_i32_0 : i32, i32, i32
  }
  func.func @transform_1(%arg0: i32) -> (i32, i32) {
    %c0_i32 = arith.constant 0 : i32
    %c0_i32_0 = arith.constant 0 : i32
    %c0_i32_1 = arith.constant 0 : i32
    return %c0_i32, %c0_i32_0 : i32, i32
  }
  func.func @transform_2(%arg0: i32) -> (i32, i32) {
    %c0_i32 = arith.constant 0 : i32
    %c0_i32_0 = arith.constant 0 : i32
    %c0_i32_1 = arith.constant 0 : i32
    return %c0_i32, %c0_i32_0 : i32, i32
  }
  func.func @transform_3(%arg0: i32) -> (i32, i32, i32) {
    %c0_i32 = arith.constant 0 : i32
    %c0_i32_0 = arith.constant 0 : i32
    %c0_i32_1 = arith.constant 0 : i32
    return %arg0, %c0_i32, %c0_i32_0 : i32, i32, i32
  }
}

module attributes {stable_mosaic.version = 11 : i64} {
  func.func @_matmul_kernel(%arg0: i32, %arg1: i32, %arg2: i32, %arg3: memref<128x128xbf16, #tpu.memory_space<vmem>>, %arg4: memref<128x256xbf16, #tpu.memory_space<vmem>>, %arg5: memref<1x256xf32, #tpu.memory_space<vmem>>, %arg6: memref<128x256xf32, #tpu.memory_space<vmem>>, %arg7: memref<128x256xf32, #tpu.memory_space<vmem>>) attributes {dimension_semantics = [#tpu.dimension_semantics<parallel>, #tpu.dimension_semantics<parallel>, #tpu.dimension_semantics<arbitrary>], iteration_bounds = array<i64: 1, 1, 1>, scalar_prefetch = 0 : i64, scratch_operands = 1 : i64, tpu.core_type = #tpu.core_type<tc>, window_params = [{transform_indices = @transform_0, window_bounds = array<i64: 128, 128>}, {transform_indices = @transform_1, window_bounds = array<i64: 128, 256>}, {transform_indices = @transform_2, window_bounds = array<i64: 1, 256>}, {transform_indices = @transform_3, window_bounds = array<i64: 128, 256>}]} {
    %c0_i32 = arith.constant 0 : i32
    %0 = arith.cmpi eq, %arg2, %c0_i32 : i32
    %1 = arith.extui %0 : i1 to i32
    %c0_i32_0 = arith.constant 0 : i32
    %2 = arith.cmpi ne, %1, %c0_i32_0 : i32
    scf.if %2 {
      %cst_10 = arith.constant 0.000000e+00 : f32
      %12 = vector.broadcast %cst_10 : f32 to vector<128x256xf32>
      %c0_11 = arith.constant 0 : index
      %c0_12 = arith.constant 0 : index
      %13 = vector.load %arg7[%c0_11, %c0_12] : memref<128x256xf32, #tpu.memory_space<vmem>>, vector<128x256xf32>
      tpu.vector_store %arg7[%c0_11, %c0_12], %12 {strides = array<i32>} : memref<128x256xf32, #tpu.memory_space<vmem>>, vector<128x256xf32>,
    } else {
    }
    %c0 = arith.constant 0 : index
    %c0_1 = arith.constant 0 : index
    %3 = vector.load %arg7[%c0, %c0_1] : memref<128x256xf32, #tpu.memory_space<vmem>>, vector<128x256xf32>
    %c0_2 = arith.constant 0 : index
    %c0_3 = arith.constant 0 : index
    %4 = vector.load %arg3[%c0_2, %c0_3] : memref<128x128xbf16, #tpu.memory_space<vmem>>, vector<128x128xbf16>
    %c0_4 = arith.constant 0 : index
    %c0_5 = arith.constant 0 : index
    %5 = vector.load %arg4[%c0_4, %c0_5] : memref<128x256xbf16, #tpu.memory_space<vmem>>, vector<128x256xbf16>
    %cst = arith.constant dense<0.000000e+00> : vector<128x256xf32>
    %6 = tpu.matmul %4, %5, %cst {dimension_numbers = #tpu.dot_dimension_numbers<[1], [0], [0], [1], [0, 0, 1, 1], [], []>} : vector<128x128xbf16>, vector<128x256xbf16>, vector<128x256xf32> -> vector<128x256xf32>
    %7 = arith.addf %3, %6 : vector<128x256xf32>
    %c0_6 = arith.constant 0 : index
    %c0_7 = arith.constant 0 : index
    %8 = vector.load %arg7[%c0_6, %c0_7] : memref<128x256xf32, #tpu.memory_space<vmem>>, vector<128x256xf32>
    tpu.vector_store %arg7[%c0_6, %c0_7], %7 {strides = array<i32>} : memref<128x256xf32, #tpu.memory_space<vmem>>, vector<128x256xf32>,
    %c0_i32_8 = arith.constant 0 : i32
    %9 = arith.cmpi eq, %arg2, %c0_i32_8 : i32
    %10 = arith.extui %9 : i1 to i32
    %c0_i32_9 = arith.constant 0 : i32
    %11 = arith.cmpi ne, %10, %c0_i32_9 : i32
    scf.if %11 {
      %c0_10 = arith.constant 0 : index
      %c0_11 = arith.constant 0 : index
      %12 = vector.load %arg7[%c0_10, %c0_11] : memref<128x256xf32, #tpu.memory_space<vmem>>, vector<128x256xf32>
      %c0_12 = arith.constant 0 : index
      %c0_13 = arith.constant 0 : index
      %13 = vector.load %arg5[%c0_12, %c0_13] : memref<1x256xf32, #tpu.memory_space<vmem>>, vector<1x256xf32>
      %14 = vector.broadcast %13 : vector<1x256xf32> to vector<128x256xf32>
      %15 = arith.addf %12, %14 : vector<128x256xf32>
      %c0_14 = arith.constant 0 : index
      %c0_15 = arith.constant 0 : index
      %16 = vector.load %arg6[%c0_14, %c0_15] : memref<128x256xf32, #tpu.memory_space<vmem>>, vector<128x256xf32>
      tpu.vector_store %arg6[%c0_14, %c0_15], %15 {strides = array<i32>} : memref<128x256xf32, #tpu.memory_space<vmem>>, vector<128x256xf32>,
    } else {
    }
    return
  }
  func.func @transform_0(%arg0: i32, %arg1: i32, %arg2: i32) -> (i32, i32) {
    %c0_i32 = arith.constant 0 : i32
    return %arg0, %arg2 : i32, i32
  }
  func.func @transform_1(%arg0: i32, %arg1: i32, %arg2: i32) -> (i32, i32) {
    %c0_i32 = arith.constant 0 : i32
    return %arg2, %arg1 : i32, i32
  }
  func.func @transform_2(%arg0: i32, %arg1: i32, %arg2: i32) -> (i32, i32) {
    %c0_i32 = arith.constant 0 : i32
    %c0_i32_0 = arith.constant 0 : i32
    return %c0_i32, %arg1 : i32, i32
  }
  func.func @transform_3(%arg0: i32, %arg1: i32, %arg2: i32) -> (i32, i32) {
    %c0_i32 = arith.constant 0 : i32
    return %arg0, %arg1 : i32, i32
  }
}

module attributes {stable_mosaic.version = 11 : i64} {
  func.func @_matmul_kernel(%arg0: i32, %arg1: i32, %arg2: i32, %arg3: memref<128x128xbf16, #tpu.memory_space<vmem>>, %arg4: memref<128x32xbf16, #tpu.memory_space<vmem>>, %arg5: memref<1x32xf32, #tpu.memory_space<vmem>>, %arg6: memref<128x32xf32, #tpu.memory_space<vmem>>, %arg7: memref<128x32xf32, #tpu.memory_space<vmem>>) attributes {dimension_semantics = [#tpu.dimension_semantics<parallel>, #tpu.dimension_semantics<parallel>, #tpu.dimension_semantics<arbitrary>], iteration_bounds = array<i64: 1, 1, 1>, scalar_prefetch = 0 : i64, scratch_operands = 1 : i64, tpu.core_type = #tpu.core_type<tc>, window_params = [{transform_indices = @transform_0, window_bounds = array<i64: 128, 128>}, {transform_indices = @transform_1, window_bounds = array<i64: 128, 32>}, {transform_indices = @transform_2, window_bounds = array<i64: 1, 32>}, {transform_indices = @transform_3, window_bounds = array<i64: 128, 32>}]} {
    %c0_i32 = arith.constant 0 : i32
    %0 = arith.cmpi eq, %arg2, %c0_i32 : i32
    %1 = arith.extui %0 : i1 to i32
    %c0_i32_0 = arith.constant 0 : i32
    %2 = arith.cmpi ne, %1, %c0_i32_0 : i32
    scf.if %2 {
      %cst_10 = arith.constant 0.000000e+00 : f32
      %12 = vector.broadcast %cst_10 : f32 to vector<128x32xf32>
      %c0_11 = arith.constant 0 : index
      %c0_12 = arith.constant 0 : index
      %13 = vector.load %arg7[%c0_11, %c0_12] : memref<128x32xf32, #tpu.memory_space<vmem>>, vector<128x32xf32>
      tpu.vector_store %arg7[%c0_11, %c0_12], %12 {strides = array<i32>} : memref<128x32xf32, #tpu.memory_space<vmem>>, vector<128x32xf32>,
    } else {
    }
    %c0 = arith.constant 0 : index
    %c0_1 = arith.constant 0 : index
    %3 = vector.load %arg7[%c0, %c0_1] : memref<128x32xf32, #tpu.memory_space<vmem>>, vector<128x32xf32>
    %c0_2 = arith.constant 0 : index
    %c0_3 = arith.constant 0 : index
    %4 = vector.load %arg3[%c0_2, %c0_3] : memref<128x128xbf16, #tpu.memory_space<vmem>>, vector<128x128xbf16>
    %c0_4 = arith.constant 0 : index
    %c0_5 = arith.constant 0 : index
    %5 = vector.load %arg4[%c0_4, %c0_5] : memref<128x32xbf16, #tpu.memory_space<vmem>>, vector<128x32xbf16>
    %cst = arith.constant dense<0.000000e+00> : vector<128x32xf32>
    %6 = tpu.matmul %4, %5, %cst {dimension_numbers = #tpu.dot_dimension_numbers<[1], [0], [0], [1], [0, 0, 1, 1], [], []>} : vector<128x128xbf16>, vector<128x32xbf16>, vector<128x32xf32> -> vector<128x32xf32>
    %7 = arith.addf %3, %6 : vector<128x32xf32>
    %c0_6 = arith.constant 0 : index
    %c0_7 = arith.constant 0 : index
    %8 = vector.load %arg7[%c0_6, %c0_7] : memref<128x32xf32, #tpu.memory_space<vmem>>, vector<128x32xf32>
    tpu.vector_store %arg7[%c0_6, %c0_7], %7 {strides = array<i32>} : memref<128x32xf32, #tpu.memory_space<vmem>>, vector<128x32xf32>,
    %c0_i32_8 = arith.constant 0 : i32
    %9 = arith.cmpi eq, %arg2, %c0_i32_8 : i32
    %10 = arith.extui %9 : i1 to i32
    %c0_i32_9 = arith.constant 0 : i32
    %11 = arith.cmpi ne, %10, %c0_i32_9 : i32
    scf.if %11 {
      %c0_10 = arith.constant 0 : index
      %c0_11 = arith.constant 0 : index
      %12 = vector.load %arg7[%c0_10, %c0_11] : memref<128x32xf32, #tpu.memory_space<vmem>>, vector<128x32xf32>
      %c0_12 = arith.constant 0 : index
      %c0_13 = arith.constant 0 : index
      %13 = vector.load %arg5[%c0_12, %c0_13] : memref<1x32xf32, #tpu.memory_space<vmem>>, vector<1x32xf32>
      %14 = vector.broadcast %13 : vector<1x32xf32> to vector<128x32xf32>
      %15 = arith.addf %12, %14 : vector<128x32xf32>
      %c0_14 = arith.constant 0 : index
      %c0_15 = arith.constant 0 : index
      %16 = vector.load %arg6[%c0_14, %c0_15] : memref<128x32xf32, #tpu.memory_space<vmem>>, vector<128x32xf32>
      tpu.vector_store %arg6[%c0_14, %c0_15], %15 {strides = array<i32>} : memref<128x32xf32, #tpu.memory_space<vmem>>, vector<128x32xf32>,
    } else {
    }
    return
  }
  func.func @transform_0(%arg0: i32, %arg1: i32, %arg2: i32) -> (i32, i32) {
    %c0_i32 = arith.constant 0 : i32
    return %arg0, %arg2 : i32, i32
  }
  func.func @transform_1(%arg0: i32, %arg1: i32, %arg2: i32) -> (i32, i32) {
    %c0_i32 = arith.constant 0 : i32
    return %arg2, %arg1 : i32, i32
  }
  func.func @transform_2(%arg0: i32, %arg1: i32, %arg2: i32) -> (i32, i32) {
    %c0_i32 = arith.constant 0 : i32
    %c0_i32_0 = arith.constant 0 : i32
    return %c0_i32, %arg1 : i32, i32
  }
  func.func @transform_3(%arg0: i32, %arg1: i32, %arg2: i32) -> (i32, i32) {
    %c0_i32 = arith.constant 0 : i32
    return %arg0, %arg1 : i32, i32
  }
}

module attributes {stable_mosaic.version = 11 : i64} {
  func.func @_add_ln_kernel(%arg0: i32, %arg1: memref<1x64x32xf32, #tpu.memory_space<vmem>>, %arg2: memref<1x64x32xf32, #tpu.memory_space<vmem>>, %arg3: memref<1x32xf32, #tpu.memory_space<vmem>>, %arg4: memref<1x32xf32, #tpu.memory_space<vmem>>, %arg5: memref<1x64x32xf32, #tpu.memory_space<vmem>>, %arg6: memref<1x64x32xf32, #tpu.memory_space<vmem>>) attributes {dimension_semantics = [#tpu.dimension_semantics<parallel>], iteration_bounds = array<i64: 2>, scalar_prefetch = 0 : i64, scratch_operands = 0 : i64, tpu.core_type = #tpu.core_type<tc>, window_params = [{transform_indices = @transform_0, window_bounds = array<i64: 1, 64, 32>}, {transform_indices = @transform_1, window_bounds = array<i64: 1, 64, 32>}, {pipeline_mode = #tpu.pipeline_mode<synchronous>, transform_indices = @transform_2, window_bounds = array<i64: 1, 32>}, {pipeline_mode = #tpu.pipeline_mode<synchronous>, transform_indices = @transform_3, window_bounds = array<i64: 1, 32>}, {transform_indices = @transform_4, window_bounds = array<i64: 1, 64, 32>}, {transform_indices = @transform_5, window_bounds = array<i64: 1, 64, 32>}]} {
    %c0 = arith.constant 0 : index
    %c0_0 = arith.constant 0 : index
    %c0_1 = arith.constant 0 : index
    %0 = vector.load %arg1[%c0, %c0_0, %c0_1] : memref<1x64x32xf32, #tpu.memory_space<vmem>>, vector<1x64x32xf32>
    %1 = vector.shape_cast %0 : vector<1x64x32xf32> to vector<64x32xf32>
    %c0_2 = arith.constant 0 : index
    %c0_3 = arith.constant 0 : index
    %c0_4 = arith.constant 0 : index
    %2 = vector.load %arg2[%c0_2, %c0_3, %c0_4] : memref<1x64x32xf32, #tpu.memory_space<vmem>>, vector<1x64x32xf32>
    %3 = vector.shape_cast %2 : vector<1x64x32xf32> to vector<64x32xf32>
    %4 = arith.addf %1, %3 : vector<64x32xf32>
    %cst = arith.constant dense<0.000000e+00> : vector<64xf32>
    %5 = vector.multi_reduction <add>, %4, %cst [1] : vector<64x32xf32> to vector<64xf32>
    %6 = vector.shape_cast %5 : vector<64xf32> to vector<64x1xf32>
    %cst_5 = arith.constant 3.200000e+01 : f32
    %7 = vector.broadcast %cst_5 : f32 to vector<64x1xf32>
    %8 = arith.divf %6, %7 : vector<64x1xf32>
    %9 = vector.broadcast %8 : vector<64x1xf32> to vector<64x32xf32>
    %10 = arith.subf %4, %9 : vector<64x32xf32>
    %11 = arith.mulf %10, %10 : vector<64x32xf32>
    %cst_6 = arith.constant dense<0.000000e+00> : vector<64xf32>
    %12 = vector.multi_reduction <add>, %11, %cst_6 [1] : vector<64x32xf32> to vector<64xf32>
    %13 = vector.shape_cast %12 : vector<64xf32> to vector<64x1xf32>
    %cst_7 = arith.constant 3.200000e+01 : f32
    %14 = vector.broadcast %cst_7 : f32 to vector<64x1xf32>
    %15 = arith.divf %13, %14 : vector<64x1xf32>
    %16 = vector.broadcast %8 : vector<64x1xf32> to vector<64x32xf32>
    %17 = arith.subf %4, %16 : vector<64x32xf32>
    %cst_8 = arith.constant 9.99999974E-6 : f32
    %18 = vector.broadcast %cst_8 : f32 to vector<64x1xf32>
    %19 = arith.addf %15, %18 : vector<64x1xf32>
    %20 = math.rsqrt %19 : vector<64x1xf32>
    %21 = vector.broadcast %20 : vector<64x1xf32> to vector<64x32xf32>
    %22 = arith.mulf %17, %21 : vector<64x32xf32>
    %c0_9 = arith.constant 0 : index
    %c0_10 = arith.constant 0 : index
    %23 = vector.load %arg3[%c0_9, %c0_10] : memref<1x32xf32, #tpu.memory_space<vmem>>, vector<1x32xf32>
    %24 = vector.broadcast %23 : vector<1x32xf32> to vector<64x32xf32>
    %25 = arith.mulf %22, %24 : vector<64x32xf32>
    %c0_11 = arith.constant 0 : index
    %c0_12 = arith.constant 0 : index
    %26 = vector.load %arg4[%c0_11, %c0_12] : memref<1x32xf32, #tpu.memory_space<vmem>>, vector<1x32xf32>
    %27 = vector.broadcast %26 : vector<1x32xf32> to vector<64x32xf32>
    %28 = arith.addf %25, %27 : vector<64x32xf32>
    %c0_13 = arith.constant 0 : index
    %c0_14 = arith.constant 0 : index
    %c0_15 = arith.constant 0 : index
    %29 = vector.load %arg5[%c0_13, %c0_14, %c0_15] : memref<1x64x32xf32, #tpu.memory_space<vmem>>, vector<1x64x32xf32>
    %30 = vector.shape_cast %29 : vector<1x64x32xf32> to vector<64x32xf32>
    %31 = vector.shape_cast %28 : vector<64x32xf32> to vector<1x64x32xf32>
    tpu.vector_store %arg5[%c0_13, %c0_14, %c0_15], %31 {strides = array<i32>} : memref<1x64x32xf32, #tpu.memory_space<vmem>>, vector<1x64x32xf32>,
    %c0_16 = arith.constant 0 : index
    %c0_17 = arith.constant 0 : index
    %c0_18 = arith.constant 0 : index
    %32 = vector.load %arg6[%c0_16, %c0_17, %c0_18] : memref<1x64x32xf32, #tpu.memory_space<vmem>>, vector<1x64x32xf32>
    %33 = vector.shape_cast %32 : vector<1x64x32xf32> to vector<64x32xf32>
    %34 = vector.shape_cast %4 : vector<64x32xf32> to vector<1x64x32xf32>
    tpu.vector_store %arg6[%c0_16, %c0_17, %c0_18], %34 {strides = array<i32>} : memref<1x64x32xf32, #tpu.memory_space<vmem>>, vector<1x64x32xf32>,
    return
  }
  func.func @transform_0(%arg0: i32) -> (i32, i32, i32) {
    %c0_i32 = arith.constant 0 : i32
    %c0_i32_0 = arith.constant 0 : i32
    %c0_i32_1 = arith.constant 0 : i32
    return %arg0, %c0_i32, %c0_i32_0 : i32, i32, i32
  }
  func.func @transform_1(%arg0: i32) -> (i32, i32, i32) {
    %c0_i32 = arith.constant 0 : i32
    %c0_i32_0 = arith.constant 0 : i32
    %c0_i32_1 = arith.constant 0 : i32
    return %arg0, %c0_i32, %c0_i32_0 : i32, i32, i32
  }
  func.func @transform_2(%arg0: i32) -> (i32, i32) {
    %c0_i32 = arith.constant 0 : i32
    %c0_i32_0 = arith.constant 0 : i32
    %c0_i32_1 = arith.constant 0 : i32
    return %c0_i32, %c0_i32_0 : i32, i32
  }
  func.func @transform_3(%arg0: i32) -> (i32, i32) {
    %c0_i32 = arith.constant 0 : i32
    %c0_i32_0 = arith.constant 0 : i32
    %c0_i32_1 = arith.constant 0 : i32
    return %c0_i32, %c0_i32_0 : i32, i32
  }
  func.func @transform_4(%arg0: i32) -> (i32, i32, i32) {
    %c0_i32 = arith.constant 0 : i32
    %c0_i32_0 = arith.constant 0 : i32
    %c0_i32_1 = arith.constant 0 : i32
    return %arg0, %c0_i32, %c0_i32_0 : i32, i32, i32
  }
  func.func @transform_5(%arg0: i32) -> (i32, i32, i32) {
    %c0_i32 = arith.constant 0 : i32
    %c0_i32_0 = arith.constant 0 : i32
    %c0_i32_1 = arith.constant 0 : i32
    return %arg0, %c0_i32, %c0_i32_0 : i32, i32, i32
  }
}

module attributes {stable_mosaic.version = 11 : i64} {
  func.func @_scan_kernel(%arg0: i32, %arg1: memref<1x64x128xf32, #tpu.memory_space<vmem>>, %arg2: memref<1x64x128xf32, #tpu.memory_space<vmem>>, %arg3: memref<1x64x128xf32, #tpu.memory_space<vmem>>, %arg4: memref<1x64x64xf32, #tpu.memory_space<vmem>>, %arg5: memref<16x128xf32, #tpu.memory_space<vmem>>, %arg6: memref<1x128xf32, #tpu.memory_space<vmem>>, %arg7: memref<1x128xf32, #tpu.memory_space<vmem>>, %arg8: memref<1x64x128xf32, #tpu.memory_space<vmem>>, %arg9: memref<64x128xf32, #tpu.memory_space<vmem>>) attributes {dimension_semantics = [#tpu.dimension_semantics<parallel>], iteration_bounds = array<i64: 2>, scalar_prefetch = 0 : i64, scratch_operands = 1 : i64, tpu.core_type = #tpu.core_type<tc>, window_params = [{transform_indices = @transform_0, window_bounds = array<i64: 1, 64, 128>}, {transform_indices = @transform_1, window_bounds = array<i64: 1, 64, 128>}, {transform_indices = @transform_2, window_bounds = array<i64: 1, 64, 128>}, {transform_indices = @transform_3, window_bounds = array<i64: 1, 64, 64>}, {pipeline_mode = #tpu.pipeline_mode<synchronous>, transform_indices = @transform_4, window_bounds = array<i64: 16, 128>}, {pipeline_mode = #tpu.pipeline_mode<synchronous>, transform_indices = @transform_5, window_bounds = array<i64: 1, 128>}, {pipeline_mode = #tpu.pipeline_mode<synchronous>, transform_indices = @transform_6, window_bounds = array<i64: 1, 128>}, {transform_indices = @transform_7, window_bounds = array<i64: 1, 64, 128>}]} {
    %c0 = arith.constant 0 : index
    %c0_0 = arith.constant 0 : index
    %c0_1 = arith.constant 0 : index
    %0 = vector.load %arg3[%c0, %c0_0, %c0_1] : memref<1x64x128xf32, #tpu.memory_space<vmem>>, vector<1x64x128xf32>
    %1 = vector.shape_cast %0 : vector<1x64x128xf32> to vector<64x128xf32>
    %c0_2 = arith.constant 0 : index
    %c0_3 = arith.constant 0 : index
    %2 = vector.load %arg7[%c0_2, %c0_3] : memref<1x128xf32, #tpu.memory_space<vmem>>, vector<1x128xf32>
    %3 = vector.broadcast %2 : vector<1x128xf32> to vector<64x128xf32>
    %4 = arith.addf %1, %3 : vector<64x128xf32>
    %cst = arith.constant 0.000000e+00 : f32
    %5 = vector.broadcast %cst : f32 to vector<64x128xf32>
    %6 = arith.maximumf %4, %5 : vector<64x128xf32>
    %7 = vector.broadcast %cst : f32 to vector<64x128xf32>
    %8 = arith.subf %4, %7 : vector<64x128xf32>
    %9 = arith.cmpf one, %8, %8 : vector<64x128xf32>
    %10 = vector.broadcast %cst : f32 to vector<64x128xf32>
    %11 = arith.addf %4, %10 : vector<64x128xf32>
    %12 = math.absf %8 : vector<64x128xf32>
    %cst_4 = arith.constant 0.000000e+00 : f32
    %13 = vector.broadcast %cst_4 : f32 to vector<64x128xf32>
    %14 = arith.subf %13, %12 : vector<64x128xf32>
    %15 = math.exp %14 : vector<64x128xf32>
    %16 = math.log1p %15 : vector<64x128xf32>
    %17 = arith.addf %6, %16 : vector<64x128xf32>
    %18 = arith.select %9, %11, %17 : vector<64x128xi1>, vector<64x128xf32>
    %c0_5 = arith.constant 0 : index
    %c0_6 = arith.constant 0 : index
    %19 = vector.load %arg9[%c0_5, %c0_6] : memref<64x128xf32, #tpu.memory_space<vmem>>, vector<64x128xf32>
    tpu.vector_store %arg9[%c0_5, %c0_6], %18 {strides = array<i32>} : memref<64x128xf32, #tpu.memory_space<vmem>>, vector<64x128xf32>,
    %c0_7 = arith.constant 0 : index
    %c0_8 = arith.constant 0 : index
    %20 = vector.load %arg5[%c0_7, %c0_8] : memref<16x128xf32, #tpu.memory_space<vmem>>, vector<16x128xf32>
    %c0_9 = arith.constant 0 : index
    %c0_10 = arith.constant 0 : index
    %21 = vector.load %arg6[%c0_9, %c0_10] : memref<1x128xf32, #tpu.memory_space<vmem>>, vector<1x128xf32>
    %c0_11 = arith.constant 0 : index
    %c0_12 = arith.constant 0 : index
    %c0_13 = arith.constant 0 : index
    %22 = vector.load %arg4[%c0_11, %c0_12, %c0_13] : memref<1x64x64xf32, #tpu.memory_space<vmem>>, vector<1x64x64xf32>
    %23 = vector.shape_cast %22 : vector<1x64x64xf32> to vector<64x64xf32>
    %24 = vector.extract_strided_slice %23 {offsets = [0, 0], sizes = [32, 64], strides = [1, 1]} : vector<64x64xf32> to vector<32x64xf32>
    %25 = vector.extract_strided_slice %23 {offsets = [32, 0], sizes = [32, 64], strides = [1, 1]} : vector<64x64xf32> to vector<32x64xf32>
    %26 = tpu.iota {dimensions = array<i32: 1>} : vector<1x128xi32>
    %c64_i32 = arith.constant 64 : i32
    %27 = vector.broadcast %c64_i32 : i32 to vector<1x128xi32>
    %28 = arith.cmpi slt, %26, %27 : vector<1x128xi32>
    %29 = tpu.iota {dimensions = array<i32: 1>} : vector<1x64xi32>
    %cst_14 = arith.constant 0.000000e+00 : f32
    %30 = vector.broadcast %cst_14 : f32 to vector<16x128xf32>
    %c0_i32 = arith.constant 0 : i32
    %c64_i32_15 = arith.constant 64 : i32
    %31 = arith.addi %c0_i32, %c64_i32_15 : i32
    %c1_i32 = arith.constant 1 : i32
    %32 = scf.for %arg10 = %c0_i32 to %31 step %c1_i32 iter_args(%arg11 = %30) -> (vector<16x128xf32>)  : i32 {
      %c63_i32 = arith.constant 63 : i32
      %33 = arith.subi %c63_i32, %arg10 : i32
      %c0_17 = arith.constant 0 : index
      %34 = arith.index_cast %arg10 : i32 to index
      %c0_18 = arith.constant 0 : index
      %35 = vector.load %arg1[%c0_17, %34, %c0_18] : memref<1x64x128xf32, #tpu.memory_space<vmem>>, vector<1x1x128xf32>
      %36 = vector.shape_cast %35 : vector<1x1x128xf32> to vector<1x128xf32>
      %c0_19 = arith.constant 0 : index
      %37 = arith.index_cast %33 : i32 to index
      %c0_20 = arith.constant 0 : index
      %38 = vector.load %arg1[%c0_19, %37, %c0_20] : memref<1x64x128xf32, #tpu.memory_space<vmem>>, vector<1x1x128xf32>
      %39 = vector.shape_cast %38 : vector<1x1x128xf32> to vector<1x128xf32>
      %40 = arith.select %28, %36, %39 : vector<1x128xi1>, vector<1x128xf32>
      %c0_21 = arith.constant 0 : index
      %41 = arith.index_cast %arg10 : i32 to index
      %c0_22 = arith.constant 0 : index
      %42 = vector.load %arg2[%c0_21, %41, %c0_22] : memref<1x64x128xf32, #tpu.memory_space<vmem>>, vector<1x1x128xf32>
      %43 = vector.shape_cast %42 : vector<1x1x128xf32> to vector<1x128xf32>
      %c0_23 = arith.constant 0 : index
      %44 = arith.index_cast %33 : i32 to index
      %c0_24 = arith.constant 0 : index
      %45 = vector.load %arg2[%c0_23, %44, %c0_24] : memref<1x64x128xf32, #tpu.memory_space<vmem>>, vector<1x1x128xf32>
      %46 = vector.shape_cast %45 : vector<1x1x128xf32> to vector<1x128xf32>
      %47 = arith.select %28, %43, %46 : vector<1x128xi1>, vector<1x128xf32>
      %48 = arith.index_cast %arg10 : i32 to index
      %c0_25 = arith.constant 0 : index
      %49 = vector.load %arg9[%48, %c0_25] : memref<64x128xf32, #tpu.memory_space<vmem>>, vector<1x128xf32>
      %50 = arith.index_cast %33 : i32 to index
      %c0_26 = arith.constant 0 : index
      %51 = vector.load %arg9[%50, %c0_26] : memref<64x128xf32, #tpu.memory_space<vmem>>, vector<1x128xf32>
      %52 = arith.select %28, %49, %51 : vector<1x128xi1>, vector<1x128xf32>
      %53 = vector.broadcast %arg10 : i32 to vector<1x64xi32>
      %54 = arith.cmpi eq, %29, %53 : vector<1x64xi32>
      %cst_27 = arith.constant 0.000000e+00 : f32
      %55 = vector.shape_cast %54 : vector<1x64xi1> to vector<1x64xi1>
      %56 = vector.broadcast %55 : vector<1x64xi1> to vector<32x64xi1>
      %57 = vector.broadcast %cst_27 : f32 to vector<32x64xf32>
      %58 = arith.select %56, %24, %57 : vector<32x64xi1>, vector<32x64xf32>
      %cst_28 = arith.constant dense<0.000000e+00> : vector<32xf32>
      %59 = vector.multi_reduction <add>, %58, %cst_28 [1] : vector<32x64xf32> to vector<32xf32>
      %60 = vector.shape_cast %59 : vector<32xf32> to vector<32x1xf32>
      %61 = vector.broadcast %33 : i32 to vector<1x64xi32>
      %62 = arith.cmpi eq, %29, %61 : vector<1x64xi32>
      %cst_29 = arith.constant 0.000000e+00 : f32
      %63 = vector.shape_cast %62 : vector<1x64xi1> to vector<1x64xi1>
      %64 = vector.broadcast %63 : vector<1x64xi1> to vector<32x64xi1>
      %65 = vector.broadcast %cst_29 : f32 to vector<32x64xf32>
      %66 = arith.select %64, %25, %65 : vector<32x64xi1>, vector<32x64xf32>
      %cst_30 = arith.constant dense<0.000000e+00> : vector<32xf32>
      %67 = vector.multi_reduction <add>, %66, %cst_30 [1] : vector<32x64xf32> to vector<32xf32>
      %68 = vector.shape_cast %67 : vector<32xf32> to vector<32x1xf32>
      %69 = vector.extract_strided_slice %60 {offsets = [0, 0], sizes = [16, 1], strides = [1, 1]} : vector<32x1xf32> to vector<16x1xf32>
      %70 = vector.extract_strided_slice %68 {offsets = [0, 0], sizes = [16, 1], strides = [1, 1]} : vector<32x1xf32> to vector<16x1xf32>
      %71 = vector.shape_cast %28 : vector<1x128xi1> to vector<1x128xi1>
      %72 = vector.broadcast %71 : vector<1x128xi1> to vector<16x128xi1>
      %73 = vector.shape_cast %69 : vector<16x1xf32> to vector<16x1xf32>
      %74 = vector.broadcast %73 : vector<16x1xf32> to vector<16x128xf32>
      %75 = vector.shape_cast %70 : vector<16x1xf32> to vector<16x1xf32>
      %76 = vector.broadcast %75 : vector<16x1xf32> to vector<16x128xf32>
      %77 = arith.select %72, %74, %76 : vector<16x128xi1>, vector<16x128xf32>
      %78 = vector.extract_strided_slice %60 {offsets = [16, 0], sizes = [16, 1], strides = [1, 1]} : vector<32x1xf32> to vector<16x1xf32>
      %79 = vector.extract_strided_slice %68 {offsets = [16, 0], sizes = [16, 1], strides = [1, 1]} : vector<32x1xf32> to vector<16x1xf32>
      %80 = vector.shape_cast %28 : vector<1x128xi1> to vector<1x128xi1>
      %81 = vector.broadcast %80 : vector<1x128xi1> to vector<16x128xi1>
      %82 = vector.shape_cast %78 : vector<16x1xf32> to vector<16x1xf32>
      %83 = vector.broadcast %82 : vector<16x1xf32> to vector<16x128xf32>
      %84 = vector.shape_cast %79 : vector<16x1xf32> to vector<16x1xf32>
      %85 = vector.broadcast %84 : vector<16x1xf32> to vector<16x128xf32>
      %86 = arith.select %81, %83, %85 : vector<16x128xi1>, vector<16x128xf32>
      %87 = vector.broadcast %52 : vector<1x128xf32> to vector<16x128xf32>
      %88 = arith.mulf %87, %20 : vector<16x128xf32>
      %89 = math.exp %88 : vector<16x128xf32>
      %90 = arith.mulf %89, %arg11 : vector<16x128xf32>
      %91 = arith.mulf %52, %40 : vector<1x128xf32>
      %92 = vector.broadcast %91 : vector<1x128xf32> to vector<16x128xf32>
      %93 = arith.mulf %77, %92 : vector<16x128xf32>
      %94 = arith.addf %90, %93 : vector<16x128xf32>
      %95 = arith.mulf %86, %94 : vector<16x128xf32>
      %cst_31 = arith.constant dense<0.000000e+00> : vector<128xf32>
      %96 = vector.multi_reduction <add>, %95, %cst_31 [0] : vector<16x128xf32> to vector<128xf32>
      %97 = vector.shape_cast %96 : vector<128xf32> to vector<1x128xf32>
      %98 = arith.mulf %21, %40 : vector<1x128xf32>
      %99 = arith.addf %97, %98 : vector<1x128xf32>
      %100 = arith.negf %47 : vector<1x128xf32>
      %101 = math.exp %100 : vector<1x128xf32>
      %cst_32 = arith.constant 1.000000e+00 : f32
      %102 = vector.broadcast %cst_32 : f32 to vector<1x128xf32>
      %103 = arith.addf %102, %101 : vector<1x128xf32>
      %104 = arith.divf %102, %103 : vector<1x128xf32>
      %105 = arith.mulf %47, %104 : vector<1x128xf32>
      %106 = arith.mulf %99, %105 : vector<1x128xf32>
      %c0_33 = arith.constant 0 : index
      %107 = arith.index_cast %arg10 : i32 to index
      %c0_34 = arith.constant 0 : index
      %108 = vector.load %arg8[%c0_33, %107, %c0_34] : memref<1x64x128xf32, #tpu.memory_space<vmem>>, vector<1x1x128xf32>
      %109 = vector.shape_cast %108 : vector<1x1x128xf32> to vector<1x128xf32>
      %110 = arith.select %28, %106, %109 : vector<1x128xi1>, vector<1x128xf32>
      %c0_35 = arith.constant 0 : index
      %111 = arith.index_cast %arg10 : i32 to index
      %c0_36 = arith.constant 0 : index
      %112 = vector.load %arg8[%c0_35, %111, %c0_36] : memref<1x64x128xf32, #tpu.memory_space<vmem>>, vector<1x1x128xf32>
      %113 = vector.shape_cast %112 : vector<1x1x128xf32> to vector<1x128xf32>
      %114 = vector.shape_cast %110 : vector<1x128xf32> to vector<1x1x128xf32>
      tpu.vector_store %arg8[%c0_35, %111, %c0_36], %114 {strides = array<i32>} : memref<1x64x128xf32, #tpu.memory_space<vmem>>, vector<1x1x128xf32>,
      %c0_37 = arith.constant 0 : index
      %115 = arith.index_cast %33 : i32 to index
      %c0_38 = arith.constant 0 : index
      %116 = vector.load %arg8[%c0_37, %115, %c0_38] : memref<1x64x128xf32, #tpu.memory_space<vmem>>, vector<1x1x128xf32>
      %117 = vector.shape_cast %116 : vector<1x1x128xf32> to vector<1x128xf32>
      %118 = arith.select %28, %117, %106 : vector<1x128xi1>, vector<1x128xf32>
      %c0_39 = arith.constant 0 : index
      %119 = arith.index_cast %33 : i32 to index
      %c0_40 = arith.constant 0 : index
      %120 = vector.load %arg8[%c0_39, %119, %c0_40] : memref<1x64x128xf32, #tpu.memory_space<vmem>>, vector<1x1x128xf32>
      %121 = vector.shape_cast %120 : vector<1x1x128xf32> to vector<1x128xf32>
      %122 = vector.shape_cast %118 : vector<1x128xf32> to vector<1x1x128xf32>
      tpu.vector_store %arg8[%c0_39, %119, %c0_40], %122 {strides = array<i32>} : memref<1x64x128xf32, #tpu.memory_space<vmem>>, vector<1x1x128xf32>,
      scf.yield %94 : vector<16x128xf32>
    }
    %c64_i32_16 = arith.constant 64 : i32
    return
  }
  func.func @transform_0(%arg0: i32) -> (i32, i32, i32) {
    %c0_i32 = arith.constant 0 : i32
    %c0_i32_0 = arith.constant 0 : i32
    %c0_i32_1 = arith.constant 0 : i32
    return %arg0, %c0_i32, %c0_i32_0 : i32, i32, i32
  }
  func.func @transform_1(%arg0: i32) -> (i32, i32, i32) {
    %c0_i32 = arith.constant 0 : i32
    %c1_i32 = arith.constant 1 : i32
    %c0_i32_0 = arith.constant 0 : i32
    return %arg0, %c0_i32, %c1_i32 : i32, i32, i32
  }
  func.func @transform_2(%arg0: i32) -> (i32, i32, i32) {
    %c0_i32 = arith.constant 0 : i32
    %c0_i32_0 = arith.constant 0 : i32
    %c0_i32_1 = arith.constant 0 : i32
    return %arg0, %c0_i32, %c0_i32_0 : i32, i32, i32
  }
  func.func @transform_3(%arg0: i32) -> (i32, i32, i32) {
    %c0_i32 = arith.constant 0 : i32
    %c0_i32_0 = arith.constant 0 : i32
    %c0_i32_1 = arith.constant 0 : i32
    return %arg0, %c0_i32, %c0_i32_0 : i32, i32, i32
  }
  func.func @transform_4(%arg0: i32) -> (i32, i32) {
    %c0_i32 = arith.constant 0 : i32
    %c0_i32_0 = arith.constant 0 : i32
    %c0_i32_1 = arith.constant 0 : i32
    return %c0_i32, %c0_i32_0 : i32, i32
  }
  func.func @transform_5(%arg0: i32) -> (i32, i32) {
    %c0_i32 = arith.constant 0 : i32
    %c0_i32_0 = arith.constant 0 : i32
    %c0_i32_1 = arith.constant 0 : i32
    return %c0_i32, %c0_i32_0 : i32, i32
  }
  func.func @transform_6(%arg0: i32) -> (i32, i32) {
    %c0_i32 = arith.constant 0 : i32
    %c0_i32_0 = arith.constant 0 : i32
    %c0_i32_1 = arith.constant 0 : i32
    return %c0_i32, %c0_i32_0 : i32, i32
  }
  func.func @transform_7(%arg0: i32) -> (i32, i32, i32) {
    %c0_i32 = arith.constant 0 : i32
    %c0_i32_0 = arith.constant 0 : i32
    %c0_i32_1 = arith.constant 0 : i32
    return %arg0, %c0_i32, %c0_i32_0 : i32, i32, i32
  }
}

</mosaic_0001>

<bundles_post_ra>
// kernel: _lambda_.13
= control target key start
LH: loop header
LB: loop body
LE: loop exit
PB: predicated region body
PF: predicated region fallthrough
CT: control target
= control target key end

     0   :  { %s617_s18 = smov 0   ;;  %s764_s0 = inlined_call_operand.vmem [shape: f32[2,64,32], index: 0, kind: input, shape index: {}]   ;;  %s765_s1 = inlined_call_operand.vmem [shape: f32[2,64,32], index: 1, kind: input, shape index: {}]   ;;  %s766_s2 = inlined_call_operand.vmem [shape: f32[1,32], index: 2, kind: input, shape index: {}]   ;;  %s767_s3 = inlined_call_operand.vmem [shape: f32[1,32], index: 3, kind: input, shape index: {}]   ;;  %s768_s4 = inlined_call_operand.vmem [shape: f32[2,64,32], index: 4, kind: output, shape index: {0}]   ;;  %s769_s5 = inlined_call_operand.vmem [shape: f32[2,64,32], index: 5, kind: output, shape index: {1}]  }
   0x1 LB: > { %s534_s19 = sadd.s32 4294967295, %s585_s18   ;;  %p538_p0 = scmp.ge.s32.totalorder %s585_s18, 1  ;;  %s585_s18 = sphi %s617_s18, %s16_s18  }
   0x2   : > { %p200_p1 = scmp.lt.s32.totalorder %s585_s18, 3 }
   0x4   : > { %p201_p2 = pnand %p538_p0, %p200_p1 }
   0x5   : > { %p238_p3 = scmp.lt.s32.totalorder (!%p201_p2), %s534_s19, 1 }
   0x6   : > { %204 = sbr.rel (%p201_p2) target bundleno = 343 (0x157), region = 36 }
   0xb   : > { %s771_s19 = smov (!%p238_p3, %s534_s19), 1  ;;  %vm282_vm0 = vcmask 261120  }
   0xc   : > { %s625_s20 = sshll.u32 %s771_s19, 6 }
   0xd   : > { %s631_s23 = scalar_lea.vmem %s764_s0, %s625_s20  ;;  %s637_s26 = scalar_lea.vmem %s765_s1, %s625_s20 }
   0xe   : > { %s643_s29 = scalar_lea.vmem %s769_s5, %s625_s20  ;;  %v258_v0 = vld [vmem:[%s631_s23] sm:$0xff]  ;;  %v260_v2 = vld [vmem:[%s631_s23 + $0x10] sm:$0xff]  ;;  %v259_v5 = vld [vmem:[%s631_s23 + $0x8] sm:$0xff]  ;;  %s736_s11 = scalar_lea.vmem %s768_s4, %s625_s20 }
   0xf   : > { %v266_v1 = vld [vmem:[%s637_s26] sm:$0xff]  ;;  %v268_v4 = vld [vmem:[%s637_s26 + $0x10] sm:$0xff]  ;;  %v267_v6 = vld [vmem:[%s637_s26 + $0x8] sm:$0xff] }
  0x10   : > { %v274_v3 = vadd.f32 %v266_v1, %v258_v0  ;;  %v276_v7 = vadd.f32 %v268_v4, %v260_v2  ;;  %v275_v8 = vadd.f32 %v267_v6, %v259_v5  ;;  %v261_v9 = vld [vmem:[%s631_s23 + $0x18] sm:$0xff]  ;;  %v262_v11 = vld [vmem:[%s631_s23 + $0x20] sm:$0xff]  ;;  %v263_v15 = vld [vmem:[%s631_s23 + $0x28] sm:$0xff] }
  0x11   : > { %v269_v10 = vld [vmem:[%s637_s26 + $0x18] sm:$0xff]  ;;  %v270_v14 = vld [vmem:[%s637_s26 + $0x20] sm:$0xff]  ;;  %v271_v16 = vld [vmem:[%s637_s26 + $0x28] sm:$0xff] }
  0x12   : > { %v283_v12 = vsel %vm282_vm0, %v274_v3, 0.0  ;;  %426 = vst.msk [vmem:[%s643_s29] sm:$0xff] %vm282_vm0, %v274_v3  ;;  %v277_v13 = vadd.f32 %v269_v10, %v261_v9  ;;  %v289_v17 = vsel %vm282_vm0, %v276_v7, 0.0  ;;  %428 = vst.msk [vmem:[%s643_s29 + $0x10] sm:$0xff] %vm282_vm0, %v276_v7  ;;  %v278_v18 = vadd.f32 %v270_v14, %v262_v11  ;;  %v264_v20 = vld [vmem:[%s631_s23 + $0x30] sm:$0xff]  ;;  %v265_v22 = vld [vmem:[%s631_s23 + $0x38] sm:$0xff] }
  0x13   : > { %284 = vadd.xlane.f32.xlu0 %v283_v12  ;;  %427 = vst.msk [vmem:[%s643_s29 + $0x8] sm:$0xff] %vm282_vm0, %v275_v8  ;;  %v279_v19 = vadd.f32 %v271_v16, %v263_v15  ;;  %v272_v21 = vld [vmem:[%s637_s26 + $0x30] sm:$0xff]  ;;  %290 = vadd.xlane.f32.xlu1 %v289_v17  ;;  %v286_v23 = vsel %vm282_vm0, %v275_v8, 0.0  ;;  %v273_v25 = vld [vmem:[%s637_s26 + $0x38] sm:$0xff] }
  0x14   : > { %429 = vst.msk [vmem:[%s643_s29 + $0x18] sm:$0xff] %vm282_vm0, %v277_v13  ;;  %v280_v24 = vadd.f32 %v272_v21, %v264_v20  ;;  %v292_v26 = vsel %vm282_vm0, %v277_v13, 0.0  ;;  %430 = vst.msk [vmem:[%s643_s29 + $0x20] sm:$0xff] %vm282_vm0, %v278_v18  ;;  %v281_v27 = vadd.f32 %v273_v25, %v265_v22  ;;  %v295_v28 = vsel %vm282_vm0, %v278_v18, 0.0 }
  0x15   : > { %431 = vst.msk [vmem:[%s643_s29 + $0x28] sm:$0xff] %vm282_vm0, %v279_v19  ;;  %v298_v29 = vsel %vm282_vm0, %v279_v19, 0.0 }
  0x16   : > { %432 = vst.msk [vmem:[%s643_s29 + $0x30] sm:$0xff] %vm282_vm0, %v280_v24  ;;  %433 = vst.msk [vmem:[%s643_s29 + $0x38] sm:$0xff] %vm282_vm0, %v281_v27  ;;  %v301_v30 = vsel %vm282_vm0, %v280_v24, 0.0  ;;  %v304_v31 = vsel %vm282_vm0, %v281_v27, 0.0 }
  0x17   : > { %287 = vadd.xlane.f32.xlu0 %v286_v23  ;;  %293 = vadd.xlane.f32.xlu1 %v292_v26 }
  0x1b   : > { %296 = vadd.xlane.f32.xlu0 %v295_v28  ;;  %299 = vadd.xlane.f32.xlu1 %v298_v29 }
  0x1f   : > { %302 = vadd.xlane.f32.xlu0 %v301_v30  ;;  %305 = vadd.xlane.f32.xlu1 %v304_v31 }
  0x9c   : > { %v285_v32 = vpop.xlane.xlu0 %284  ;;  %v291_v34 = vpop.xlane.xlu1 %290 }
  0x9d   : > { %v308_v33 = vmul.f32 0.03125, %v285_v32  ;;  %v310_v35 = vmul.f32 0.03125, %v291_v34  ;;  %v547_v32 = vld [vmem:[%s766_s2] ss:$0 sm:$0xff] }
  0x9f   : > { %v685_v36 = vsub.f32 %v274_v3, %v308_v33  ;;  %v687_v37 = vsub.f32 %v276_v7, %v310_v35  ;;  %v548_v35 = vld [vmem:[%s767_s3] ss:$0 sm:$0xff] }
  0xa0   : > { %v288_v38 = vpop.xlane.xlu0 %287  ;;  %v294_v40 = vpop.xlane.xlu1 %293 }
  0xa1   : > { %v309_v39 = vmul.f32 0.03125, %v288_v38  ;;  %v324_v41 = vmul.f32 %v685_v36, %v685_v36  ;;  %v311_v42 = vmul.f32 0.03125, %v294_v40  ;;  %v326_v43 = vmul.f32 %v687_v37, %v687_v37 }
  0xa3   : > { %v693_v44 = vsub.f32 %v275_v8, %v309_v39  ;;  %v332_v45 = vsel %vm282_vm0, %v324_v41, 0.0  ;;  %v696_v46 = vsub.f32 %v277_v13, %v311_v42  ;;  %v338_v50 = vsel %vm282_vm0, %v326_v43, 0.0 }
  0xa4   : > { %333 = vadd.xlane.f32.xlu0 %v332_v45  ;;  %v297_v47 = vpop.xlane.xlu0 %296  ;;  %v300_v49 = vpop.xlane.xlu1 %299 }
  0xa5   : > { %v312_v48 = vmul.f32 0.03125, %v297_v47  ;;  %v325_v51 = vmul.f32 %v693_v44, %v693_v44  ;;  %v313_v52 = vmul.f32 0.03125, %v300_v49  ;;  %v327_v53 = vmul.f32 %v696_v46, %v696_v46 }
  0xa7   : > { %v703_v54 = vsub.f32 %v278_v18, %v312_v48  ;;  %v335_v55 = vsel %vm282_vm0, %v325_v51, 0.0  ;;  %v706_v56 = vsub.f32 %v279_v19, %v313_v52  ;;  %v341_v60 = vsel %vm282_vm0, %v327_v53, 0.0 }
  0xa8   : > { %339 = vadd.xlane.f32.xlu0 %v338_v50  ;;  %336 = vadd.xlane.f32.xlu1 %v335_v55  ;;  %v303_v57 = vpop.xlane.xlu0 %302  ;;  %v306_v59 = vpop.xlane.xlu1 %305 }
  0xa9   : > { %v314_v58 = vmul.f32 0.03125, %v303_v57  ;;  %v328_v61 = vmul.f32 %v703_v54, %v703_v54  ;;  %v315_v62 = vmul.f32 0.03125, %v306_v59  ;;  %v329_v63 = vmul.f32 %v706_v56, %v706_v56 }
  0xab   : > { %v713_v0 = vsub.f32 %v280_v24, %v314_v58  ;;  %v344_v1 = vsel %vm282_vm0, %v328_v61, 0.0  ;;  %v716_v2 = vsub.f32 %v281_v27, %v315_v62  ;;  %v347_v3 = vsel %vm282_vm0, %v329_v63, 0.0 }
  0xac   : > { %342 = vadd.xlane.f32.xlu1 %v341_v60  ;;  %345 = vadd.xlane.f32.xlu0 %v344_v1 }
  0xad   : > { %v330_v4 = vmul.f32 %v713_v0, %v713_v0  ;;  %v331_v5 = vmul.f32 %v716_v2, %v716_v2 }
  0xaf   : > { %v350_v6 = vsel %vm282_vm0, %v330_v4, 0.0  ;;  %v353_v7 = vsel %vm282_vm0, %v331_v5, 0.0 }
  0xb0   : > { %348 = vadd.xlane.f32.xlu1 %v347_v3  ;;  %351 = vadd.xlane.f32.xlu0 %v350_v6 }
  0xb4   : > { %354 = vadd.xlane.f32.xlu1 %v353_v7 }
 0x12d   : > { %v334_v8 = vpop.xlane.xlu0 %333 }
 0x12e   : > { %v356_v9 = vmul.f32 0.03125, %v334_v8 }
 0x130   : > { %v364_v10 = vadd.f32 1e-05, %v356_v9 }
 0x131   : > { %v337_v11 = vpop.xlane.xlu1 %336  ;;  %v340_v12 = vpop.xlane.xlu0 %339 }
 0x132   : > { %563 = vrsqrt.f32 %v364_v10  ;;  %v357_v13 = vmul.f32 0.03125, %v337_v11  ;;  %v358_v14 = vmul.f32 0.03125, %v340_v12 }
 0x134   : > { %v365_v15 = vadd.f32 1e-05, %v357_v13  ;;  %v366_v16 = vadd.f32 1e-05, %v358_v14 }
 0x135   : > { %v343_v17 = vpop.xlane.xlu1 %342  ;;  %v346_v18 = vpop.xlane.xlu0 %345 }
 0x136   : > { %565 = vrsqrt.f32 %v365_v15  ;;  %v359_v19 = vmul.f32 0.03125, %v343_v17  ;;  %v360_v20 = vmul.f32 0.03125, %v346_v18 }
 0x137   : > { %567 = vrsqrt.f32 %v366_v16 }
 0x138   : > { %v367_v21 = vadd.f32 1e-05, %v359_v19  ;;  %v368_v22 = vadd.f32 1e-05, %v360_v20 }
 0x139   : > { %v349_v23 = vpop.xlane.xlu1 %348  ;;  %v352_v24 = vpop.xlane.xlu0 %351 }
 0x13a   : > { %569 = vrsqrt.f32 %v367_v21  ;;  %v361_v25 = vmul.f32 0.03125, %v349_v23  ;;  %v362_v26 = vmul.f32 0.03125, %v352_v24 }
 0x13b   : > { %571 = vrsqrt.f32 %v368_v22 }
 0x13c   : > { %v369_v27 = vadd.f32 1e-05, %v361_v25  ;;  %v370_v28 = vadd.f32 1e-05, %v362_v26 }
 0x13d   : > { %v355_v29 = vpop.xlane.xlu1 %354 }
 0x13e   : > { %573 = vrsqrt.f32 %v369_v27  ;;  %v363_v30 = vmul.f32 0.03125, %v355_v29 }
 0x13f   : > { %v564_v31 = vpop.eup %563  ;;  %575 = vrsqrt.f32 %v370_v28 }
 0x140   : > { %v380_v33 = vmul.f32 %v564_v31, %v685_v36  ;;  %v371_v34 = vadd.f32 1e-05, %v363_v30 }
 0x142   : > { %v395_v38 = vmul.f32 %v547_v32, %v380_v33  ;;  %577 = vrsqrt.f32 %v371_v34 }
 0x143   : > { %v566_v39 = vpop.eup %565 }
 0x144   : > { %v568_v40 = vpop.eup %567  ;;  %v410_v41 = vadd.f32 %v548_v35, %v395_v38  ;;  %v381_v36 = vmul.f32 %v566_v39, %v693_v44 }
 0x145   : > { %v382_v42 = vmul.f32 %v568_v40, %v687_v37 }
 0x146   : > { %418 = vst.msk [vmem:[%s736_s11] sm:$0xff] %vm282_vm0, %v410_v41  ;;  %v396_v43 = vmul.f32 %v547_v32, %v381_v36 }
 0x147   : > { %v570_v45 = vpop.eup %569  ;;  %v397_v47 = vmul.f32 %v547_v32, %v382_v42 }
 0x148   : > { %v572_v48 = vpop.eup %571  ;;  %v411_v49 = vadd.f32 %v548_v35, %v396_v43  ;;  %v383_v50 = vmul.f32 %v570_v45, %v696_v46 }
 0x149   : > { %v412_v51 = vadd.f32 %v548_v35, %v397_v47  ;;  %v384_v52 = vmul.f32 %v572_v48, %v703_v54 }
 0x14a   : > { %419 = vst.msk [vmem:[%s736_s11 + $0x8] sm:$0xff] %vm282_vm0, %v411_v49  ;;  %v398_v53 = vmul.f32 %v547_v32, %v383_v50 }
 0x14b   : > { %v574_v44 = vpop.eup %573  ;;  %420 = vst.msk [vmem:[%s736_s11 + $0x10] sm:$0xff] %vm282_vm0, %v412_v51  ;;  %v399_v37 = vmul.f32 %v547_v32, %v384_v52 }
 0x14c   : > { %v576_v55 = vpop.eup %575  ;;  %v413_v57 = vadd.f32 %v548_v35, %v398_v53  ;;  %v385_v58 = vmul.f32 %v574_v44, %v706_v56 }
 0x14d   : > { %v414_v59 = vadd.f32 %v548_v35, %v399_v37  ;;  %v386_v46 = vmul.f32 %v576_v55, %v713_v0 }
 0x14e   : > { %421 = vst.msk [vmem:[%s736_s11 + $0x18] sm:$0xff] %vm282_vm0, %v413_v57  ;;  %v400_v54 = vmul.f32 %v547_v32, %v385_v58 }
 0x14f   : > { %v578_v60 = vpop.eup %577  ;;  %422 = vst.msk [vmem:[%s736_s11 + $0x20] sm:$0xff] %vm282_vm0, %v414_v59  ;;  %v401_v61 = vmul.f32 %v547_v32, %v386_v46 }
 0x150   : > { %v415_v62 = vadd.f32 %v548_v35, %v400_v54  ;;  %v387_v63 = vmul.f32 %v578_v60, %v716_v2 }
 0x151   : > { %v416_v1 = vadd.f32 %v548_v35, %v401_v61 }
 0x152   : > { %423 = vst.msk [vmem:[%s736_s11 + $0x28] sm:$0xff] %vm282_vm0, %v415_v62  ;;  %v402_v3 = vmul.f32 %v547_v32, %v387_v63 }
 0x153   : > { %424 = vst.msk [vmem:[%s736_s11 + $0x30] sm:$0xff] %vm282_vm0, %v416_v1 }
 0x154   : > { %v417_v56 = vadd.f32 %v548_v35, %v402_v3 }
 0x156   : > { %425 = vst.msk [vmem:[%s736_s11 + $0x38] sm:$0xff] %vm282_vm0, %v417_v56 }
 0x157 PF: > { %s16_s18 = sadd.s32 1, %s585_s18  }
 0x158   : > { %p13_p4 = scmp.ge.s32.totalorder %s16_s18, 4  }
 0x15a   :  { %15 = sbr.rel (!%p13_p4) target bundleno = 1 (0x1), region = 81 }

// kernel: _lambda_.14
= control target key start
LH: loop header
LB: loop body
LE: loop exit
PB: predicated region body
PF: predicated region fallthrough
CT: control target
= control target key end

     0   :  { %v519_v1 = vmov 0   ;;  %vm163_vm0 = vcmask 261120   ;;  %v402_v13 = vlaneseq  ;;  %s719_s1 = inlined_call_operand.vmem [shape: bf16[32,256], index: 1, kind: input, shape index: {}]   ;;  %s720_s0 = inlined_call_operand.vmem [shape: bf16[128,32], index: 0, kind: input, shape index: {}]   ;;  %s721_s2 = inlined_call_operand.vmem [shape: f32[1,256], index: 2, kind: input, shape index: {}]   ;;  %s722_s3 = inlined_call_operand.vmem [shape: f32[128,256], index: 3, kind: output, shape index: {}]  }
   0x1   :  { %v505_v0 = vld [vmem:[%s719_s1 + $0x14] ss:$8 sps:$4 sm:$0xff]   ;;  %220 = vmatprep.mubr.bf16.mxu0 %v519_v1  ;;  %260 = vmatprep.mubr.bf16.mxu1 %v519_v1  ;;  %v507_v2 = vld [vmem:[%s719_s1 + $0x10] ss:$8 sps:$4 sm:$0xff]   ;;  %v508_v3 = vld [vmem:[%s719_s1 + $0x4] ss:$8 sps:$4 sm:$0xff]  }
   0x2   :  { %200 = vmatprep.subr.bf16.mxu0 %v505_v0  ;;  %500 = vmatprep.subr.bf16.mxu1 %v505_v0  ;;  %v510_v4 = vld [vmem:[%s719_s1] ss:$8 sps:$4 sm:$0xff]   ;;  %v515_v9 = vld [vmem:[%s720_s0 + $0x10] sm:$0xff]   ;;  %v517_v11 = vld [vmem:[%s720_s0 + $0x18] sm:$0xff]   ;;  %v403_v14 = vshrl.u32 %v402_v13, 7 }
   0x3   :  { %201 = vmatpush1.bf16.msra.mxu0 %v507_v2  ;;  %502 = vmatpush1.bf16.msra.mxu1 %v507_v2  ;;  %v511_v5 = vld [vmem:[%s720_s0] sm:$0xff]   ;;  %v513_v7 = vld [vmem:[%s720_s0 + $0x8] sm:$0xff]   ;;  %v516_v10 = vld [vmem:[%s720_s0 + $0x30] sm:$0xff]  }
   0x4   :  { %202 = vmatprep.subr.bf16.mxu0 %v508_v3  ;;  %501 = vmatprep.subr.bf16.mxu1 %v508_v3  ;;  %v512_v6 = vld [vmem:[%s720_s0 + $0x20] sm:$0xff]   ;;  %v514_v8 = vld [vmem:[%s720_s0 + $0x28] sm:$0xff]   ;;  %v518_v12 = vld [vmem:[%s720_s0 + $0x38] sm:$0xff]   ;;  %v404_v15 = vsub.s32 0, %v403_v14  ;;  %v408_v17 = vsub.s32 1, %v403_v14 }
   0x5   :  { %v400_v16 = vld [vmem:[%s721_s2] sm:$0x3] }
   0x6   :  { %v587_v18 = vrot.slane %v400_v16, %v404_v15  ;;  %v589_v19 = vrot.slane %v400_v16, %v408_v17 }
   0x7   :  { %203 = vmatpush1.bf16.msra.mxu0 %v510_v4  ;;  %503 = vmatpush1.bf16.msra.mxu1 %v510_v4 }
   0xa   :  { %492 = vmatmul.mubr.msk.bf16.vlgmr.msra.gmra.mxu0 %vm163_vm0, %v511_v5  ;;  %496 = vmatmul.mubr.msk.bf16.vlgmr.msra.gmra.mxu1 %vm163_vm0, %v512_v6 }
   0xb   :  { %230 = vmatprep.mubr.bf16.mxu0 %v519_v1  ;;  %270 = vmatprep.mubr.bf16.mxu1 %v519_v1 }
  0x12   :  { %493 = vmatmul.mubr.msk.bf16.gmra.mxu0 %vm163_vm0, %v513_v7  ;;  %497 = vmatmul.mubr.msk.bf16.gmra.mxu1 %vm163_vm0, %v514_v8 }
  0x13   :  { %240 = vmatprep.mubr.bf16.mxu0 %v519_v1  ;;  %280 = vmatprep.mubr.bf16.mxu1 %v519_v1 }
  0x1a   :  { %494 = vmatmul.mubr.msk.bf16.gmra.mxu0 %vm163_vm0, %v515_v9  ;;  %498 = vmatmul.mubr.msk.bf16.gmra.mxu1 %vm163_vm0, %v516_v10 }
  0x1b   :  { %250 = vmatprep.mubr.bf16.mxu0 %v519_v1  ;;  %290 = vmatprep.mubr.bf16.mxu1 %v519_v1 }
  0x22   :  { %495 = vmatmul.mubr.msk.bf16.gmra.mxu0 %vm163_vm0, %v517_v11  ;;  %499 = vmatmul.mubr.msk.bf16.gmra.mxu1 %vm163_vm0, %v518_v12 }
  0xca   :  { %v222_v20 = vpop.f32.mrf.mxu0  ;;  %v262_v21 = vpop.f32.mrf.mxu1 }
  0xcb   :  { %v412_v22 = vadd.f32 %v587_v18, %v222_v20  ;;  %v428_v23 = vadd.f32 %v587_v18, %v262_v21 }
  0xcc   :  { %v224_v24 = vpop.f32.mrf.mxu0  ;;  %v264_v25 = vpop.f32.mrf.mxu1 }
  0xcd   :  { %444 = vst [vmem:[%s722_s3] sm:$0xff] %v412_v22  ;;  %460 = vst [vmem:[%s722_s3 + $0x80] sm:$0xff] %v428_v23  ;;  %v413_v26 = vadd.f32 %v589_v19, %v224_v24  ;;  %v429_v27 = vadd.f32 %v589_v19, %v264_v25 }
  0xce   :  { %v226_v28 = vpop.f32.mrf.mxu0  ;;  %v266_v29 = vpop.f32.mrf.mxu1 }
  0xcf   :  { %445 = vst [vmem:[%s722_s3 + $0x8] sm:$0xff] %v413_v26  ;;  %461 = vst [vmem:[%s722_s3 + $0x88] sm:$0xff] %v429_v27  ;;  %v414_v30 = vadd.f32 %v587_v18, %v226_v28  ;;  %v430_v31 = vadd.f32 %v587_v18, %v266_v29 }
  0xd0   :  { %v228_v32 = vpop.f32.mrf.mxu0  ;;  %v268_v33 = vpop.f32.mrf.mxu1 }
  0xd1   :  { %446 = vst [vmem:[%s722_s3 + $0x10] sm:$0xff] %v414_v30  ;;  %462 = vst [vmem:[%s722_s3 + $0x90] sm:$0xff] %v430_v31  ;;  %v415_v34 = vadd.f32 %v589_v19, %v228_v32  ;;  %v431_v35 = vadd.f32 %v589_v19, %v268_v33 }
  0xd2   :  { %v232_v36 = vpop.f32.mrf.mxu0  ;;  %v272_v37 = vpop.f32.mrf.mxu1 }
  0xd3   :  { %447 = vst [vmem:[%s722_s3 + $0x18] sm:$0xff] %v415_v34  ;;  %463 = vst [vmem:[%s722_s3 + $0x98] sm:$0xff] %v431_v35  ;;  %v416_v38 = vadd.f32 %v587_v18, %v232_v36  ;;  %v432_v39 = vadd.f32 %v587_v18, %v272_v37 }
  0xd4   :  { %v234_v40 = vpop.f32.mrf.mxu0  ;;  %v274_v41 = vpop.f32.mrf.mxu1 }
  0xd5   :  { %448 = vst [vmem:[%s722_s3 + $0x20] sm:$0xff] %v416_v38  ;;  %464 = vst [vmem:[%s722_s3 + $0xa0] sm:$0xff] %v432_v39  ;;  %v417_v42 = vadd.f32 %v589_v19, %v234_v40  ;;  %v433_v43 = vadd.f32 %v589_v19, %v274_v41 }
  0xd6   :  { %v236_v44 = vpop.f32.mrf.mxu0  ;;  %v276_v45 = vpop.f32.mrf.mxu1 }
  0xd7   :  { %449 = vst [vmem:[%s722_s3 + $0x28] sm:$0xff] %v417_v42  ;;  %465 = vst [vmem:[%s722_s3 + $0xa8] sm:$0xff] %v433_v43  ;;  %v418_v46 = vadd.f32 %v587_v18, %v236_v44  ;;  %v434_v47 = vadd.f32 %v587_v18, %v276_v45 }
  0xd8   :  { %v238_v48 = vpop.f32.mrf.mxu0  ;;  %v278_v49 = vpop.f32.mrf.mxu1 }
  0xd9   :  { %450 = vst [vmem:[%s722_s3 + $0x30] sm:$0xff] %v418_v46  ;;  %466 = vst [vmem:[%s722_s3 + $0xb0] sm:$0xff] %v434_v47  ;;  %v419_v50 = vadd.f32 %v589_v19, %v238_v48  ;;  %v435_v51 = vadd.f32 %v589_v19, %v278_v49 }
  0xda   :  { %v242_v52 = vpop.f32.mrf.mxu0  ;;  %v282_v53 = vpop.f32.mrf.mxu1 }
  0xdb   :  { %451 = vst [vmem:[%s722_s3 + $0x38] sm:$0xff] %v419_v50  ;;  %467 = vst [vmem:[%s722_s3 + $0xb8] sm:$0xff] %v435_v51  ;;  %v420_v54 = vadd.f32 %v587_v18, %v242_v52  ;;  %v436_v55 = vadd.f32 %v587_v18, %v282_v53 }
  0xdc   :  { %v244_v56 = vpop.f32.mrf.mxu0  ;;  %v284_v57 = vpop.f32.mrf.mxu1 }
  0xdd   :  { %452 = vst [vmem:[%s722_s3 + $0x40] sm:$0xff] %v420_v54  ;;  %468 = vst [vmem:[%s722_s3 + $0xc0] sm:$0xff] %v436_v55  ;;  %v421_v58 = vadd.f32 %v589_v19, %v244_v56  ;;  %v437_v59 = vadd.f32 %v589_v19, %v284_v57 }
  0xde   :  { %v246_v60 = vpop.f32.mrf.mxu0  ;;  %v286_v61 = vpop.f32.mrf.mxu1 }
  0xdf   :  { %453 = vst [vmem:[%s722_s3 + $0x48] sm:$0xff] %v421_v58  ;;  %469 = vst [vmem:[%s722_s3 + $0xc8] sm:$0xff] %v437_v59  ;;  %v422_v62 = vadd.f32 %v587_v18, %v246_v60  ;;  %v438_v63 = vadd.f32 %v587_v18, %v286_v61 }
  0xe0   :  { %v248_v0 = vpop.f32.mrf.mxu0  ;;  %v288_v1 = vpop.f32.mrf.mxu1 }
  0xe1   :  { %454 = vst [vmem:[%s722_s3 + $0x50] sm:$0xff] %v422_v62  ;;  %470 = vst [vmem:[%s722_s3 + $0xd0] sm:$0xff] %v438_v63  ;;  %v423_v2 = vadd.f32 %v589_v19, %v248_v0  ;;  %v439_v3 = vadd.f32 %v589_v19, %v288_v1 }
  0xe2   :  { %v252_v4 = vpop.f32.mrf.mxu0  ;;  %v292_v5 = vpop.f32.mrf.mxu1 }
  0xe3   :  { %455 = vst [vmem:[%s722_s3 + $0x58] sm:$0xff] %v423_v2  ;;  %471 = vst [vmem:[%s722_s3 + $0xd8] sm:$0xff] %v439_v3  ;;  %v424_v6 = vadd.f32 %v587_v18, %v252_v4  ;;  %v440_v7 = vadd.f32 %v587_v18, %v292_v5 }
  0xe4   :  { %v254_v8 = vpop.f32.mrf.mxu0  ;;  %v294_v9 = vpop.f32.mrf.mxu1 }
  0xe5   :  { %456 = vst [vmem:[%s722_s3 + $0x60] sm:$0xff] %v424_v6  ;;  %472 = vst [vmem:[%s722_s3 + $0xe0] sm:$0xff] %v440_v7  ;;  %v425_v10 = vadd.f32 %v589_v19, %v254_v8  ;;  %v441_v11 = vadd.f32 %v589_v19, %v294_v9 }
  0xe6   :  { %v256_v12 = vpop.f32.mrf.mxu0  ;;  %v296_v13 = vpop.f32.mrf.mxu1 }
  0xe7   :  { %457 = vst [vmem:[%s722_s3 + $0x68] sm:$0xff] %v425_v10  ;;  %473 = vst [vmem:[%s722_s3 + $0xe8] sm:$0xff] %v441_v11  ;;  %v426_v14 = vadd.f32 %v587_v18, %v256_v12  ;;  %v442_v15 = vadd.f32 %v587_v18, %v296_v13 }
  0xe8   :  { %v258_v16 = vpop.f32.mrf.mxu0  ;;  %v298_v17 = vpop.f32.mrf.mxu1 }
  0xe9   :  { %458 = vst [vmem:[%s722_s3 + $0x70] sm:$0xff] %v426_v14  ;;  %474 = vst [vmem:[%s722_s3 + $0xf0] sm:$0xff] %v442_v15  ;;  %v427_v20 = vadd.f32 %v589_v19, %v258_v16  ;;  %v443_v21 = vadd.f32 %v589_v19, %v298_v17 }
  0xeb   :  { %459 = vst [vmem:[%s722_s3 + $0x78] sm:$0xff] %v427_v20  ;;  %475 = vst [vmem:[%s722_s3 + $0xf8] sm:$0xff] %v443_v21 }

// kernel: _lambda_.15
= control target key start
LH: loop header
LB: loop body
LE: loop exit
PB: predicated region body
PF: predicated region fallthrough
CT: control target
= control target key end

     0   :  { %s766_s12 = smov 0   ;;  %s1000_s0 = inlined_call_operand.vmem [shape: f32[2,70,128], index: 0, kind: input, shape index: {}]   ;;  %s1001_s1 = inlined_call_operand.vmem [shape: f32[7,128], index: 1, kind: input, shape index: {}]   ;;  %s1002_s2 = inlined_call_operand.vmem [shape: f32[1,128], index: 2, kind: input, shape index: {}]   ;;  %s1003_s3 = inlined_call_operand.vmem [shape: f32[2,64,128], index: 3, kind: output, shape index: {}]  }
   0x1 LB: > { %s670_s13 = sadd.s32 4294967295, %s744_s12   ;;  %p674_p0 = scmp.ge.s32.totalorder %s744_s12, 1  ;;  %s744_s12 = sphi %s766_s12, %s13_s12  }
   0x2   : > { %p137_p1 = scmp.lt.s32.totalorder %s744_s12, 3 }
   0x4   : > { %p138_p2 = pnand %p674_p0, %p137_p1 }
   0x5   : > { %p161_p3 = scmp.lt.s32.totalorder (!%p138_p2), %s670_s13, 1 }
   0x6   : > { %141 = sbr.rel (%p138_p2) target bundleno = 120 (0x78), region = 32 }
   0xb   : > { %s1005_s13 = smov (!%p161_p3, %s670_s13), 1  ;;  %v780_v0 = vld [vmem:[%s1002_s2] ss:$0 sm:$0xff]  ;;  %v790_v2 = vld [vmem:[%s1001_s1 + $0x1] ss:$0 sm:$0xff]  ;;  %vm232_vm0 = vcmask 1046528  }
   0xc   : > { %s697_s14 = smul.u32 72, %s1005_s13  ;;  %v785_v1 = vld [vmem:[%s1001_s1] ss:$0 sm:$0xff]  ;;  %v795_v3 = vld [vmem:[%s1001_s1 + $0x2] ss:$0 sm:$0xff]  ;;  %vm289_vm1 = vcmask 1045504  }
   0xd   : > { %v805_v4 = vld [vmem:[%s1001_s1 + $0x3] ss:$0 sm:$0xff]  ;;  %v810_v5 = vld [vmem:[%s1001_s1 + $0x4] ss:$0 sm:$0xff]  ;;  %vm346_vm2 = vcmask 1044480   ;;  %vm403_vm3 = vcmask 1043456  }
   0xe   : > { %s800_s25 = scalar_lea.vmem %s1000_s0, %s697_s14  ;;  %vm460_vm4 = vcmask 1042432   ;;  %vm517_vm5 = vcmask 1041408   ;;  %v825_v16 = vld [vmem:[%s1001_s1 + $0x5] ss:$0 sm:$0xff]  ;;  %v832_v25 = vld [vmem:[%s1001_s1 + $0x6] ss:$0 sm:$0xff] }
   0xf   : > { %v171_v6 = vld [vmem:[%s800_s25] sm:$0xff]  ;;  %v172_v7 = vld [vmem:[%s800_s25 + $0x8] sm:$0xff]  ;;  %v173_v30 = vld [vmem:[%s800_s25 + $0x10] sm:$0xff]  ;;  %s696_s7 = sshll.u32 %s1005_s13, 6 }
  0x10   : > { %v193_v8 = vmul.f32 %v785_v1, %v171_v6  ;;  %v214_v9 = vmul.f32 %v790_v2, %v171_v6  ;;  %v215_v10 = vmul.f32 %v790_v2, %v172_v7  ;;  %v271_v11 = vmul.f32 %v795_v3, %v171_v6  ;;  %v174_v59 = vld [vmem:[%s800_s25 + $0x18] sm:$0xff]  ;;  %s954_s10 = scalar_lea.vmem %s1003_s3, %s696_s7 }
  0x11   : > { %v272_v12 = vmul.f32 %v795_v3, %v172_v7  ;;  %v328_v13 = vmul.f32 %v805_v4, %v171_v6  ;;  %v329_v14 = vmul.f32 %v805_v4, %v172_v7  ;;  %v385_v15 = vmul.f32 %v810_v5, %v171_v6 }
  0x12   : > { %v201_v17 = vadd.f32 %v780_v0, %v193_v8  ;;  %v233_v18 = vrot.slane %v214_v9, 1  ;;  %v234_v19 = vrot.slane %v215_v10, 1  ;;  %v290_v20 = vrot.slane %v271_v11, 2 }
  0x13   : > { %v291_v21 = vrot.slane %v272_v12, 2  ;;  %v347_v22 = vrot.slane %v328_v13, 3  ;;  %v348_v23 = vrot.slane %v329_v14, 3  ;;  %v386_v24 = vmul.f32 %v810_v5, %v172_v7 }
  0x14   : > { %v235_v26 = vsel %vm232_vm0, %v233_v18, %v234_v19  ;;  %v404_v27 = vrot.slane %v385_v15, 4  ;;  %v442_v28 = vmul.f32 %v825_v16, %v171_v6  ;;  %v443_v29 = vmul.f32 %v825_v16, %v172_v7 }
  0x15   : > { %v258_v31 = vadd.f32 %v235_v26, %v201_v17  ;;  %v292_v32 = vsel %vm289_vm1, %v290_v20, %v291_v21  ;;  %v349_v33 = vsel %vm346_vm2, %v347_v22, %v348_v23  ;;  %v405_v34 = vrot.slane %v386_v24, 4 }
  0x16   : > { %v461_v35 = vrot.slane %v442_v28, 5  ;;  %v462_v36 = vrot.slane %v443_v29, 5  ;;  %v499_v37 = vmul.f32 %v832_v25, %v171_v6  ;;  %v500_v38 = vmul.f32 %v832_v25, %v172_v7 }
  0x17   : > { %v315_v39 = vadd.f32 %v292_v32, %v258_v31  ;;  %v406_v40 = vsel %vm403_vm3, %v404_v27, %v405_v34  ;;  %v194_v41 = vmul.f32 %v785_v1, %v172_v7  ;;  %v216_v42 = vmul.f32 %v790_v2, %v173_v30  ;;  %v175_v32 = vld [vmem:[%s800_s25 + $0x20] sm:$0xff] }
  0x18   : > { %v463_v43 = vsel %vm460_vm4, %v461_v35, %v462_v36  ;;  %v518_v44 = vrot.slane %v499_v37, 6  ;;  %v519_v45 = vrot.slane %v500_v38, 6  ;;  %v273_v46 = vmul.f32 %v795_v3, %v173_v30 }
  0x19   : > { %v372_v47 = vadd.f32 %v349_v33, %v315_v39  ;;  %v202_v48 = vadd.f32 %v780_v0, %v194_v41  ;;  %v236_v49 = vrot.slane %v216_v42, 1  ;;  %v330_v50 = vmul.f32 %v805_v4, %v173_v30 }
  0x1a   : > { %v520_v51 = vsel %vm517_vm5, %v518_v44, %v519_v45  ;;  %v293_v52 = vrot.slane %v273_v46, 2  ;;  %v387_v53 = vmul.f32 %v810_v5, %v173_v30  ;;  %v444_v54 = vmul.f32 %v825_v16, %v173_v30 }
  0x1b   : > { %v429_v55 = vadd.f32 %v406_v40, %v372_v47  ;;  %v237_v56 = vsel %vm232_vm0, %v234_v19, %v236_v49  ;;  %v350_v57 = vrot.slane %v330_v50, 3  ;;  %v501_v58 = vmul.f32 %v832_v25, %v173_v30 }
  0x1c   : > { %v259_v60 = vadd.f32 %v237_v56, %v202_v48  ;;  %v294_v61 = vsel %vm289_vm1, %v291_v21, %v293_v52  ;;  %v407_v62 = vrot.slane %v387_v53, 4  ;;  %v464_v63 = vrot.slane %v444_v54, 5 }
  0x1d   : > { %v486_v6 = vadd.f32 %v463_v43, %v429_v55  ;;  %v351_v7 = vsel %vm346_vm2, %v348_v23, %v350_v57  ;;  %v521_v8 = vrot.slane %v501_v58, 6  ;;  %v195_v9 = vmul.f32 %v785_v1, %v173_v30 }
  0x1e   : > { %v316_v10 = vadd.f32 %v294_v61, %v259_v60  ;;  %v408_v11 = vsel %vm403_vm3, %v405_v34, %v407_v62  ;;  %v465_v12 = vsel %vm460_vm4, %v462_v36, %v464_v63  ;;  %v217_v13 = vmul.f32 %v790_v2, %v174_v59  ;;  %v176_v60 = vld [vmem:[%s800_s25 + $0x28] sm:$0xff] }
  0x1f   : > { %v861_v14 = vadd.f32 %v520_v51, %v486_v6  ;;  %v522_v15 = vsel %vm517_vm5, %v519_v45, %v521_v8  ;;  %v203_v17 = vadd.f32 %v780_v0, %v195_v9  ;;  %v274_v18 = vmul.f32 %v795_v3, %v174_v59 }
  0x20   : > { %v373_v19 = vadd.f32 %v351_v7, %v316_v10  ;;  %v238_v20 = vrot.slane %v217_v13, 1  ;;  %v331_v21 = vmul.f32 %v805_v4, %v174_v59  ;;  %v388_v22 = vmul.f32 %v810_v5, %v174_v59 }
  0x21   : > { %v686_v23 = vmul.f32 -1.442695, %v861_v14  ;;  %v295_v24 = vrot.slane %v274_v18, 2  ;;  %v445_v26 = vmul.f32 %v825_v16, %v174_v59  ;;  %v502_v27 = vmul.f32 %v832_v25, %v174_v59 }
  0x22   : > { %v430_v28 = vadd.f32 %v408_v11, %v373_v19  ;;  %v239_v29 = vsel %vm232_vm0, %v236_v49, %v238_v20  ;;  %v352_v30 = vrot.slane %v331_v21, 3  ;;  %v409_v31 = vrot.slane %v388_v22, 4 }
  0x23   : > { %706 = vpow2.f32 %v686_v23  ;;  %v260_v33 = vadd.f32 %v239_v29, %v203_v17  ;;  %v296_v34 = vsel %vm289_vm1, %v293_v52, %v295_v24  ;;  %v466_v35 = vrot.slane %v445_v26, 5 }
  0x24   : > { %v487_v36 = vadd.f32 %v465_v12, %v430_v28  ;;  %v353_v37 = vsel %vm346_vm2, %v350_v57, %v352_v30  ;;  %v410_v38 = vsel %vm403_vm3, %v407_v62, %v409_v31  ;;  %v523_v39 = vrot.slane %v502_v27, 6 }
  0x25   : > { %v317_v40 = vadd.f32 %v296_v34, %v260_v33  ;;  %v467_v41 = vsel %vm460_vm4, %v464_v63, %v466_v35  ;;  %v196_v42 = vmul.f32 %v785_v1, %v174_v59  ;;  %v218_v43 = vmul.f32 %v790_v2, %v175_v32  ;;  %v177_v34 = vld [vmem:[%s800_s25 + $0x30] sm:$0xff] }
  0x26   : > { %v879_v44 = vadd.f32 %v522_v15, %v487_v36  ;;  %v524_v45 = vsel %vm517_vm5, %v521_v8, %v523_v39  ;;  %v275_v46 = vmul.f32 %v795_v3, %v175_v32  ;;  %v332_v47 = vmul.f32 %v805_v4, %v175_v32 }
  0x27   : > { %v374_v48 = vadd.f32 %v353_v37, %v317_v40  ;;  %v204_v49 = vadd.f32 %v780_v0, %v196_v42  ;;  %v240_v50 = vrot.slane %v218_v43, 1  ;;  %v389_v51 = vmul.f32 %v810_v5, %v175_v32 }
  0x28   : > { %v687_v52 = vmul.f32 -1.442695, %v879_v44  ;;  %v297_v53 = vrot.slane %v275_v46, 2  ;;  %v354_v54 = vrot.slane %v332_v47, 3  ;;  %v446_v55 = vmul.f32 %v825_v16, %v175_v32 }
  0x29   : > { %v431_v56 = vadd.f32 %v410_v38, %v374_v48  ;;  %v241_v57 = vsel %vm232_vm0, %v238_v20, %v240_v50  ;;  %v411_v58 = vrot.slane %v389_v51, 4  ;;  %v503_v59 = vmul.f32 %v832_v25, %v175_v32 }
  0x2a   : > { %708 = vpow2.f32 %v687_v52  ;;  %v261_v61 = vadd.f32 %v241_v57, %v204_v49  ;;  %v298_v62 = vsel %vm289_vm1, %v295_v24, %v297_v53  ;;  %v355_v63 = vsel %vm346_vm2, %v352_v30, %v354_v54 }
  0x2b   : > { %v488_v6 = vadd.f32 %v467_v41, %v431_v56  ;;  %v412_v7 = vsel %vm403_vm3, %v409_v31, %v411_v58  ;;  %v468_v8 = vrot.slane %v446_v55, 5  ;;  %v525_v9 = vrot.slane %v503_v59, 6 }
  0x2c   : > { %v318_v10 = vadd.f32 %v298_v62, %v261_v61  ;;  %v197_v11 = vmul.f32 %v785_v1, %v175_v32  ;;  %v219_v12 = vmul.f32 %v790_v2, %v176_v60  ;;  %v276_v13 = vmul.f32 %v795_v3, %v176_v60 }
  0x2d   : > { %v897_v15 = vadd.f32 %v524_v45, %v488_v6  ;;  %v469_v17 = vsel %vm460_vm4, %v466_v35, %v468_v8  ;;  %v526_v18 = vsel %vm517_vm5, %v523_v39, %v525_v9  ;;  %v333_v19 = vmul.f32 %v805_v4, %v176_v60 }
  0x2e   : > { %v375_v20 = vadd.f32 %v355_v63, %v318_v10  ;;  %v205_v21 = vadd.f32 %v780_v0, %v197_v11  ;;  %v242_v22 = vrot.slane %v219_v12, 1  ;;  %v299_v23 = vrot.slane %v276_v13, 2  ;;  %v178_v12 = vld [vmem:[%s800_s25 + $0x38] sm:$0xff] }
  0x2f   : > { %v688_v24 = vmul.f32 -1.442695, %v897_v15  ;;  %v356_v26 = vrot.slane %v333_v19, 3  ;;  %v390_v27 = vmul.f32 %v810_v5, %v176_v60  ;;  %v447_v28 = vmul.f32 %v825_v16, %v176_v60 }
  0x30   : > { %v707_v29 = vpop.eup %706  ;;  %v432_v30 = vadd.f32 %v412_v7, %v375_v20  ;;  %v243_v31 = vsel %vm232_vm0, %v240_v50, %v242_v22  ;;  %v300_v32 = vsel %vm289_vm1, %v297_v53, %v299_v23  ;;  %v504_v33 = vmul.f32 %v832_v25, %v176_v60 }
  0x31   : > { %v575_v35 = vadd.f32 1.0, %v707_v29  ;;  %710 = vpow2.f32 %v688_v24  ;;  %v262_v36 = vadd.f32 %v243_v31, %v205_v21  ;;  %v357_v37 = vsel %vm346_vm2, %v354_v54, %v356_v26 }
  0x32   : > { %v489_v38 = vadd.f32 %v469_v17, %v432_v30  ;;  %v413_v39 = vrot.slane %v390_v27, 4  ;;  %v470_v40 = vrot.slane %v447_v28, 5  ;;  %v527_v41 = vrot.slane %v504_v33, 6 }
  0x33   : > { %712 = vrcp.f32 %v575_v35  ;;  %v319_v42 = vadd.f32 %v300_v32, %v262_v36  ;;  %v198_v43 = vmul.f32 %v785_v1, %v176_v60  ;;  %v220_v45 = vmul.f32 %v790_v2, %v177_v34 }
  0x34   : > { %v913_v46 = vadd.f32 %v526_v18, %v489_v38  ;;  %v414_v47 = vsel %vm403_vm3, %v411_v58, %v413_v39  ;;  %v471_v48 = vsel %vm460_vm4, %v468_v8, %v470_v40  ;;  %v528_v49 = vsel %vm517_vm5, %v525_v9, %v527_v41 }
  0x35   : > { %v376_v50 = vadd.f32 %v357_v37, %v319_v42  ;;  %v206_v51 = vadd.f32 %v780_v0, %v198_v43  ;;  %v244_v52 = vrot.slane %v220_v45, 1  ;;  %v277_v53 = vmul.f32 %v795_v3, %v177_v34  ;;  %v179_v45 = vld [vmem:[%s800_s25 + $0x40] sm:$0x3f] }
  0x36   : > { %v689_v54 = vmul.f32 -1.442695, %v913_v46  ;;  %v334_v55 = vmul.f32 %v805_v4, %v177_v34  ;;  %v391_v56 = vmul.f32 %v810_v5, %v177_v34  ;;  %v924_v57 = vmul.f32 %v825_v16, %v177_v34 }
  0x37   : > { %v709_v58 = vpop.eup %708  ;;  %v433_v59 = vadd.f32 %v414_v47, %v376_v50  ;;  %v245_v60 = vsel %vm232_vm0, %v242_v22, %v244_v52  ;;  %v301_v61 = vrot.slane %v277_v53, 2  ;;  %v928_v62 = vmul.f32 %v832_v25, %v177_v34 }
  0x38   : > { %v576_v63 = vadd.f32 1.0, %v709_v58  ;;  %714 = vpow2.f32 %v689_v54  ;;  %v263_v6 = vadd.f32 %v245_v60, %v206_v51  ;;  %v358_v7 = vrot.slane %v334_v55, 3 }
  0x39   : > { %v490_v8 = vadd.f32 %v471_v48, %v433_v59  ;;  %v302_v9 = vsel %vm289_vm1, %v299_v23, %v301_v61  ;;  %v415_v10 = vrot.slane %v391_v56, 4  ;;  %v472_v11 = vrot.slane %v924_v57, 5 }
  0x3a   : > { %716 = vrcp.f32 %v576_v63  ;;  %v320_v13 = vadd.f32 %v302_v9, %v263_v6  ;;  %v359_v17 = vsel %vm346_vm2, %v356_v26, %v358_v7  ;;  %v529_v18 = vrot.slane %v928_v62, 6 }
  0x3b   : > { %v935_v19 = vadd.f32 %v528_v49, %v490_v8  ;;  %v416_v20 = vsel %vm403_vm3, %v413_v39, %v415_v10  ;;  %v473_v21 = vsel %vm460_vm4, %v470_v40, %v472_v11  ;;  %v199_v22 = vmul.f32 %v785_v1, %v177_v34 }
  0x3c   : > { %v377_v23 = vadd.f32 %v359_v17, %v320_v13  ;;  %v530_v24 = vsel %vm517_vm5, %v527_v41, %v529_v18  ;;  %v221_v27 = vmul.f32 %v790_v2, %v178_v12  ;;  %v278_v28 = vmul.f32 %v795_v3, %v178_v12 }
  0x3d   : > { %v690_v26 = vmul.f32 -1.442695, %v935_v19  ;;  %v207_v29 = vadd.f32 %v780_v0, %v199_v22  ;;  %v335_v30 = vmul.f32 %v805_v4, %v178_v12  ;;  %v392_v31 = vmul.f32 %v810_v5, %v178_v12 }
  0x3e   : > { %v711_v32 = vpop.eup %710  ;;  %v434_v33 = vadd.f32 %v416_v20, %v377_v23  ;;  %v246_v34 = vrot.slane %v221_v27, 1  ;;  %v303_v35 = vrot.slane %v278_v28, 2  ;;  %v449_v36 = vmul.f32 %v825_v16, %v178_v12 }
  0x3f   : > { %v577_v37 = vadd.f32 1.0, %v711_v32  ;;  %718 = vpow2.f32 %v690_v26  ;;  %v360_v38 = vrot.slane %v335_v30, 3  ;;  %v417_v39 = vrot.slane %v392_v31, 4 }
  0x40   : > { %v713_v40 = vpop.eup %712  ;;  %v491_v41 = vadd.f32 %v473_v21, %v434_v33  ;;  %v247_v42 = vsel %vm232_vm0, %v244_v52, %v246_v34  ;;  %v304_v43 = vsel %vm289_vm1, %v301_v61, %v303_v35  ;;  %v474_v49 = vrot.slane %v449_v36, 5 }
  0x41   : > { %v599_v47 = vmul.f32 %v713_v40, %v861_v14  ;;  %720 = vrcp.f32 %v577_v37  ;;  %v264_v48 = vadd.f32 %v247_v42, %v207_v29  ;;  %v361_v51 = vsel %vm346_vm2, %v358_v7, %v360_v38 }
  0x42   : > { %v960_v50 = vadd.f32 %v530_v24, %v491_v41  ;;  %v418_v53 = vsel %vm403_vm3, %v415_v10, %v417_v39  ;;  %v506_v54 = vmul.f32 %v832_v25, %v178_v12  ;;  %v200_v52 = vmul.f32 %v785_v1, %v178_v12 }
  0x43   : > { %607 = vst [vmem:[%s954_s10] sm:$0xff] %v599_v47  ;;  %v321_v55 = vadd.f32 %v304_v43, %v264_v48  ;;  %v222_v56 = vmul.f32 %v790_v2, %v179_v45  ;;  %v279_v57 = vmul.f32 %v795_v3, %v179_v45  ;;  %v336_v59 = vmul.f32 %v805_v4, %v179_v45 }
  0x44   : > { %v691_v14 = vmul.f32 -1.442695, %v960_v50  ;;  %v531_v58 = vrot.slane %v506_v54, 6  ;;  %v393_v60 = vmul.f32 %v810_v5, %v179_v45  ;;  %v208_v6 = vadd.f32 %v780_v0, %v200_v52 }
  0x45   : > { %v715_v61 = vpop.eup %714  ;;  %v378_v63 = vadd.f32 %v361_v51, %v321_v55  ;;  %v248_v7 = vrot.slane %v222_v56, 1  ;;  %v305_v8 = vrot.slane %v279_v57, 2  ;;  %v475_v1 = vsel %vm460_vm4, %v472_v11, %v474_v49 }
  0x46   : > { %v578_v9 = vadd.f32 1.0, %v715_v61  ;;  %722 = vpow2.f32 %v691_v14  ;;  %v362_v2 = vrot.slane %v336_v59, 3  ;;  %v419_v13 = vrot.slane %v393_v60, 4 }
  0x47   : > { %v717_v3 = vpop.eup %716  ;;  %v435_v10 = vadd.f32 %v418_v53, %v378_v63  ;;  %v249_v12 = vsel %vm232_vm0, %v246_v34, %v248_v7  ;;  %v306_v4 = vsel %vm289_vm1, %v303_v35, %v305_v8  ;;  %v532_v0 = vsel %vm517_vm5, %v529_v18, %v531_v58 }
  0x48   : > { %v600_v5 = vmul.f32 %v717_v3, %v879_v44  ;;  %724 = vrcp.f32 %v578_v9  ;;  %v265_v17 = vadd.f32 %v249_v12, %v208_v6  ;;  %v363_v21 = vsel %vm346_vm2, %v360_v38, %v362_v2 }
  0x49   : > { %v492_v20 = vadd.f32 %v475_v1, %v435_v10  ;;  %v450_v11 = vmul.f32 %v825_v16, %v179_v45  ;;  %v507_v22 = vmul.f32 %v832_v25, %v179_v45  ;;  %v420_v27 = vsel %vm403_vm3, %v417_v39, %v419_v13 }
  0x4a   : > { %608 = vst [vmem:[%s954_s10 + $0x8] sm:$0xff] %v600_v5  ;;  %v322_v23 = vadd.f32 %v306_v4, %v265_v17 }
  0x4b   : > { %v549_v24 = vadd.f32 %v532_v0, %v492_v20  ;;  %v476_v44 = vrot.slane %v450_v11, 5  ;;  %v533_v28 = vrot.slane %v507_v22, 6 }
  0x4c   : > { %v719_v26 = vpop.eup %718  ;;  %v379_v62 = vadd.f32 %v363_v21, %v322_v23 }
  0x4d   : > { %v579_v29 = vadd.f32 1.0, %v719_v26  ;;  %v692_v18 = vmul.f32 -1.442695, %v549_v24  ;;  %v477_v30 = vsel %vm460_vm4, %v474_v49, %v476_v44  ;;  %v534_v25 = vsel %vm517_vm5, %v531_v58, %v533_v28 }
  0x4e   : > { %v721_v31 = vpop.eup %720  ;;  %v436_v32 = vadd.f32 %v420_v27, %v379_v62 }
  0x4f   : > { %v601_v16 = vmul.f32 %v721_v31, %v897_v15  ;;  %726 = vrcp.f32 %v579_v29 }
  0x50   : > { %728 = vpow2.f32 %v692_v18  ;;  %v493_v33 = vadd.f32 %v477_v30, %v436_v32 }
  0x51   : > { %609 = vst [vmem:[%s954_s10 + $0x10] sm:$0xff] %v601_v16 }
  0x52   : > { %v550_v34 = vadd.f32 %v534_v25, %v493_v33 }
  0x53   : > { %v723_v35 = vpop.eup %722 }
  0x54   : > { %v580_v36 = vadd.f32 1.0, %v723_v35  ;;  %v693_v37 = vmul.f32 -1.442695, %v550_v34 }
  0x55   : > { %v725_v38 = vpop.eup %724 }
  0x56   : > { %v602_v39 = vmul.f32 %v725_v38, %v913_v46  ;;  %730 = vrcp.f32 %v580_v36 }
  0x57   : > { %732 = vpow2.f32 %v693_v37 }
  0x58   : > { %610 = vst [vmem:[%s954_s10 + $0x18] sm:$0xff] %v602_v39 }
  0x5c   : > { %v727_v15 = vpop.eup %726 }
  0x5d   : > { %v729_v40 = vpop.eup %728  ;;  %v603_v41 = vmul.f32 %v727_v15, %v935_v19 }
  0x5e   : > { %v581_v42 = vadd.f32 1.0, %v729_v40 }
  0x5f   : > { %611 = vst [vmem:[%s954_s10 + $0x20] sm:$0xff] %v603_v41 }
  0x60   : > { %734 = vrcp.f32 %v581_v42 }
  0x63   : > { %v731_v43 = vpop.eup %730 }
  0x64   : > { %v733_v45 = vpop.eup %732  ;;  %v604_v47 = vmul.f32 %v731_v43, %v960_v50 }
  0x65   : > { %v582_v48 = vadd.f32 1.0, %v733_v45 }
  0x66   : > { %612 = vst [vmem:[%s954_s10 + $0x28] sm:$0xff] %v604_v47 }
  0x67   : > { %736 = vrcp.f32 %v582_v48 }
  0x6d   : > { %v735_v46 = vpop.eup %734 }
  0x6e   : > { %v605_v49 = vmul.f32 %v735_v46, %v549_v24 }
  0x70   : > { %613 = vst [vmem:[%s954_s10 + $0x30] sm:$0xff] %v605_v49 }
  0x74   : > { %v737_v51 = vpop.eup %736 }
  0x75   : > { %v606_v53 = vmul.f32 %v737_v51, %v550_v34 }
  0x77   : > { %614 = vst [vmem:[%s954_s10 + $0x38] sm:$0xff] %v606_v53 }
  0x78 PF: > { %s13_s12 = sadd.s32 1, %s744_s12  }
  0x79   : > { %p10_p4 = scmp.ge.s32.totalorder %s13_s12, 4  }
  0x7b   :  { %12 = sbr.rel (!%p10_p4) target bundleno = 1 (0x1), region = 62 }

// kernel: _lambda_.16
= control target key start
LH: loop header
LB: loop body
LE: loop exit
PB: predicated region body
PF: predicated region fallthrough
CT: control target
= control target key end

     0   :  { %v608_v1 = vmov 0   ;;  %v457_v25 = vlaneseq  ;;  %s844_s1 = inlined_call_operand.vmem [shape: bf16[128,256], index: 1, kind: input, shape index: {}]   ;;  %s845_s0 = inlined_call_operand.vmem [shape: bf16[128,128], index: 0, kind: input, shape index: {}]   ;;  %s846_s2 = inlined_call_operand.vmem [shape: f32[1,256], index: 2, kind: input, shape index: {}]   ;;  %s847_s3 = inlined_call_operand.vmem [shape: f32[128,256], index: 3, kind: output, shape index: {}]  }
   0x1   :  { %v576_v0 = vld [vmem:[%s844_s1 + $0x74] ss:$8 sps:$4 sm:$0xff]   ;;  %275 = vmatprep.mubr.bf16.mxu0 %v608_v1  ;;  %315 = vmatprep.mubr.bf16.mxu1 %v608_v1  ;;  %v578_v2 = vld [vmem:[%s844_s1 + $0x70] ss:$8 sps:$4 sm:$0xff]   ;;  %v579_v3 = vld [vmem:[%s844_s1 + $0x64] ss:$8 sps:$4 sm:$0xff]  }
   0x2   :  { %243 = vmatprep.subr.bf16.mxu0 %v576_v0  ;;  %559 = vmatprep.subr.bf16.mxu1 %v576_v0  ;;  %v581_v4 = vld [vmem:[%s844_s1 + $0x60] ss:$8 sps:$4 sm:$0xff]   ;;  %v582_v5 = vld [vmem:[%s844_s1 + $0x54] ss:$8 sps:$4 sm:$0xff]   ;;  %v584_v6 = vld [vmem:[%s844_s1 + $0x50] ss:$8 sps:$4 sm:$0xff]  }
   0x3   :  { %244 = vmatpush1.bf16.msra.mxu0 %v578_v2  ;;  %567 = vmatpush1.bf16.msra.mxu1 %v578_v2  ;;  %v585_v7 = vld [vmem:[%s844_s1 + $0x44] ss:$8 sps:$4 sm:$0xff]   ;;  %v587_v8 = vld [vmem:[%s844_s1 + $0x40] ss:$8 sps:$4 sm:$0xff]   ;;  %v588_v9 = vld [vmem:[%s844_s1 + $0x34] ss:$8 sps:$4 sm:$0xff]  }
   0x4   :  { %245 = vmatprep.subr.bf16.mxu0 %v579_v3  ;;  %560 = vmatprep.subr.bf16.mxu1 %v579_v3  ;;  %v590_v10 = vld [vmem:[%s844_s1 + $0x30] ss:$8 sps:$4 sm:$0xff]   ;;  %v591_v11 = vld [vmem:[%s844_s1 + $0x24] ss:$8 sps:$4 sm:$0xff]   ;;  %v593_v12 = vld [vmem:[%s844_s1 + $0x20] ss:$8 sps:$4 sm:$0xff]  }
   0x5   :  { %v594_v13 = vld [vmem:[%s844_s1 + $0x14] ss:$8 sps:$4 sm:$0xff]   ;;  %v596_v14 = vld [vmem:[%s844_s1 + $0x10] ss:$8 sps:$4 sm:$0xff]   ;;  %v597_v15 = vld [vmem:[%s844_s1 + $0x4] ss:$8 sps:$4 sm:$0xff]  }
   0x6   :  { %v599_v16 = vld [vmem:[%s844_s1] ss:$8 sps:$4 sm:$0xff]   ;;  %v604_v21 = vld [vmem:[%s845_s0 + $0x10] sm:$0xff]   ;;  %v606_v23 = vld [vmem:[%s845_s0 + $0x18] sm:$0xff]   ;;  %v458_v26 = vshrl.u32 %v457_v25, 7 }
   0x7   :  { %246 = vmatpush1.bf16.msra.mxu0 %v581_v4  ;;  %568 = vmatpush1.bf16.msra.mxu1 %v581_v4  ;;  %v600_v17 = vld [vmem:[%s845_s0] sm:$0xff]   ;;  %v602_v19 = vld [vmem:[%s845_s0 + $0x8] sm:$0xff]   ;;  %v605_v22 = vld [vmem:[%s845_s0 + $0x30] sm:$0xff]  }
   0x8   :  { %247 = vmatprep.subr.bf16.mxu0 %v582_v5  ;;  %561 = vmatprep.subr.bf16.mxu1 %v582_v5  ;;  %v601_v18 = vld [vmem:[%s845_s0 + $0x20] sm:$0xff]   ;;  %v603_v20 = vld [vmem:[%s845_s0 + $0x28] sm:$0xff]   ;;  %v607_v24 = vld [vmem:[%s845_s0 + $0x38] sm:$0xff]   ;;  %v459_v27 = vsub.s32 0, %v458_v26  ;;  %v463_v29 = vsub.s32 1, %v458_v26 }
   0x9   :  { %v455_v28 = vld [vmem:[%s846_s2] sm:$0x3] }
   0xa   :  { %v712_v30 = vrot.slane %v455_v28, %v459_v27  ;;  %v714_v31 = vrot.slane %v455_v28, %v463_v29 }
   0xb   :  { %248 = vmatpush1.bf16.msra.mxu0 %v584_v6  ;;  %569 = vmatpush1.bf16.msra.mxu1 %v584_v6 }
   0xc   :  { %249 = vmatprep.subr.bf16.mxu0 %v585_v7  ;;  %562 = vmatprep.subr.bf16.mxu1 %v585_v7 }
   0xf   :  { %250 = vmatpush1.bf16.msra.mxu0 %v587_v8  ;;  %570 = vmatpush1.bf16.msra.mxu1 %v587_v8 }
  0x10   :  { %251 = vmatprep.subr.bf16.mxu0 %v588_v9  ;;  %563 = vmatprep.subr.bf16.mxu1 %v588_v9 }
  0x13   :  { %252 = vmatpush1.bf16.msra.mxu0 %v590_v10  ;;  %571 = vmatpush1.bf16.msra.mxu1 %v590_v10 }
  0x14   :  { %253 = vmatprep.subr.bf16.mxu0 %v591_v11  ;;  %564 = vmatprep.subr.bf16.mxu1 %v591_v11 }
  0x17   :  { %254 = vmatpush1.bf16.msra.mxu0 %v593_v12  ;;  %572 = vmatpush1.bf16.msra.mxu1 %v593_v12 }
  0x18   :  { %255 = vmatprep.subr.bf16.mxu0 %v594_v13  ;;  %565 = vmatprep.subr.bf16.mxu1 %v594_v13 }
  0x1b   :  { %256 = vmatpush1.bf16.msra.mxu0 %v596_v14  ;;  %573 = vmatpush1.bf16.msra.mxu1 %v596_v14 }
  0x1c   :  { %257 = vmatprep.subr.bf16.mxu0 %v597_v15  ;;  %566 = vmatprep.subr.bf16.mxu1 %v597_v15 }
  0x1f   :  { %258 = vmatpush1.bf16.msra.mxu0 %v599_v16  ;;  %574 = vmatpush1.bf16.msra.mxu1 %v599_v16 }
  0x22   :  { %276 = vmatmul.mubr.bf16.vlgmr.msra.gmra.mxu0 %v600_v17  ;;  %316 = vmatmul.mubr.bf16.vlgmr.msra.gmra.mxu1 %v601_v18 }
  0x23   :  { %285 = vmatprep.mubr.bf16.mxu0 %v608_v1  ;;  %325 = vmatprep.mubr.bf16.mxu1 %v608_v1 }
  0x2a   :  { %286 = vmatmul.mubr.bf16.gmra.mxu0 %v602_v19  ;;  %326 = vmatmul.mubr.bf16.gmra.mxu1 %v603_v20 }
  0x2b   :  { %295 = vmatprep.mubr.bf16.mxu0 %v608_v1  ;;  %335 = vmatprep.mubr.bf16.mxu1 %v608_v1 }
  0x32   :  { %296 = vmatmul.mubr.bf16.gmra.mxu0 %v604_v21  ;;  %336 = vmatmul.mubr.bf16.gmra.mxu1 %v605_v22 }
  0x33   :  { %305 = vmatprep.mubr.bf16.mxu0 %v608_v1  ;;  %345 = vmatprep.mubr.bf16.mxu1 %v608_v1 }
  0x3a   :  { %306 = vmatmul.mubr.bf16.gmra.mxu0 %v606_v23  ;;  %346 = vmatmul.mubr.bf16.gmra.mxu1 %v607_v24 }
  0xe2   :  { %v277_v32 = vpop.f32.mrf.mxu0  ;;  %v317_v33 = vpop.f32.mrf.mxu1 }
  0xe3   :  { %v467_v34 = vadd.f32 %v712_v30, %v277_v32  ;;  %v483_v35 = vadd.f32 %v712_v30, %v317_v33 }
  0xe4   :  { %v279_v36 = vpop.f32.mrf.mxu0  ;;  %v319_v37 = vpop.f32.mrf.mxu1 }
  0xe5   :  { %499 = vst [vmem:[%s847_s3] sm:$0xff] %v467_v34  ;;  %515 = vst [vmem:[%s847_s3 + $0x80] sm:$0xff] %v483_v35  ;;  %v468_v38 = vadd.f32 %v714_v31, %v279_v36  ;;  %v484_v39 = vadd.f32 %v714_v31, %v319_v37 }
  0xe6   :  { %v281_v40 = vpop.f32.mrf.mxu0  ;;  %v321_v41 = vpop.f32.mrf.mxu1 }
  0xe7   :  { %500 = vst [vmem:[%s847_s3 + $0x8] sm:$0xff] %v468_v38  ;;  %516 = vst [vmem:[%s847_s3 + $0x88] sm:$0xff] %v484_v39  ;;  %v469_v42 = vadd.f32 %v712_v30, %v281_v40  ;;  %v485_v43 = vadd.f32 %v712_v30, %v321_v41 }
  0xe8   :  { %v283_v44 = vpop.f32.mrf.mxu0  ;;  %v323_v45 = vpop.f32.mrf.mxu1 }
  0xe9   :  { %501 = vst [vmem:[%s847_s3 + $0x10] sm:$0xff] %v469_v42  ;;  %517 = vst [vmem:[%s847_s3 + $0x90] sm:$0xff] %v485_v43  ;;  %v470_v46 = vadd.f32 %v714_v31, %v283_v44  ;;  %v486_v47 = vadd.f32 %v714_v31, %v323_v45 }
  0xea   :  { %v287_v48 = vpop.f32.mrf.mxu0  ;;  %v327_v49 = vpop.f32.mrf.mxu1 }
  0xeb   :  { %502 = vst [vmem:[%s847_s3 + $0x18] sm:$0xff] %v470_v46  ;;  %518 = vst [vmem:[%s847_s3 + $0x98] sm:$0xff] %v486_v47  ;;  %v471_v50 = vadd.f32 %v712_v30, %v287_v48  ;;  %v487_v51 = vadd.f32 %v712_v30, %v327_v49 }
  0xec   :  { %v289_v52 = vpop.f32.mrf.mxu0  ;;  %v329_v53 = vpop.f32.mrf.mxu1 }
  0xed   :  { %503 = vst [vmem:[%s847_s3 + $0x20] sm:$0xff] %v471_v50  ;;  %519 = vst [vmem:[%s847_s3 + $0xa0] sm:$0xff] %v487_v51  ;;  %v472_v54 = vadd.f32 %v714_v31, %v289_v52  ;;  %v488_v55 = vadd.f32 %v714_v31, %v329_v53 }
  0xee   :  { %v291_v56 = vpop.f32.mrf.mxu0  ;;  %v331_v57 = vpop.f32.mrf.mxu1 }
  0xef   :  { %504 = vst [vmem:[%s847_s3 + $0x28] sm:$0xff] %v472_v54  ;;  %520 = vst [vmem:[%s847_s3 + $0xa8] sm:$0xff] %v488_v55  ;;  %v473_v58 = vadd.f32 %v712_v30, %v291_v56  ;;  %v489_v59 = vadd.f32 %v712_v30, %v331_v57 }
  0xf0   :  { %v293_v60 = vpop.f32.mrf.mxu0  ;;  %v333_v61 = vpop.f32.mrf.mxu1 }
  0xf1   :  { %505 = vst [vmem:[%s847_s3 + $0x30] sm:$0xff] %v473_v58  ;;  %521 = vst [vmem:[%s847_s3 + $0xb0] sm:$0xff] %v489_v59  ;;  %v474_v62 = vadd.f32 %v714_v31, %v293_v60  ;;  %v490_v63 = vadd.f32 %v714_v31, %v333_v61 }
  0xf2   :  { %v297_v0 = vpop.f32.mrf.mxu0  ;;  %v337_v1 = vpop.f32.mrf.mxu1 }
  0xf3   :  { %506 = vst [vmem:[%s847_s3 + $0x38] sm:$0xff] %v474_v62  ;;  %522 = vst [vmem:[%s847_s3 + $0xb8] sm:$0xff] %v490_v63  ;;  %v475_v2 = vadd.f32 %v712_v30, %v297_v0  ;;  %v491_v3 = vadd.f32 %v712_v30, %v337_v1 }
  0xf4   :  { %v299_v4 = vpop.f32.mrf.mxu0  ;;  %v339_v5 = vpop.f32.mrf.mxu1 }
  0xf5   :  { %507 = vst [vmem:[%s847_s3 + $0x40] sm:$0xff] %v475_v2  ;;  %523 = vst [vmem:[%s847_s3 + $0xc0] sm:$0xff] %v491_v3  ;;  %v476_v6 = vadd.f32 %v714_v31, %v299_v4  ;;  %v492_v7 = vadd.f32 %v714_v31, %v339_v5 }
  0xf6   :  { %v301_v8 = vpop.f32.mrf.mxu0  ;;  %v341_v9 = vpop.f32.mrf.mxu1 }
  0xf7   :  { %508 = vst [vmem:[%s847_s3 + $0x48] sm:$0xff] %v476_v6  ;;  %524 = vst [vmem:[%s847_s3 + $0xc8] sm:$0xff] %v492_v7  ;;  %v477_v10 = vadd.f32 %v712_v30, %v301_v8  ;;  %v493_v11 = vadd.f32 %v712_v30, %v341_v9 }
  0xf8   :  { %v303_v12 = vpop.f32.mrf.mxu0  ;;  %v343_v13 = vpop.f32.mrf.mxu1 }
  0xf9   :  { %509 = vst [vmem:[%s847_s3 + $0x50] sm:$0xff] %v477_v10  ;;  %525 = vst [vmem:[%s847_s3 + $0xd0] sm:$0xff] %v493_v11  ;;  %v478_v14 = vadd.f32 %v714_v31, %v303_v12  ;;  %v494_v15 = vadd.f32 %v714_v31, %v343_v13 }
  0xfa   :  { %v307_v16 = vpop.f32.mrf.mxu0  ;;  %v347_v17 = vpop.f32.mrf.mxu1 }
  0xfb   :  { %510 = vst [vmem:[%s847_s3 + $0x58] sm:$0xff] %v478_v14  ;;  %526 = vst [vmem:[%s847_s3 + $0xd8] sm:$0xff] %v494_v15  ;;  %v479_v18 = vadd.f32 %v712_v30, %v307_v16  ;;  %v495_v19 = vadd.f32 %v712_v30, %v347_v17 }
  0xfc   :  { %v309_v20 = vpop.f32.mrf.mxu0  ;;  %v349_v21 = vpop.f32.mrf.mxu1 }
  0xfd   :  { %511 = vst [vmem:[%s847_s3 + $0x60] sm:$0xff] %v479_v18  ;;  %527 = vst [vmem:[%s847_s3 + $0xe0] sm:$0xff] %v495_v19  ;;  %v480_v22 = vadd.f32 %v714_v31, %v309_v20  ;;  %v496_v23 = vadd.f32 %v714_v31, %v349_v21 }
  0xfe   :  { %v311_v24 = vpop.f32.mrf.mxu0  ;;  %v351_v25 = vpop.f32.mrf.mxu1 }
  0xff   :  { %512 = vst [vmem:[%s847_s3 + $0x68] sm:$0xff] %v480_v22  ;;  %528 = vst [vmem:[%s847_s3 + $0xe8] sm:$0xff] %v496_v23  ;;  %v481_v26 = vadd.f32 %v712_v30, %v311_v24  ;;  %v497_v27 = vadd.f32 %v712_v30, %v351_v25 }
 0x100   :  { %v313_v28 = vpop.f32.mrf.mxu0  ;;  %v353_v29 = vpop.f32.mrf.mxu1 }
 0x101   :  { %513 = vst [vmem:[%s847_s3 + $0x70] sm:$0xff] %v481_v26  ;;  %529 = vst [vmem:[%s847_s3 + $0xf0] sm:$0xff] %v497_v27  ;;  %v482_v32 = vadd.f32 %v714_v31, %v313_v28  ;;  %v498_v33 = vadd.f32 %v714_v31, %v353_v29 }
 0x103   :  { %514 = vst [vmem:[%s847_s3 + $0x78] sm:$0xff] %v482_v32  ;;  %530 = vst [vmem:[%s847_s3 + $0xf8] sm:$0xff] %v498_v33 }

// kernel: _lambda_.25
= control target key start
LH: loop header
LB: loop body
LE: loop exit
PB: predicated region body
PF: predicated region fallthrough
CT: control target
= control target key end

     0   :  { %11 = vsyncpa [#allocation3], 0  ;;  %s963_s0 = inlined_call_operand.vmem [shape: f32[2,64,32], index: 0, kind: input, shape index: {}]   ;;  %s964_s1 = inlined_call_operand.vmem [shape: f32[2,64,32], index: 1, kind: input, shape index: {}]   ;;  %s965_s2 = inlined_call_operand.vmem [shape: f32[1,32], index: 2, kind: input, shape index: {}]   ;;  %s966_s3 = inlined_call_operand.vmem [shape: f32[1,32], index: 3, kind: input, shape index: {}]   ;;  %s967_s4 = inlined_call_operand.vmem [shape: f32[2,64,32], index: 4, kind: output, shape index: {0}]   ;;  %s968_s5 = inlined_call_operand.hbm [shape: f32[2,64,32], index: 5, kind: output, shape index: {1}]  }
   0x1   :  { %13 = vsyncpa [#allocation3 + $0x1], 0  ;;  %s727_s18 = smov 0   ;;  %s729_s19 = smov 0  }
   0x2   :  { %s731_s20 = smov 0   ;;  %s733_s21 = smov 0  }
   0x3 LB: > { %s748_s22 = sadd.s32 4294967295, %s692_s21   ;;  %s553_s23 = sadd.s32 4294967294, %s692_s21   ;;  %s692_s21 = sphi %s733_s21, %s974_s21   ;;  %s688_s20 = sphi %s731_s20, %s973_s20   ;;  %s684_s19 = sphi %s729_s19, %s972_s19   ;;  %s680_s18 = sphi %s727_s18, %s971_s18  }
   0x4   : > { %s752_s24 = sadd.s32 1, %s692_s21   ;;  %s146_s25 = sadd.s32 1, %s688_s20 }
   0x5   : > { %s143_s26 = ssub.s32 %s692_s21, %s752_s24  ;;  %p156_p0 = scmp.ne.s32.totalorder %s688_s20, %s684_s19 }
   0x6   : > { %p144_p1 = scmp.eq.s32.totalorder %s143_s26, 0  ;;  %p157_p2 = scmp.eq.s32.totalorder %s748_s22, 1 }
   0x7   : > { %p162_p3 = scmp.ne.s32.totalorder %s684_s19, %s680_s18  ;;  %p163_p4 = scmp.eq.s32.totalorder %s553_s23, 1 }
   0x8   : > { %s763_s27 = scalar_select %p144_p1, %s688_s20, %s146_s25  }
   0x9   : > { %p765_p5 = por %p157_p2, %p156_p0  ;;  %p769_p6 = por %p163_p4, %p162_p3 }
   0xa   : > { %p556_p7 = scmp.ge.s32.totalorder %s692_s21, 1  ;;  %p203_p8 = scmp.lt.s32.totalorder %s692_s21, 3 }
   0xc   : > { %p204_p9 = pnand %p556_p7, %p203_p8 }
   0xd   : > { %p241_p10 = scmp.lt.s32.totalorder (!%p204_p9), %s748_s22, 1  ;;  %s238_s30 = sand.u32 (!%p204_p9), 1, %s684_s19  }
   0xe   : > { %207 = sbr.rel (%p204_p9) target bundleno = 352 (0x160), region = 36  ;;  %s557_s7 = sshll.u32 (!%p204_p9), %s238_s30, 6 }
   0xf   : > { %s804_s15 = scalar_lea.vmem (!%p204_p9), [#allocation2], %s557_s7  ;;  %s574_s16 = sshll.u32 (!%p204_p9), %s748_s22, 10 }
  0x10   : > { %s454_s17 = sshll.u32 (!%p204_p9), %s804_s15, 4  ;;  %s881_s26 = scalar_lea.hbm (!%p204_p9), %s968_s5, %s574_s16  ;;  %s883_s17 = int_to_ptr.vmem [resolvable:$true] %s454_s17 }
  0x11   : > { %s632_s7 = scalar_lea.vmem (!%p204_p9), %s883_s17, 1024 }
  0x12   : > { %p633_p11 = scmp.ne.s32.totalorder (!%p204_p9), %s883_s17, %s632_s7 }
  0x13   : > { %s242_s6 = scalar_select %p241_p10, %s748_s22, 1  ;;  %vm280_vm0 = vcmask 261120  }
  0x14   : > { %p634_p12 = pnand %p633_p11, %p765_p5  ;;  %s694_s22 = smov [#allocation2]  }
  0x15   : > { %s780_s8 = sshll.u32 %s242_s6, 6  ;;  %s887_s6 = scalar_lea.sflag [#allocation3], %s238_s30 }
  0x16   : > { %s786_s11 = scalar_lea.vmem %s963_s0, %s780_s8  ;;  %s792_s14 = scalar_lea.vmem %s964_s1, %s780_s8 }
  0x17   : > { %v256_v0 = vld [vmem:[%s786_s11] sm:$0xff]  ;;  %v258_v2 = vld [vmem:[%s786_s11 + $0x10] sm:$0xff]  ;;  %v257_v5 = vld [vmem:[%s786_s11 + $0x8] sm:$0xff]  ;;  %p635_p13 = pneg %p634_p12  ;;  %s636_s9 = sshll.u32 %s694_s22, 4  ;;  %s637_s9 = int_to_ptr.vmem [resolvable:$false] %s636_s9 }
  0x18   : > { %v264_v1 = vld [vmem:[%s792_s14] sm:$0xff]  ;;  %v266_v4 = vld [vmem:[%s792_s14 + $0x10] sm:$0xff]  ;;  %v265_v6 = vld [vmem:[%s792_s14 + $0x8] sm:$0xff]  ;;  %s638_s10 = scalar_lea.vmem %s637_s9, 2048  ;;  %p639_p0 = scmp.lt.s32.totalorder %s883_s17, %s637_s9 }
  0x19   : > { %v272_v3 = vadd.f32 %v264_v1, %v256_v0  ;;  %v274_v7 = vadd.f32 %v266_v4, %v258_v2  ;;  %v273_v8 = vadd.f32 %v265_v6, %v257_v5  ;;  %v259_v9 = vld [vmem:[%s786_s11 + $0x18] sm:$0xff]  ;;  %v260_v11 = vld [vmem:[%s786_s11 + $0x20] sm:$0xff]  ;;  %v261_v15 = vld [vmem:[%s786_s11 + $0x28] sm:$0xff]  ;;  %p640_p1 = scmp.lt.s32.totalorder %s638_s10, %s632_s7 }
  0x1a   : > { %v267_v10 = vld [vmem:[%s792_s14 + $0x18] sm:$0xff]  ;;  %v268_v14 = vld [vmem:[%s792_s14 + $0x20] sm:$0xff]  ;;  %v269_v16 = vld [vmem:[%s792_s14 + $0x28] sm:$0xff] }
  0x1b   : > { %v281_v12 = vsel %vm280_vm0, %v272_v3, 0.0  ;;  %424 = vst.msk [vmem:[%s804_s15] sm:$0xff] %vm280_vm0, %v272_v3  ;;  %v275_v13 = vadd.f32 %v267_v10, %v259_v9  ;;  %v287_v17 = vsel %vm280_vm0, %v274_v7, 0.0  ;;  %426 = vst.msk [vmem:[%s804_s15 + $0x10] sm:$0xff] %vm280_vm0, %v274_v7  ;;  %v276_v18 = vadd.f32 %v268_v14, %v260_v11  ;;  %v262_v20 = vld [vmem:[%s786_s11 + $0x30] sm:$0xff]  ;;  %v263_v22 = vld [vmem:[%s786_s11 + $0x38] sm:$0xff]  ;;  %p641_p2 = por %p640_p1, %p639_p0 }
  0x1c   : > { %282 = vadd.xlane.f32.xlu0 %v281_v12  ;;  %425 = vst.msk [vmem:[%s804_s15 + $0x8] sm:$0xff] %vm280_vm0, %v273_v8  ;;  %v277_v19 = vadd.f32 %v269_v16, %v261_v15  ;;  %v270_v21 = vld [vmem:[%s792_s14 + $0x30] sm:$0xff]  ;;  %288 = vadd.xlane.f32.xlu1 %v287_v17  ;;  %v284_v23 = vsel %vm280_vm0, %v273_v8, 0.0  ;;  %v271_v25 = vld [vmem:[%s792_s14 + $0x38] sm:$0xff] }
  0x1d   : > { %427 = vst.msk [vmem:[%s804_s15 + $0x18] sm:$0xff] %vm280_vm0, %v275_v13  ;;  %v278_v24 = vadd.f32 %v270_v21, %v262_v20  ;;  %v290_v26 = vsel %vm280_vm0, %v275_v13, 0.0  ;;  %428 = vst.msk [vmem:[%s804_s15 + $0x20] sm:$0xff] %vm280_vm0, %v276_v18  ;;  %v279_v27 = vadd.f32 %v271_v25, %v263_v22  ;;  %v293_v28 = vsel %vm280_vm0, %v276_v18, 0.0  ;;  %p642_p3 = pnand %p641_p2, %p635_p13 }
  0x1e   : > { %429 = vst.msk [vmem:[%s804_s15 + $0x28] sm:$0xff] %vm280_vm0, %v277_v19  ;;  %v296_v29 = vsel %vm280_vm0, %v277_v19, 0.0 }
  0x1f   : > { %430 = vst.msk [vmem:[%s804_s15 + $0x30] sm:$0xff] %vm280_vm0, %v278_v24  ;;  %431 = vst.msk [vmem:[%s804_s15 + $0x38] sm:$0xff] %vm280_vm0, %v279_v27  ;;  %v299_v30 = vsel %vm280_vm0, %v278_v24, 0.0  ;;  %v302_v31 = vsel %vm280_vm0, %v279_v27, 0.0 }
  0x20   : > { %285 = vadd.xlane.f32.xlu0 %v284_v23  ;;  %291 = vadd.xlane.f32.xlu1 %v290_v26 }
  0x24   : > { %294 = vadd.xlane.f32.xlu0 %v293_v28  ;;  %297 = vadd.xlane.f32.xlu1 %v296_v29 }
  0x28   : > { %300 = vadd.xlane.f32.xlu0 %v299_v30  ;;  %303 = vadd.xlane.f32.xlu1 %v302_v31 }
  0xa5   : > { %v283_v32 = vpop.xlane.xlu0 %282  ;;  %v289_v34 = vpop.xlane.xlu1 %288 }
  0xa6   : > { %v306_v33 = vmul.f32 0.03125, %v283_v32  ;;  %v308_v35 = vmul.f32 0.03125, %v289_v34 }
  0xa8   : > { %v836_v36 = vsub.f32 %v272_v3, %v306_v33  ;;  %v838_v37 = vsub.f32 %v274_v7, %v308_v35 }
  0xa9   : > { %v286_v38 = vpop.xlane.xlu0 %285  ;;  %v292_v40 = vpop.xlane.xlu1 %291 }
  0xaa   : > { %v307_v39 = vmul.f32 0.03125, %v286_v38  ;;  %v322_v41 = vmul.f32 %v836_v36, %v836_v36  ;;  %v309_v42 = vmul.f32 0.03125, %v292_v40  ;;  %v324_v43 = vmul.f32 %v838_v37, %v838_v37 }
  0xac   : > { %v844_v44 = vsub.f32 %v273_v8, %v307_v39  ;;  %v330_v45 = vsel %vm280_vm0, %v322_v41, 0.0  ;;  %v847_v46 = vsub.f32 %v275_v13, %v309_v42  ;;  %v336_v50 = vsel %vm280_vm0, %v324_v43, 0.0 }
  0xad   : > { %331 = vadd.xlane.f32.xlu0 %v330_v45  ;;  %v295_v47 = vpop.xlane.xlu0 %294  ;;  %v298_v49 = vpop.xlane.xlu1 %297 }
  0xae   : > { %v310_v48 = vmul.f32 0.03125, %v295_v47  ;;  %v323_v51 = vmul.f32 %v844_v44, %v844_v44  ;;  %v311_v52 = vmul.f32 0.03125, %v298_v49  ;;  %v325_v53 = vmul.f32 %v847_v46, %v847_v46 }
  0xb0   : > { %v854_v54 = vsub.f32 %v276_v18, %v310_v48  ;;  %v333_v55 = vsel %vm280_vm0, %v323_v51, 0.0  ;;  %v857_v56 = vsub.f32 %v277_v19, %v311_v52  ;;  %v339_v60 = vsel %vm280_vm0, %v325_v53, 0.0 }
  0xb1   : > { %337 = vadd.xlane.f32.xlu0 %v336_v50  ;;  %334 = vadd.xlane.f32.xlu1 %v333_v55  ;;  %v301_v57 = vpop.xlane.xlu0 %300  ;;  %v304_v59 = vpop.xlane.xlu1 %303 }
  0xb2   : > { %v312_v58 = vmul.f32 0.03125, %v301_v57  ;;  %v326_v61 = vmul.f32 %v854_v54, %v854_v54  ;;  %v313_v62 = vmul.f32 0.03125, %v304_v59  ;;  %v327_v63 = vmul.f32 %v857_v56, %v857_v56 }
  0xb4   : > { %v864_v0 = vsub.f32 %v278_v24, %v312_v58  ;;  %v342_v1 = vsel %vm280_vm0, %v326_v61, 0.0  ;;  %v867_v2 = vsub.f32 %v279_v27, %v313_v62  ;;  %v345_v3 = vsel %vm280_vm0, %v327_v63, 0.0 }
  0xb5   : > { %340 = vadd.xlane.f32.xlu1 %v339_v60  ;;  %343 = vadd.xlane.f32.xlu0 %v342_v1 }
  0xb6   : > { %v328_v4 = vmul.f32 %v864_v0, %v864_v0  ;;  %v329_v5 = vmul.f32 %v867_v2, %v867_v2 }
  0xb8   : > { %v348_v6 = vsel %vm280_vm0, %v328_v4, 0.0  ;;  %v351_v7 = vsel %vm280_vm0, %v329_v5, 0.0 }
  0xb9   : > { %346 = vadd.xlane.f32.xlu1 %v345_v3  ;;  %349 = vadd.xlane.f32.xlu0 %v348_v6 }
  0xbd   : > { %352 = vadd.xlane.f32.xlu1 %v351_v7 }
  0xbe   : > { %645 = shalt.err (!%p642_p3)
}
  0xbf   : > { %s646_s30 = scalar_lea.hbm %s881_s26, 1024  ;;  %s650_s13 = scalar_lea.hbm %s968_s5, 2048 }
  0xc0   : > { %p647_p4 = scmp.ne.s32.totalorder %s881_s26, %s646_s30  ;;  %p651_p9 = scmp.lt.s32.totalorder %s881_s26, %s968_s5 }
  0xc1   : > { %p652_p10 = scmp.lt.s32.totalorder %s650_s13, %s646_s30 }
  0xc2   : > { %p648_p7 = pnand %p647_p4, %p765_p5 }
  0xc3   : > { %p653_p11 = por %p652_p10, %p651_p9 }
  0xc4   : > { %p649_p8 = pneg %p648_p7 }
  0xc6   : > { %p654_p12 = pnand %p653_p11, %p649_p8 }
  0xc8   : > { %657 = shalt.err (!%p654_p12)
}
  0xc9   : > { %s695_s16 = smov 128   ;;  %s696_s23 = smov 8   ;;  %v564_v32 = vld [vmem:[%s965_s2] ss:$0 sm:$0xff] }
  0xca   : > { %575 = dma.vmem_to_hbm [thread:$0]  (%p765_p5), %s883_s17, 1024, %s881_s26, %s887_s6, %s695_s16, %s695_s16, %s696_s23  }
  0xcb   : > { %v565_v35 = vld [vmem:[%s966_s3] ss:$0 sm:$0xff]  ;;  %s921_s22 = scalar_lea.vmem %s967_s4, %s780_s8 }
 0x136   : > { %v332_v8 = vpop.xlane.xlu0 %331 }
 0x137   : > { %v354_v9 = vmul.f32 0.03125, %v332_v8 }
 0x139   : > { %v362_v10 = vadd.f32 1e-05, %v354_v9 }
 0x13a   : > { %v335_v11 = vpop.xlane.xlu1 %334  ;;  %v338_v12 = vpop.xlane.xlu0 %337 }
 0x13b   : > { %616 = vrsqrt.f32 %v362_v10  ;;  %v355_v13 = vmul.f32 0.03125, %v335_v11  ;;  %v356_v14 = vmul.f32 0.03125, %v338_v12 }
 0x13d   : > { %v363_v15 = vadd.f32 1e-05, %v355_v13  ;;  %v364_v16 = vadd.f32 1e-05, %v356_v14 }
 0x13e   : > { %v341_v17 = vpop.xlane.xlu1 %340  ;;  %v344_v18 = vpop.xlane.xlu0 %343 }
 0x13f   : > { %618 = vrsqrt.f32 %v363_v15  ;;  %v357_v19 = vmul.f32 0.03125, %v341_v17  ;;  %v358_v20 = vmul.f32 0.03125, %v344_v18 }
 0x140   : > { %620 = vrsqrt.f32 %v364_v16 }
 0x141   : > { %v365_v21 = vadd.f32 1e-05, %v357_v19  ;;  %v366_v22 = vadd.f32 1e-05, %v358_v20 }
 0x142   : > { %v347_v23 = vpop.xlane.xlu1 %346  ;;  %v350_v24 = vpop.xlane.xlu0 %349 }
 0x143   : > { %622 = vrsqrt.f32 %v365_v21  ;;  %v359_v25 = vmul.f32 0.03125, %v347_v23  ;;  %v360_v26 = vmul.f32 0.03125, %v350_v24 }
 0x144   : > { %624 = vrsqrt.f32 %v366_v22 }
 0x145   : > { %v367_v27 = vadd.f32 1e-05, %v359_v25  ;;  %v368_v28 = vadd.f32 1e-05, %v360_v26 }
 0x146   : > { %v353_v29 = vpop.xlane.xlu1 %352 }
 0x147   : > { %626 = vrsqrt.f32 %v367_v27  ;;  %v361_v30 = vmul.f32 0.03125, %v353_v29 }
 0x148   : > { %v617_v31 = vpop.eup %616  ;;  %628 = vrsqrt.f32 %v368_v28 }
 0x149   : > { %v378_v33 = vmul.f32 %v617_v31, %v836_v36  ;;  %v369_v34 = vadd.f32 1e-05, %v361_v30 }
 0x14b   : > { %v393_v38 = vmul.f32 %v564_v32, %v378_v33  ;;  %630 = vrsqrt.f32 %v369_v34 }
 0x14c   : > { %v619_v39 = vpop.eup %618 }
 0x14d   : > { %v621_v40 = vpop.eup %620  ;;  %v408_v41 = vadd.f32 %v565_v35, %v393_v38  ;;  %v379_v36 = vmul.f32 %v619_v39, %v844_v44 }
 0x14e   : > { %v380_v42 = vmul.f32 %v621_v40, %v838_v37 }
 0x14f   : > { %416 = vst.msk [vmem:[%s921_s22] sm:$0xff] %vm280_vm0, %v408_v41  ;;  %v394_v43 = vmul.f32 %v564_v32, %v379_v36 }
 0x150   : > { %v623_v45 = vpop.eup %622  ;;  %v395_v47 = vmul.f32 %v564_v32, %v380_v42 }
 0x151   : > { %v625_v48 = vpop.eup %624  ;;  %v409_v49 = vadd.f32 %v565_v35, %v394_v43  ;;  %v381_v50 = vmul.f32 %v623_v45, %v847_v46 }
 0x152   : > { %v410_v51 = vadd.f32 %v565_v35, %v395_v47  ;;  %v382_v52 = vmul.f32 %v625_v48, %v854_v54 }
 0x153   : > { %417 = vst.msk [vmem:[%s921_s22 + $0x8] sm:$0xff] %vm280_vm0, %v409_v49  ;;  %v396_v53 = vmul.f32 %v564_v32, %v381_v50 }
 0x154   : > { %v627_v44 = vpop.eup %626  ;;  %418 = vst.msk [vmem:[%s921_s22 + $0x10] sm:$0xff] %vm280_vm0, %v410_v51  ;;  %v397_v37 = vmul.f32 %v564_v32, %v382_v52 }
 0x155   : > { %v629_v55 = vpop.eup %628  ;;  %v411_v57 = vadd.f32 %v565_v35, %v396_v53  ;;  %v383_v58 = vmul.f32 %v627_v44, %v857_v56 }
 0x156   : > { %v412_v59 = vadd.f32 %v565_v35, %v397_v37  ;;  %v384_v46 = vmul.f32 %v629_v55, %v864_v0 }
 0x157   : > { %419 = vst.msk [vmem:[%s921_s22 + $0x18] sm:$0xff] %vm280_vm0, %v411_v57  ;;  %v398_v54 = vmul.f32 %v564_v32, %v383_v58 }
 0x158   : > { %v631_v60 = vpop.eup %630  ;;  %420 = vst.msk [vmem:[%s921_s22 + $0x20] sm:$0xff] %vm280_vm0, %v412_v59  ;;  %v399_v61 = vmul.f32 %v564_v32, %v384_v46 }
 0x159   : > { %v413_v62 = vadd.f32 %v565_v35, %v398_v54  ;;  %v385_v63 = vmul.f32 %v631_v60, %v867_v2 }
 0x15a   : > { %v414_v1 = vadd.f32 %v565_v35, %v399_v61 }
 0x15b   : > { %421 = vst.msk [vmem:[%s921_s22 + $0x28] sm:$0xff] %vm280_vm0, %v413_v62  ;;  %v400_v3 = vmul.f32 %v564_v32, %v385_v63 }
 0x15c   : > { %422 = vst.msk [vmem:[%s921_s22 + $0x30] sm:$0xff] %vm280_vm0, %v414_v1 }
 0x15d   : > { %v415_v56 = vadd.f32 %v565_v35, %v400_v3 }
 0x15f   : > { %423 = vst.msk [vmem:[%s921_s22 + $0x38] sm:$0xff] %vm280_vm0, %v415_v56 }
 0x160 PF: > { %p581_p5 = scmp.ge.s32.totalorder %s692_s21, 2  ;;  %s477_s8 = sand.u32 1, %s680_s18  }
 0x161   : > { %s478_s9 = scalar_lea.sflag [#allocation3], %s477_s8 }
 0x162   : > { %p578_p13 = pnand %p581_p5, %p769_p6 }
 0x164   : > { %p579_p0 = pneg %p578_p13 }
 0x166   : > { %675 = dma.done.wait (%p579_p0), %s478_s9, 1024  }
 0x167   : > { %677 = vsyncadd (%p579_p0), %s478_s9, 4294966272  ;;  %p16_p1 = scmp.ge.s32.totalorder %s752_s24, 4   ;;  %s971_s18 = smov %s684_s19 }
 0x168   : > { %s972_s19 = smov %s688_s20  ;;  %s973_s20 = smov %s763_s27 }
 0x169   : > { %s974_s21 = smov %s752_s24  ;;  %18 = sbr.rel (!%p16_p1) target bundleno = 3 (0x3), region = 86 }
 0x16e   :  { %483 = vsyncpa [#allocation3], 1 }
 0x16f   :  { %485 = vsyncpa [#allocation3 + $0x1], 1 }

// kernel: _lambda_.18
= control target key start
LH: loop header
LB: loop body
LE: loop exit
PB: predicated region body
PF: predicated region fallthrough
CT: control target
= control target key end

     0   :  { %vm19_vm0 = vcmask 261120   ;;  %v470_v1 = vmov 0.0   ;;  %s656_s1 = inlined_call_operand.vmem [shape: bf16[128,32], index: 1, kind: input, shape index: {}]   ;;  %s657_s0 = inlined_call_operand.vmem [shape: bf16[128,128], index: 0, kind: input, shape index: {}]   ;;  %s658_s2 = inlined_call_operand.vmem [shape: f32[1,32], index: 2, kind: input, shape index: {}]   ;;  %s659_s3 = inlined_call_operand.vmem [shape: f32[128,32], index: 3, kind: output, shape index: {}]  }
   0x1   :  { %v454_v0 = vld [vmem:[%s656_s1 + $0x38] sm:$0xff]   ;;  %22 = vst.msk [vmem:[#allocation2 + $0x10] sm:$0xff] %vm19_vm0, %v470_v1  ;;  %20 = vst.msk [vmem:[#allocation2] sm:$0xff] %vm19_vm0, %v470_v1  ;;  %v455_v2 = vld [vmem:[%s656_s1 + $0x30] sm:$0xff]  }
   0x2   :  { %21 = vst.msk [vmem:[#allocation2 + $0x8] sm:$0xff] %vm19_vm0, %v470_v1  ;;  %23 = vst.msk [vmem:[#allocation2 + $0x18] sm:$0xff] %vm19_vm0, %v470_v1  ;;  %405 = vmatprep.subr.bf16.mxu0 %v454_v0  ;;  %437 = vmatprep.subr.bf16.mxu1 %v454_v0  ;;  %v456_v3 = vld [vmem:[%s656_s1 + $0x28] sm:$0xff]   ;;  %v457_v4 = vld [vmem:[%s656_s1 + $0x20] sm:$0xff]  }
   0x3   :  { %24 = vst.msk [vmem:[#allocation2 + $0x20] sm:$0xff] %vm19_vm0, %v470_v1  ;;  %25 = vst.msk [vmem:[#allocation2 + $0x28] sm:$0xff] %vm19_vm0, %v470_v1  ;;  %406 = vmatpush3.bf16.msra.mxu0 %v454_v0  ;;  %445 = vmatpush3.bf16.msra.mxu1 %v454_v0  ;;  %v462_v5 = vld [vmem:[%s657_s0] sm:$0xff]   ;;  %v458_v7 = vld [vmem:[%s656_s1 + $0x18] sm:$0xff]  }
   0x4   :  { %26 = vst.msk [vmem:[#allocation2 + $0x30] sm:$0xff] %vm19_vm0, %v470_v1  ;;  %27 = vst.msk [vmem:[#allocation2 + $0x38] sm:$0xff] %vm19_vm0, %v470_v1  ;;  %407 = vmatprep.subr.bf16.mxu0 %v455_v2  ;;  %438 = vmatprep.subr.bf16.mxu1 %v455_v2  ;;  %v463_v6 = vld [vmem:[%s657_s0 + $0x20] sm:$0xff]   ;;  %v459_v8 = vld [vmem:[%s656_s1 + $0x10] sm:$0xff]  }
   0x5   :  { %28 = vst.msk [vmem:[#allocation2 + $0x40] sm:$0xff] %vm19_vm0, %v470_v1  ;;  %29 = vst.msk [vmem:[#allocation2 + $0x48] sm:$0xff] %vm19_vm0, %v470_v1  ;;  %421 = vmatprep.mubr.bf16.mxu0 %v462_v5  ;;  %429 = vmatprep.mubr.bf16.mxu1 %v463_v6  ;;  %v460_v9 = vld [vmem:[%s656_s1 + $0x8] sm:$0xff]   ;;  %v461_v10 = vld [vmem:[%s656_s1] sm:$0xff]  }
   0x6   :  { %30 = vst.msk [vmem:[#allocation2 + $0x50] sm:$0xff] %vm19_vm0, %v470_v1  ;;  %31 = vst.msk [vmem:[#allocation2 + $0x58] sm:$0xff] %vm19_vm0, %v470_v1  ;;  %v464_v11 = vld [vmem:[%s657_s0 + $0x8] sm:$0xff]   ;;  %v466_v13 = vld [vmem:[%s657_s0 + $0x10] sm:$0xff]  }
   0x7   :  { %32 = vst.msk [vmem:[#allocation2 + $0x60] sm:$0xff] %vm19_vm0, %v470_v1  ;;  %33 = vst.msk [vmem:[#allocation2 + $0x68] sm:$0xff] %vm19_vm0, %v470_v1  ;;  %408 = vmatpush3.bf16.msra.mxu0 %v455_v2  ;;  %446 = vmatpush3.bf16.msra.mxu1 %v455_v2  ;;  %v465_v12 = vld [vmem:[%s657_s0 + $0x28] sm:$0xff]   ;;  %v467_v14 = vld [vmem:[%s657_s0 + $0x30] sm:$0xff]  }
   0x8   :  { %34 = vst.msk [vmem:[#allocation2 + $0x70] sm:$0xff] %vm19_vm0, %v470_v1  ;;  %35 = vst.msk [vmem:[#allocation2 + $0x78] sm:$0xff] %vm19_vm0, %v470_v1  ;;  %409 = vmatprep.subr.bf16.mxu0 %v456_v3  ;;  %439 = vmatprep.subr.bf16.mxu1 %v456_v3  ;;  %v468_v15 = vld [vmem:[%s657_s0 + $0x18] sm:$0xff]   ;;  %v38_v17 = vld [vmem:[#allocation2 + $0x10] sm:$0xff] }
   0x9   :  { %v469_v16 = vld [vmem:[%s657_s0 + $0x38] sm:$0xff]   ;;  %v36_v21 = vld [vmem:[#allocation2] sm:$0xff]  ;;  %v37_v33 = vld [vmem:[#allocation2 + $0x8] sm:$0xff] }
   0xa   :  { %v39_v27 = vld [vmem:[#allocation2 + $0x18] sm:$0xff]  ;;  %v564_v43 = vld [vmem:[%s658_s2] ss:$0 sm:$0xff]  ;;  %v41_v60 = vld [vmem:[#allocation2 + $0x28] sm:$0xff] }
   0xb   :  { %410 = vmatpush3.bf16.msra.mxu0 %v456_v3  ;;  %447 = vmatpush3.bf16.msra.mxu1 %v456_v3  ;;  %v42_v39 = vld [vmem:[#allocation2 + $0x30] sm:$0xff]  ;;  %v40_v46 = vld [vmem:[#allocation2 + $0x20] sm:$0xff]  ;;  %v43_v50 = vld [vmem:[#allocation2 + $0x38] sm:$0xff] }
   0xc   :  { %411 = vmatprep.subr.bf16.mxu0 %v457_v4  ;;  %440 = vmatprep.subr.bf16.mxu1 %v457_v4  ;;  %v44_v22 = vld [vmem:[#allocation2 + $0x40] sm:$0xff]  ;;  %v45_v34 = vld [vmem:[#allocation2 + $0x48] sm:$0xff] }
   0xd   :  { %v46_v18 = vld [vmem:[#allocation2 + $0x50] sm:$0xff]  ;;  %v47_v28 = vld [vmem:[#allocation2 + $0x58] sm:$0xff] }
   0xe   :  { %v48_v47 = vld [vmem:[#allocation2 + $0x60] sm:$0xff]  ;;  %v49_v1 = vld [vmem:[#allocation2 + $0x68] sm:$0xff] }
   0xf   :  { %412 = vmatpush3.bf16.msra.mxu0 %v457_v4  ;;  %448 = vmatpush3.bf16.msra.mxu1 %v457_v4  ;;  %v50_v40 = vld [vmem:[#allocation2 + $0x70] sm:$0xff]  ;;  %v51_v55 = vld [vmem:[#allocation2 + $0x78] sm:$0xff] }
  0x10   :  { %413 = vmatprep.subr.bf16.mxu0 %v458_v7  ;;  %441 = vmatprep.subr.bf16.mxu1 %v458_v7 }
  0x13   :  { %414 = vmatpush3.bf16.msra.mxu0 %v458_v7  ;;  %449 = vmatpush3.bf16.msra.mxu1 %v458_v7 }
  0x14   :  { %415 = vmatprep.subr.bf16.mxu0 %v459_v8  ;;  %442 = vmatprep.subr.bf16.mxu1 %v459_v8 }
  0x17   :  { %416 = vmatpush3.bf16.msra.mxu0 %v459_v8  ;;  %450 = vmatpush3.bf16.msra.mxu1 %v459_v8 }
  0x18   :  { %417 = vmatprep.subr.bf16.mxu0 %v460_v9  ;;  %443 = vmatprep.subr.bf16.mxu1 %v460_v9 }
  0x1b   :  { %418 = vmatpush3.bf16.msra.mxu0 %v460_v9  ;;  %451 = vmatpush3.bf16.msra.mxu1 %v460_v9 }
  0x1c   :  { %419 = vmatprep.subr.bf16.mxu0 %v461_v10  ;;  %444 = vmatprep.subr.bf16.mxu1 %v461_v10 }
  0x1f   :  { %420 = vmatpush3.bf16.msra.mxu0 %v461_v10  ;;  %452 = vmatpush3.bf16.msra.mxu1 %v461_v10 }
  0x22   :  { %422 = vmatmul.mubr.bf16.vlgmr.msra.gmra.mxu0 %v464_v11  ;;  %430 = vmatmul.mubr.bf16.vlgmr.msra.gmra.mxu1 %v465_v12 }
  0x23   :  { %425 = vmatprep.mubr.bf16.mxu0 %v466_v13  ;;  %433 = vmatprep.mubr.bf16.mxu1 %v467_v14 }
  0x2a   :  { %426 = vmatmul.mubr.bf16.gmra.mxu0 %v468_v15  ;;  %434 = vmatmul.mubr.bf16.gmra.mxu1 %v469_v16 }
  0xe2   :  { %v423_v19 = vpop.f32.mrf.mxu0  ;;  %v431_v20 = vpop.f32.mrf.mxu1 }
  0xe3   :  { %v279_v23 = vadd.f32 %v423_v19, %v38_v17  ;;  %v287_v24 = vadd.f32 %v431_v20, %v46_v18 }
  0xe4   :  { %v214_v25 = vpop.f32.mrf.mxu0  ;;  %v246_v26 = vpop.f32.mrf.mxu1 }
  0xe5   :  { %296 = vst.msk [vmem:[#allocation2 + $0x10] sm:$0xff] %vm19_vm0, %v279_v23  ;;  %304 = vst.msk [vmem:[#allocation2 + $0x50] sm:$0xff] %vm19_vm0, %v287_v24  ;;  %v277_v29 = vadd.f32 %v214_v25, %v36_v21  ;;  %v285_v30 = vadd.f32 %v246_v26, %v44_v22 }
  0xe6   :  { %v424_v31 = vpop.f32.mrf.mxu0  ;;  %v432_v32 = vpop.f32.mrf.mxu1 }
  0xe7   :  { %294 = vst.msk [vmem:[#allocation2] sm:$0xff] %vm19_vm0, %v277_v29  ;;  %302 = vst.msk [vmem:[#allocation2 + $0x40] sm:$0xff] %vm19_vm0, %v285_v30  ;;  %v280_v35 = vadd.f32 %v424_v31, %v39_v27  ;;  %v288_v36 = vadd.f32 %v432_v32, %v47_v28 }
  0xe8   :  { %v217_v37 = vpop.f32.mrf.mxu0  ;;  %v249_v38 = vpop.f32.mrf.mxu1 }
  0xe9   :  { %297 = vst.msk [vmem:[#allocation2 + $0x18] sm:$0xff] %vm19_vm0, %v280_v35  ;;  %305 = vst.msk [vmem:[#allocation2 + $0x58] sm:$0xff] %vm19_vm0, %v288_v36  ;;  %v278_v41 = vadd.f32 %v217_v37, %v37_v33  ;;  %v286_v42 = vadd.f32 %v249_v38, %v45_v34 }
  0xea   :  { %v427_v44 = vpop.f32.mrf.mxu0  ;;  %v435_v45 = vpop.f32.mrf.mxu1 }
  0xeb   :  { %295 = vst.msk [vmem:[#allocation2 + $0x8] sm:$0xff] %vm19_vm0, %v278_v41  ;;  %303 = vst.msk [vmem:[#allocation2 + $0x48] sm:$0xff] %vm19_vm0, %v286_v42  ;;  %v283_v48 = vadd.f32 %v427_v44, %v42_v39  ;;  %v291_v49 = vadd.f32 %v435_v45, %v50_v40 }
  0xec   :  { %v315_v51 = vld [vmem:[#allocation2 + $0x10] sm:$0xff]  ;;  %v230_v53 = vpop.f32.mrf.mxu0  ;;  %v262_v54 = vpop.f32.mrf.mxu1 }
  0xed   :  { %v323_v52 = vld [vmem:[#allocation2 + $0x50] sm:$0xff]  ;;  %v338_v56 = vadd.f32 %v564_v43, %v315_v51  ;;  %300 = vst.msk [vmem:[#allocation2 + $0x30] sm:$0xff] %vm19_vm0, %v283_v48  ;;  %308 = vst.msk [vmem:[#allocation2 + $0x70] sm:$0xff] %vm19_vm0, %v291_v49  ;;  %v281_v58 = vadd.f32 %v230_v53, %v40_v46  ;;  %v289_v59 = vadd.f32 %v262_v54, %v48_v47 }
  0xee   :  { %v346_v57 = vadd.f32 %v564_v43, %v323_v52  ;;  %v313_v61 = vld [vmem:[#allocation2] sm:$0xff]  ;;  %v428_v63 = vpop.f32.mrf.mxu0  ;;  %v436_v0 = vpop.f32.mrf.mxu1 }
  0xef   :  { %v321_v62 = vld [vmem:[#allocation2 + $0x40] sm:$0xff]  ;;  %354 = vst.msk [vmem:[%s659_s3 + $0x10] sm:$0xff] %vm19_vm0, %v338_v56  ;;  %v336_v2 = vadd.f32 %v564_v43, %v313_v61  ;;  %298 = vst.msk [vmem:[#allocation2 + $0x20] sm:$0xff] %vm19_vm0, %v281_v58  ;;  %v284_v4 = vadd.f32 %v428_v63, %v43_v50  ;;  %v292_v5 = vadd.f32 %v436_v0, %v51_v55 }
  0xf0   :  { %362 = vst.msk [vmem:[%s659_s3 + $0x50] sm:$0xff] %vm19_vm0, %v346_v57  ;;  %v344_v3 = vadd.f32 %v564_v43, %v321_v62  ;;  %306 = vst.msk [vmem:[#allocation2 + $0x60] sm:$0xff] %vm19_vm0, %v289_v59  ;;  %v316_v6 = vld [vmem:[#allocation2 + $0x18] sm:$0xff]  ;;  %v233_v8 = vpop.f32.mrf.mxu0  ;;  %v265_v9 = vpop.f32.mrf.mxu1 }
  0xf1   :  { %v324_v7 = vld [vmem:[#allocation2 + $0x58] sm:$0xff]  ;;  %352 = vst.msk [vmem:[%s659_s3] sm:$0xff] %vm19_vm0, %v336_v2  ;;  %v339_v10 = vadd.f32 %v564_v43, %v316_v6  ;;  %301 = vst.msk [vmem:[#allocation2 + $0x38] sm:$0xff] %vm19_vm0, %v284_v4  ;;  %v282_v12 = vadd.f32 %v233_v8, %v41_v60  ;;  %v290_v13 = vadd.f32 %v265_v9, %v49_v1 }
  0xf2   :  { %360 = vst.msk [vmem:[%s659_s3 + $0x40] sm:$0xff] %vm19_vm0, %v344_v3  ;;  %v347_v11 = vadd.f32 %v564_v43, %v324_v7  ;;  %309 = vst.msk [vmem:[#allocation2 + $0x78] sm:$0xff] %vm19_vm0, %v292_v5  ;;  %v314_v14 = vld [vmem:[#allocation2 + $0x8] sm:$0xff] }
  0xf3   :  { %v322_v15 = vld [vmem:[#allocation2 + $0x48] sm:$0xff]  ;;  %355 = vst.msk [vmem:[%s659_s3 + $0x18] sm:$0xff] %vm19_vm0, %v339_v10  ;;  %v337_v16 = vadd.f32 %v564_v43, %v314_v14  ;;  %299 = vst.msk [vmem:[#allocation2 + $0x28] sm:$0xff] %vm19_vm0, %v282_v12 }
  0xf4   :  { %363 = vst.msk [vmem:[%s659_s3 + $0x58] sm:$0xff] %vm19_vm0, %v347_v11  ;;  %v345_v17 = vadd.f32 %v564_v43, %v322_v15  ;;  %307 = vst.msk [vmem:[#allocation2 + $0x68] sm:$0xff] %vm19_vm0, %v290_v13  ;;  %v319_v18 = vld [vmem:[#allocation2 + $0x30] sm:$0xff] }
  0xf5   :  { %v327_v19 = vld [vmem:[#allocation2 + $0x70] sm:$0xff]  ;;  %353 = vst.msk [vmem:[%s659_s3 + $0x8] sm:$0xff] %vm19_vm0, %v337_v16  ;;  %v342_v20 = vadd.f32 %v564_v43, %v319_v18 }
  0xf6   :  { %361 = vst.msk [vmem:[%s659_s3 + $0x48] sm:$0xff] %vm19_vm0, %v345_v17  ;;  %v350_v21 = vadd.f32 %v564_v43, %v327_v19  ;;  %v317_v22 = vld [vmem:[#allocation2 + $0x20] sm:$0xff] }
  0xf7   :  { %v325_v23 = vld [vmem:[#allocation2 + $0x60] sm:$0xff]  ;;  %358 = vst.msk [vmem:[%s659_s3 + $0x30] sm:$0xff] %vm19_vm0, %v342_v20  ;;  %v340_v24 = vadd.f32 %v564_v43, %v317_v22 }
  0xf8   :  { %366 = vst.msk [vmem:[%s659_s3 + $0x70] sm:$0xff] %vm19_vm0, %v350_v21  ;;  %v348_v25 = vadd.f32 %v564_v43, %v325_v23  ;;  %v320_v26 = vld [vmem:[#allocation2 + $0x38] sm:$0xff] }
  0xf9   :  { %v328_v27 = vld [vmem:[#allocation2 + $0x78] sm:$0xff]  ;;  %356 = vst.msk [vmem:[%s659_s3 + $0x20] sm:$0xff] %vm19_vm0, %v340_v24  ;;  %v343_v28 = vadd.f32 %v564_v43, %v320_v26 }
  0xfa   :  { %364 = vst.msk [vmem:[%s659_s3 + $0x60] sm:$0xff] %vm19_vm0, %v348_v25  ;;  %v351_v29 = vadd.f32 %v564_v43, %v328_v27  ;;  %v318_v30 = vld [vmem:[#allocation2 + $0x28] sm:$0xff] }
  0xfb   :  { %v326_v31 = vld [vmem:[#allocation2 + $0x68] sm:$0xff]  ;;  %359 = vst.msk [vmem:[%s659_s3 + $0x38] sm:$0xff] %vm19_vm0, %v343_v28  ;;  %v341_v32 = vadd.f32 %v564_v43, %v318_v30 }
  0xfc   :  { %367 = vst.msk [vmem:[%s659_s3 + $0x78] sm:$0xff] %vm19_vm0, %v351_v29  ;;  %v349_v33 = vadd.f32 %v564_v43, %v326_v31 }
  0xfd   :  { %357 = vst.msk [vmem:[%s659_s3 + $0x28] sm:$0xff] %vm19_vm0, %v341_v32 }
  0xfe   :  { %365 = vst.msk [vmem:[%s659_s3 + $0x68] sm:$0xff] %vm19_vm0, %v349_v33 }

// kernel: _lambda_.17
= control target key start
LH: loop header
LB: loop body
LE: loop exit
PB: predicated region body
PF: predicated region fallthrough
CT: control target
= control target key end

     0   :  { %s1112_s24 = smov 0   ;;  %s1114_s25 = smov 0   ;;  %s1492_s0 = inlined_call_operand.vmem [shape: f32[2,64,128], index: 0, kind: input, shape index: {}]   ;;  %s1493_s1 = inlined_call_operand.vmem [shape: f32[2,64,256], index: 1, kind: input, shape index: {}]   ;;  %s1494_s2 = inlined_call_operand.vmem [shape: f32[2,64,256], index: 2, kind: input, shape index: {}]   ;;  %s1495_s3 = inlined_call_operand.vmem [shape: f32[2,64,64], index: 3, kind: input, shape index: {}]   ;;  %s1496_s4 = inlined_call_operand.vmem [shape: f32[16,128], index: 4, kind: input, shape index: {}]   ;;  %s1497_s5 = inlined_call_operand.vmem [shape: f32[1,128], index: 5, kind: input, shape index: {}]   ;;  %s1498_s6 = inlined_call_operand.vmem [shape: f32[1,128], index: 6, kind: input, shape index: {}]   ;;  %s1499_s7 = inlined_call_operand.vmem [shape: f32[2,64,128], index: 7, kind: output, shape index: {}]  }
   0x1   :  { %s1116_s26 = smov 0  }
   0x2 LB: > { %s900_s27 = sadd.s32 4294967295, %s1058_s26   ;;  %s1129_s28 = sadd.s32 1, %s1058_s26   ;;  %s1058_s26 = sphi %s1116_s26, %s1521_s26   ;;  %s1054_s25 = sphi %s1114_s25, %s1520_s25   ;;  %s1050_s24 = sphi %s1112_s24, %s1519_s24  }
   0x3   : > { %s47_s29 = ssub.s32 %s1058_s26, %s1129_s28  ;;  %s50_s30 = sadd.s32 1, %s1054_s25 }
   0x4   : > { %p48_p0 = scmp.eq.s32.totalorder %s47_s29, 0  ;;  %p57_p1 = scmp.ne.s32.totalorder %s1054_s25, %s1050_s24 }
   0x5   : > { %p58_p2 = scmp.eq.s32.totalorder %s1058_s26, 0  ;;  %p903_p4 = scmp.ge.s32.totalorder %s1058_s26, 2 }
   0x6   : > { %s1138_s8 = scalar_select %p48_p0, %s1054_s25, %s50_s30  }
   0x7   : > { %p1140_p3 = por %p58_p2, %p57_p1  ;;  %233 = sbr.rel (%p903_p4) target bundleno = 28 (0x1c), region = 28 }
   0xc   : > { %244 = sbr.rel (!%p1140_p3) target bundleno = 20 (0x14), region = 36  ;;  %s246_s10 = sand.u32 (%p1140_p3), 1, %s1054_s25  }
   0xd   : > { %s931_s11 = sshll.u32 (%p1140_p3), %s1058_s26, 7  ;;  %s904_s12 = sshll.u32 (%p1140_p3), %s246_s10, 6 }
   0xe   : > { %s803_s15 = scalar_lea.vmem (%p1140_p3), %s1493_s1, %s931_s11  ;;  %s248_s16 = scalar_lea.vmem (%p1140_p3), [#allocation3], %s904_s12 }
   0xf   : > { %v907_v0 = vld [vmem:[%s803_s15 + $0x8] sm:$0xff] (%p1140_p3)  ;;  %v908_v1 = vld [vmem:[%s803_s15 + $0x18] sm:$0xff] (%p1140_p3) }
  0x10   : > { %v909_v2 = vld [vmem:[%s803_s15 + $0x28] sm:$0xff] (%p1140_p3)  ;;  %296 = vst [vmem:[%s248_s16] sm:$0xff] (%p1140_p3), %v907_v0  ;;  %298 = vst [vmem:[%s248_s16 + $0x8] sm:$0xff] (%p1140_p3), %v908_v1  ;;  %v910_v3 = vld [vmem:[%s803_s15 + $0x38] sm:$0xff] (%p1140_p3) }
  0x11   : > { %300 = vst [vmem:[%s248_s16 + $0x10] sm:$0xff] %v909_v2  ;;  %v911_v4 = vld [vmem:[%s803_s15 + $0x48] sm:$0xff]  ;;  %v912_v5 = vld [vmem:[%s803_s15 + $0x58] sm:$0xff]  ;;  %302 = vst [vmem:[%s248_s16 + $0x18] sm:$0xff] %v910_v3 }
  0x12   : > { %304 = vst [vmem:[%s248_s16 + $0x20] sm:$0xff] %v911_v4  ;;  %306 = vst [vmem:[%s248_s16 + $0x28] sm:$0xff] %v912_v5  ;;  %v913_v6 = vld [vmem:[%s803_s15 + $0x68] sm:$0xff]  ;;  %v914_v7 = vld [vmem:[%s803_s15 + $0x78] sm:$0xff] }
  0x13   : > { %308 = vst [vmem:[%s248_s16 + $0x30] sm:$0xff] %v913_v6  ;;  %310 = vst [vmem:[%s248_s16 + $0x38] sm:$0xff] %v914_v7 }
  0x14 PF: > { %316 = sbr.rel (!%p1140_p3) target bundleno = 28 (0x1c), region = 74  ;;  %s318_s17 = sand.u32 (%p1140_p3), 1, %s1054_s25  }
  0x15   : > { %s932_s18 = sshll.u32 (%p1140_p3), %s1058_s26, 7  ;;  %s915_s19 = sshll.u32 (%p1140_p3), %s318_s17, 6 }
  0x16   : > { %s323_s22 = scalar_lea.vmem (%p1140_p3), %s1494_s2, %s932_s18  ;;  %s320_s23 = scalar_lea.vmem (%p1140_p3), [#allocation4], %s915_s19 }
  0x17   : > { %v366_v8 = vld [vmem:[%s323_s22] sm:$0xff] (%p1140_p3)  ;;  %v368_v9 = vld [vmem:[%s323_s22 + $0x10] sm:$0xff] (%p1140_p3) }
  0x18   : > { %v370_v10 = vld [vmem:[%s323_s22 + $0x20] sm:$0xff] (%p1140_p3)  ;;  %367 = vst [vmem:[%s320_s23] sm:$0xff] (%p1140_p3), %v366_v8  ;;  %369 = vst [vmem:[%s320_s23 + $0x8] sm:$0xff] (%p1140_p3), %v368_v9  ;;  %v372_v11 = vld [vmem:[%s323_s22 + $0x30] sm:$0xff] (%p1140_p3) }
  0x19   : > { %371 = vst [vmem:[%s320_s23 + $0x10] sm:$0xff] %v370_v10  ;;  %v374_v12 = vld [vmem:[%s323_s22 + $0x40] sm:$0xff]  ;;  %v376_v13 = vld [vmem:[%s323_s22 + $0x50] sm:$0xff]  ;;  %373 = vst [vmem:[%s320_s23 + $0x18] sm:$0xff] %v372_v11 }
  0x1a   : > { %375 = vst [vmem:[%s320_s23 + $0x20] sm:$0xff] %v374_v12  ;;  %377 = vst [vmem:[%s320_s23 + $0x28] sm:$0xff] %v376_v13  ;;  %v378_v14 = vld [vmem:[%s323_s22 + $0x60] sm:$0xff]  ;;  %v380_v15 = vld [vmem:[%s323_s22 + $0x70] sm:$0xff] }
  0x1b   : > { %379 = vst [vmem:[%s320_s23 + $0x30] sm:$0xff] %v378_v14  ;;  %381 = vst [vmem:[%s320_s23 + $0x38] sm:$0xff] %v380_v15 }
  0x1c PF: > { %p918_p5 = scmp.ge.s32.totalorder %s1058_s26, 1  ;;  %p394_p6 = scmp.lt.s32.totalorder %s1058_s26, 3 }
  0x1e   : > { %p395_p7 = pnand %p918_p5, %p394_p6 }
  0x1f   : > { %s401_s29 = sand.u32 (!%p395_p7), 1, %s1050_s24   ;;  %p453_p8 = scmp.lt.s32.totalorder (!%p395_p7), %s900_s27, 1 }
  0x20   : > { %398 = sbr.rel (%p395_p7) target bundleno = 281 (0x119), region = 116  ;;  %s1174_s12 = sshll.u32 (!%p395_p7), %s401_s29, 6 }
  0x21   : > { %s1190_s16 = scalar_lea.vmem (!%p395_p7), [#allocation4], %s1174_s12  ;;  %s403_s30 = scalar_lea.vmem (!%p395_p7), [#allocation3], %s1174_s12 }
  0x22   : > { %s1377_s9 = smov (!%p395_p7), 0  }
  0x25   : > { %v1167_v16 = vld [vmem:[%s1496_s4] sm:$0xff]  ;;  %v1172_v17 = vld [vmem:[%s1496_s4 + $0x8] sm:$0xff]  ;;  %v654_v18 = vlaneseq  ;;  %s1523_s27 = smov (!%p453_p8, %s900_s27), 1  ;;  %v470_v24 = vld [vmem:[%s1190_s16 + $0x10] sm:$0xff] }
  0x26   : > { %v927_v19 = vld [vmem:[%s1498_s6] ss:$0 sm:$0xff]  ;;  %v469_v23 = vld [vmem:[%s1190_s16 + $0x8] sm:$0xff]  ;;  %v471_v28 = vld [vmem:[%s1190_s16 + $0x18] sm:$0xff]  ;;  %s933_s26 = sshll.u32 %s1523_s27, 6 }
  0x27   : > { %v1182_v20 = vld [vmem:[%s1497_s5] sm:$0x1]  ;;  %v1185_v21 = vand.u32 127, %v654_v18  ;;  %v1197_v26 = vadd.f32 %v927_v19, %v469_v23  ;;  %v1199_v27 = vadd.f32 %v927_v19, %v470_v24  ;;  %v473_v30 = vld [vmem:[%s1190_s16 + $0x28] sm:$0xff]  ;;  %v1205_v31 = vadd.f32 %v927_v19, %v471_v28  ;;  %s1210_s19 = scalar_lea.vmem %s1492_s0, %s933_s26  ;;  %s462_s22 = scalar_lea.vmem %s1495_s3, %s933_s26  ;;  %v474_v45 = vld [vmem:[%s1190_s16 + $0x30] sm:$0xff] }
  0x28   : > { %v468_v22 = vld [vmem:[%s1190_s16] sm:$0xff]  ;;  %s1221_s27 = scalar_lea.vmem %s1499_s7, %s933_s26  ;;  %v1224_v35 = vadd.f32 %v927_v19, %v473_v30  ;;  %v1228_v37 = vld [vmem:[%s462_s22 + $0x8] sm:$0xff]  ;;  %v1230_v38 = vld [vmem:[%s462_s22 + $0x10] sm:$0xff]  ;;  %v1248_v58 = vadd.f32 %v927_v19, %v474_v45 }
  0x29   : > { %v1195_v25 = vadd.f32 %v927_v19, %v468_v22  ;;  %v472_v29 = vld [vmem:[%s1190_s16 + $0x20] sm:$0xff]  ;;  %vm656_vm0 = vcmp.lt.s32.totalorder %v1185_v21, 64  ;;  %v516_v34 = vand.u32 2147483647, %v1197_v26  ;;  %v517_v40 = vand.u32 2147483647, %v1199_v27 }
  0x2a   : > { %v1216_v33 = vadd.f32 %v927_v19, %v472_v29  ;;  %v1226_v36 = vld [vmem:[%s462_s22] sm:$0xff]  ;;  %v1233_v41 = vld [vmem:[%s462_s22 + $0x18] sm:$0xff]  ;;  %v518_v44 = vand.u32 2147483647, %v1205_v31  ;;  %v1239_v46 = vld [vmem:[%s462_s22 + $0x28] sm:$0xff]  ;;  %vm500_vm2 = vcmp.ne.f32.partialorder %v1197_v26, %v1197_v26  ;;  %vm501_vm3 = vcmp.ne.f32.partialorder %v1199_v27, %v1199_v27 }
  0x2b   : > { %v515_v32 = vand.u32 2147483647, %v1195_v25  ;;  %v1235_v42 = vld [vmem:[%s462_s22 + $0x20] sm:$0xff]  ;;  %v524_v43 = vsub.f32 0.0, %v516_v34  ;;  %v1241_v47 = vld [vmem:[%s462_s22 + $0x30] sm:$0xff]  ;;  %v525_v49 = vsub.f32 0.0, %v517_v40  ;;  %vm499_vm1 = vcmp.ne.f32.partialorder %v1195_v25, %v1195_v25 }
  0x2c   : > { %v519_v50 = vand.u32 2147483647, %v1216_v33  ;;  %v475_v51 = vld [vmem:[%s1190_s16 + $0x38] sm:$0xff]  ;;  %v526_v53 = vsub.f32 0.0, %v518_v44  ;;  %v520_v54 = vand.u32 2147483647, %v1224_v35  ;;  %vm502_vm5 = vcmp.ne.f32.partialorder %v1205_v31, %v1205_v31 }
  0x2d   : > { %v523_v39 = vsub.f32 0.0, %v515_v32  ;;  %v533_v52 = vmul.f32 1.442695, %v524_v43  ;;  %v1246_v55 = vld [vmem:[%s462_s22 + $0x38] sm:$0xff]  ;;  %v535_v56 = vmul.f32 1.442695, %v525_v49  ;;  %v1250_v61 = vadd.f32 %v927_v19, %v475_v51 }
  0x2e   : > { %v527_v57 = vsub.f32 0.0, %v519_v50  ;;  %v537_v59 = vmul.f32 1.442695, %v526_v53  ;;  %v528_v60 = vsub.f32 0.0, %v520_v54  ;;  %v521_v0 = vand.u32 2147483647, %v1248_v58 }
  0x2f   : > { %v531_v48 = vmul.f32 1.442695, %v523_v39  ;;  %v522_v1 = vand.u32 2147483647, %v1250_v61  ;;  %v491_v28 = vmax.f32 %v1195_v25, 0.0  ;;  %v492_v34 = vmax.f32 %v1197_v26, 0.0 }
  0x30   : > { %v539_v62 = vmul.f32 1.442695, %v527_v57  ;;  %v541_v63 = vmul.f32 1.442695, %v528_v60  ;;  %v529_v2 = vsub.f32 0.0, %v521_v0  ;;  %v493_v39 = vmax.f32 %v1199_v27, 0.0 }
  0x31   : > { %984 = vpow2.f32 %v531_v48  ;;  %v530_v3 = vsub.f32 0.0, %v522_v1  ;;  %v494_v54 = vmax.f32 %v1205_v31, 0.0  ;;  %v496_v1 = vmax.f32 %v1224_v35, 0.0 }
  0x32   : > { %986 = vpow2.f32 %v533_v52  ;;  %v543_v4 = vmul.f32 1.442695, %v529_v2  ;;  %vm503_vm9 = vcmp.ne.f32.partialorder %v1216_v33, %v1216_v33  ;;  %vm504_vm11 = vcmp.ne.f32.partialorder %v1224_v35, %v1224_v35 }
  0x33   : > { %988 = vpow2.f32 %v535_v56  ;;  %v545_v5 = vmul.f32 1.442695, %v530_v3  ;;  %vm505_vm14 = vcmp.ne.f32.partialorder %v1248_v58, %v1248_v58 }
  0x34   : > { %990 = vpow2.f32 %v537_v59  ;;  %v495_v59 = vmax.f32 %v1216_v33, 0.0 }
  0x35   : > { %992 = vpow2.f32 %v539_v62 }
  0x36   : > { %994 = vpow2.f32 %v541_v63 }
  0x37   : > { %996 = vpow2.f32 %v543_v4 }
  0x38   : > { %998 = vpow2.f32 %v545_v5 }
  0x3e   : > { %v985_v6 = vpop.eup %984 }
  0x3f   : > { %v987_v7 = vpop.eup %986  ;;  %v547_v8 = vadd.f32 1.0, %v985_v6  ;;  %v550_v19 = vmul.f32 -0.5, %v985_v6  ;;  %v553_v45 = vand.u32 2147483647, %v985_v6 }
  0x40   : > { %v989_v9 = vpop.eup %988  ;;  %v556_v10 = vadd.f32 1.0, %v987_v7  ;;  %v559_v23 = vmul.f32 -0.5, %v987_v7  ;;  %v562_v48 = vand.u32 2147483647, %v987_v7 }
  0x41   : > { %v991_v11 = vpop.eup %990  ;;  %1000 = vlog2.f32 %v547_v8  ;;  %v565_v12 = vadd.f32 1.0, %v989_v9  ;;  %v568_v29 = vmul.f32 -0.5, %v989_v9  ;;  %v551_v44 = vadd.f32 1.0, %v550_v19 }
  0x42   : > { %v1254_v13 = vpop.eup %992  ;;  %1002 = vlog2.f32 %v556_v10  ;;  %v574_v14 = vadd.f32 1.0, %v991_v11  ;;  %v577_v40 = vmul.f32 -0.5, %v991_v11  ;;  %v560_v49 = vadd.f32 1.0, %v559_v23 }
  0x43   : > { %1004 = vlog2.f32 %v565_v12  ;;  %v1256_v15 = vpop.eup %994  ;;  %v583_v22 = vadd.f32 1.0, %v1254_v13  ;;  %v586_v50 = vmul.f32 -0.5, %v1254_v13  ;;  %v569_v52 = vadd.f32 1.0, %v568_v29 }
  0x44   : > { %1006 = vlog2.f32 %v574_v14  ;;  %v1259_v24 = vpop.eup %996  ;;  %v592_v30 = vadd.f32 1.0, %v1256_v15  ;;  %v571_v53 = vand.u32 2147483647, %v989_v9  ;;  %v580_v56 = vand.u32 2147483647, %v991_v11 }
  0x45   : > { %1008 = vlog2.f32 %v583_v22  ;;  %v1263_v32 = vpop.eup %998  ;;  %v601_v43 = vadd.f32 1.0, %v1259_v24  ;;  %v578_v57 = vadd.f32 1.0, %v577_v40  ;;  %v595_v60 = vmul.f32 -0.5, %v1256_v15 }
  0x46   : > { %1010 = vlog2.f32 %v592_v30  ;;  %v610_v51 = vadd.f32 1.0, %v1263_v32  ;;  %v552_v62 = vmul.f32 %v985_v6, %v551_v44  ;;  %vm1279_vm4 = vcmp.lt.f32.partialorder %v553_v45, 0.0004427343 }
  0x47   : > { %1012 = vlog2.f32 %v601_v43  ;;  %v589_v0 = vand.u32 2147483647, %v1254_v13  ;;  %v561_v3 = vmul.f32 %v987_v7, %v560_v49  ;;  %vm1287_vm6 = vcmp.lt.f32.partialorder %v562_v48, 0.0004427343 }
  0x48   : > { %1014 = vlog2.f32 %v610_v51  ;;  %v587_v5 = vadd.f32 1.0, %v586_v50  ;;  %v604_v6 = vmul.f32 -0.5, %v1259_v24  ;;  %v570_v12 = vmul.f32 %v989_v9, %v569_v52 }
  0x49   : > { %vm1292_vm7 = vcmp.lt.f32.partialorder %v571_v53, 0.0004427343  ;;  %vm1296_vm8 = vcmp.lt.f32.partialorder %v580_v56, 0.0004427343  ;;  %v579_v23 = vmul.f32 %v991_v11, %v578_v57  ;;  %v596_v29 = vadd.f32 1.0, %v595_v60 }
  0x4a   : > { %v613_v30 = vmul.f32 -0.5, %v1263_v32  ;;  %vm1305_vm10 = vcmp.lt.f32.partialorder %v589_v0, 0.0004427343  ;;  %v598_v44 = vand.u32 2147483647, %v1256_v15  ;;  %v588_v49 = vmul.f32 %v1254_v13, %v587_v5 }
  0x4b   : > { %v605_v50 = vadd.f32 1.0, %v604_v6  ;;  %v607_v56 = vand.u32 2147483647, %v1259_v24  ;;  %v1375_v43 = vmov 0.0  }
  0x4c   : > { %v614_v63 = vadd.f32 1.0, %v613_v30  ;;  %vm1334_vm12 = vcmp.lt.f32.partialorder %v598_v44, 0.0004427343 }
  0x4d   : > { %vm1342_vm13 = vcmp.lt.f32.partialorder %v607_v56, 0.0004427343 }
  0x4e   : > { %v1001_v2 = vpop.eup %1000 }
  0x4f   : > { %v1003_v8 = vpop.eup %1002  ;;  %v549_v10 = vmul.f32 0.6931472, %v1001_v2  ;;  %v616_v2 = vand.u32 2147483647, %v1263_v32 }
  0x50   : > { %v1005_v7 = vpop.eup %1004  ;;  %v558_v22 = vmul.f32 0.6931472, %v1003_v8  ;;  %v497_v8 = vmax.f32 %v1248_v58, 0.0 }
  0x51   : > { %v555_v9 = vsel %vm1279_vm4, %v552_v62, %v549_v10  ;;  %v567_v40 = vmul.f32 0.6931472, %v1005_v7  ;;  %v1007_v45 = vpop.eup %1006  ;;  %v597_v62 = vmul.f32 %v1256_v15, %v596_v29  ;;  %v498_v7 = vmax.f32 %v1250_v61, 0.0 }
  0x52   : > { %v619_v48 = vadd.f32 %v555_v9, %v491_v28  ;;  %v564_v11 = vsel %vm1287_vm6, %v561_v3, %v558_v22  ;;  %v576_v53 = vmul.f32 0.6931472, %v1007_v45  ;;  %v1009_v57 = vpop.eup %1008  ;;  %vm617_vm15 = vcmp.lt.f32.partialorder %v616_v2, 0.0004427343 }
  0x53   : > { %v620_v51 = vadd.f32 %v564_v11, %v492_v34  ;;  %v573_v52 = vsel %vm1292_vm7, %v570_v12, %v567_v40  ;;  %v585_v0 = vmul.f32 0.6931472, %v1009_v57  ;;  %v1011_v3 = vpop.eup %1010  ;;  %v1373_v40 = vmov 0.0  }
  0x54   : > { %v627_v60 = vsel %vm499_vm1, %v1195_v25, %v619_v48  ;;  %v621_v28 = vadd.f32 %v573_v52, %v493_v39  ;;  %v582_v34 = vsel %vm1296_vm8, %v579_v23, %v576_v53  ;;  %v1013_v4 = vpop.eup %1012  ;;  %v594_v6 = vmul.f32 0.6931472, %v1011_v3 }
  0x55   : > { %635 = vst [vmem:[#allocation2] sm:$0xff] %v627_v60  ;;  %v628_v13 = vsel %vm500_vm2, %v1197_v26, %v620_v51  ;;  %v622_v15 = vadd.f32 %v582_v34, %v494_v54  ;;  %v606_v26 = vmul.f32 %v1259_v24, %v605_v50  ;;  %v591_v5 = vsel %vm1305_vm10, %v588_v49, %v585_v0  ;;  %v1015_v14 = vpop.eup %1014 }
  0x56   : > { %636 = vst [vmem:[#allocation2 + $0x8] sm:$0xff] %v628_v13  ;;  %v629_v25 = vsel %vm501_vm3, %v1199_v27, %v621_v28  ;;  %v623_v54 = vadd.f32 %v591_v5, %v495_v59  ;;  %v603_v12 = vmul.f32 0.6931472, %v1013_v4  ;;  %v615_v24 = vmul.f32 %v1263_v32, %v614_v63 }
  0x57   : > { %637 = vst [vmem:[#allocation2 + $0x10] sm:$0xff] %v629_v25  ;;  %v630_v27 = vsel %vm502_vm5, %v1205_v31, %v622_v15  ;;  %v600_v19 = vsel %vm1334_vm12, %v597_v62, %v594_v6  ;;  %v612_v22 = vmul.f32 0.6931472, %v1015_v14  ;;  %vm506_vm1 = vcmp.ne.f32.partialorder %v1250_v61, %v1250_v61 }
  0x58   : > { %638 = vst [vmem:[#allocation2 + $0x18] sm:$0xff] %v630_v27  ;;  %v631_v31 = vsel %vm503_vm9, %v1216_v33, %v623_v54  ;;  %v624_v32 = vadd.f32 %v600_v19, %v496_v1  ;;  %v609_v59 = vsel %vm1342_vm13, %v606_v26, %v603_v12 }
  0x59   : > { %639 = vst [vmem:[#allocation2 + $0x20] sm:$0xff] %v631_v31  ;;  %v625_v23 = vadd.f32 %v609_v59, %v497_v8  ;;  %v618_v30 = vsel %vm617_vm15, %v615_v24, %v612_v22 }
  0x5a   : > { %v632_v29 = vsel %vm504_vm11, %v1224_v35, %v624_v32  ;;  %v626_v9 = vadd.f32 %v618_v30, %v498_v7 }
  0x5b   : > { %640 = vst [vmem:[#allocation2 + $0x28] sm:$0xff] %v632_v29  ;;  %v633_v33 = vsel %vm505_vm14, %v1248_v58, %v625_v23 }
  0x5c   : > { %641 = vst [vmem:[#allocation2 + $0x30] sm:$0xff] %v633_v33  ;;  %v634_v1 = vsel %vm506_vm1, %v1250_v61, %v626_v9 }
  0x5d   : > { %642 = vst [vmem:[#allocation2 + $0x38] sm:$0xff] %v634_v1 }
  0x5e LB: >> { %v681_v35 = vstv %s1070_s9  ;;  %vm689_vm2 = vcmask 523264   ;;  %s1390_s10 = ssub.s32 63, %s1070_s9  ;;  %s676_s11 = scalar_lea.vmem [#allocation2], %s1070_s9  ;;  %v729_v8 = vshrl.u32 %v654_v18, 7  ;;  %s1070_s9 = sphi %s1377_s9, %s662_s9   ;;  %v1066_v43 = vphi %v1375_v43, %v747_v43   ;;  %v1062_v40 = vphi %v1373_v40, %v748_v40  }
  0x5f   : >> { %vm1393_vm3 = vcmp.eq.s32.totalorder %v1185_v21, %v681_v35  ;;  %v702_v61 = vstv %s1390_s10  ;;  %s678_s13 = scalar_lea.vmem [#allocation2], %s1390_s10  ;;  %s673_s14 = scalar_lea.vmem %s403_s30, %s1390_s10 [#allocation3] }
  0x60   : >> { %v685_v44 = vsel %vm1393_vm3, %v1226_v36, 0.0  ;;  %vm1402_vm4 = vcmp.eq.s32.totalorder %v1185_v21, %v702_v61  ;;  %v686_v48 = vsel %vm1393_vm3, %v1228_v37, 0.0  ;;  %v687_v28 = vsel %vm1393_vm3, %v1230_v38, 0.0  ;;  %s666_s24 = scalar_lea.vmem %s1210_s19, %s1070_s9  ;;  %s668_s15 = scalar_lea.vmem %s1210_s19, %s1390_s10  ;;  %v674_v39 = vld [vmem:[%s673_s14] sm:$0x1] }
  0x61   : >> { %v690_v50 = vsel %vm689_vm2, %v685_v44, 0.0  ;;  %v706_v51 = vsel %vm1402_vm4, %v1235_v42, 0.0  ;;  %v707_v52 = vsel %vm1402_vm4, %v1239_v46, 0.0  ;;  %v693_v56 = vsel %vm689_vm2, %v686_v48, 0.0  ;;  %v667_v0 = vld [vmem:[%s666_s24] sm:$0x1]  ;;  %s671_s16 = scalar_lea.vmem %s403_s30, %s1070_s9 [#allocation3]  ;;  %s768_s26 = scalar_lea.vmem %s1221_s27, %s1070_s9 }
  0x62   : >> { %691 = vadd.xlane.f32.xlu0 %v690_v50  ;;  %v710_v53 = vsel %vm689_vm2, %v706_v51, 0.0  ;;  %v713_v60 = vsel %vm689_vm2, %v707_v52, 0.0  ;;  %v688_v62 = vsel %vm1393_vm3, %v1233_v41, 0.0  ;;  %v696_v63 = vsel %vm689_vm2, %v687_v28, 0.0  ;;  %v669_v2 = vld [vmem:[%s668_s15] sm:$0x1]  ;;  %s772_s17 = scalar_lea.vmem %s1221_s27, %s1390_s10 }
  0x63   : >> { %711 = vadd.xlane.f32.xlu1 %v710_v53  ;;  %v699_v13 = vsel %vm689_vm2, %v688_v62, 0.0  ;;  %v708_v34 = vsel %vm1402_vm4, %v1241_v47, 0.0  ;;  %v709_v3 = vsel %vm1402_vm4, %v1246_v55, 0.0  ;;  %v670_v25 = vsel %vm656_vm0, %v667_v0, %v669_v2  ;;  %v672_v15 = vld [vmem:[%s671_s16] sm:$0x1]  ;;  %s662_s9 = sadd.s32 1, %s1070_s9  }
  0x64   : >> { %v677_v11 = vld [vmem:[%s676_s11] sm:$0x1]  ;;  %v675_v4 = vsel %vm656_vm0, %v672_v15, %v674_v39  ;;  %v716_v5 = vsel %vm689_vm2, %v708_v34, 0.0  ;;  %v719_v6 = vsel %vm689_vm2, %v709_v3, 0.0  ;;  %v730_v10 = vsub.s32 0, %v729_v8  ;;  %p659_p9 = scmp.ge.s32.totalorder %s662_s9, 64  }
  0x65   : >> { %v679_v49 = vld [vmem:[%s678_s13] sm:$0x1]  ;;  %v928_v19 = vmul.f32 -1.442695, %v675_v4 }
  0x66   : >> { %v680_v57 = vsel %vm656_vm0, %v677_v11, %v679_v49  ;;  %694 = vadd.xlane.f32.xlu0 %v693_v56  ;;  %v769_v15 = vld [vmem:[%s768_s26] sm:$0x1] }
  0x67   : >> { %714 = vadd.xlane.f32.xlu1 %v713_v60  ;;  %v740_v26 = vmul.f32 %v680_v57, %v670_v25  ;;  %v731_v27 = vrot.slane %v680_v57, %v730_v10 }
  0x69   : >> { %v732_v54 = vmul.f32 %v731_v27, %v1167_v16  ;;  %v733_v12 = vmul.f32 %v731_v27, %v1172_v17  ;;  %v744_v31 = vrot.slane %v740_v26, %v730_v10 }
  0x6a   : >> { %697 = vadd.xlane.f32.xlu0 %v696_v63 }
  0x6b   : >> { %700 = vadd.xlane.f32.xlu1 %v699_v13  ;;  %v734_v24 = vmul.f32 1.442695, %v732_v54  ;;  %v736_v14 = vmul.f32 1.442695, %v733_v12  ;;  %v758_v13 = vmul.f32 %v670_v25, %v1182_v20 }
  0x6d   : >> { %1016 = vpow2.f32 %v734_v24 }
  0x6e   : >> { %717 = vadd.xlane.f32.xlu0 %v716_v5  ;;  %1018 = vpow2.f32 %v736_v14 }
  0x6f   : >> { %720 = vadd.xlane.f32.xlu1 %v719_v6  ;;  %1020 = vpow2.f32 %v928_v19 }
  0x7a   : >> { %v1017_v7 = vpop.eup %1016 }
  0x7b   : >> { %v738_v22 = vmul.f32 %v1066_v43, %v1017_v7  ;;  %v1019_v23 = vpop.eup %1018 }
  0x7c   : >> { %v739_v1 = vmul.f32 %v1062_v40, %v1019_v23  ;;  %v1021_v35 = vpop.eup %1020 }
  0x7d   : >> { %v763_v48 = vadd.f32 1.0, %v1021_v35 }
  0x7f   : >> { %1022 = vrcp.f32 %v763_v48 }
  0x8c   : >> { %v1023_v63 = vpop.eup %1022 }
  0x8d   : >> { %v766_v2 = vmul.f32 %v1023_v63, %v675_v4 }
  0xeb   : >> { %v692_v32 = vpop.xlane.xlu0 %691 }
  0xec   : >> { %v712_v59 = vpop.xlane.xlu1 %711 }
  0xed   : >> { %v724_v29 = vsel %vm656_vm0, %v692_v32, %v712_v59 }
  0xee   : >> { %v745_v30 = vmul.f32 %v744_v31, %v724_v29 }
  0xef   : >> { %v695_v33 = vpop.xlane.xlu0 %694 }
  0xf0   : >> { %v715_v9 = vpop.xlane.xlu1 %714  ;;  %v747_v43 = vadd.f32 %v745_v30, %v738_v22  }
  0xf1   : >> { %v725_v58 = vsel %vm656_vm0, %v695_v33, %v715_v9 }
  0xf2   : >> { %v746_v61 = vmul.f32 %v744_v31, %v725_v58 }
  0xf3   : >> { %v698_v44 = vpop.xlane.xlu0 %697 }
  0xf4   : >> { %v701_v45 = vpop.xlane.xlu1 %700  ;;  %v748_v40 = vadd.f32 %v746_v61, %v739_v1  }
  0xf7   : >> { %v718_v11 = vpop.xlane.xlu0 %717 }
  0xf8   : >> { %v726_v49 = vsel %vm656_vm0, %v698_v44, %v718_v11  ;;  %v721_v50 = vpop.xlane.xlu1 %720 }
  0xf9   : >> { %v749_v51 = vmul.f32 %v747_v43, %v726_v49  ;;  %v727_v52 = vsel %vm656_vm0, %v701_v45, %v721_v50 }
  0xfa   : >> { %v750_v53 = vmul.f32 %v748_v40, %v727_v52 }
  0xfc   : >> { %v751_v56 = vadd.f32 %v750_v53, %v749_v51 }
  0xfe   : >> { %v752_v57 = vrot.slane %v751_v56, 4 }
 0x100   : >> { %v753_v60 = vadd.f32 %v752_v57, %v751_v56 }
 0x102   : >> { %v754_v28 = vrot.slane %v753_v60, 2 }
 0x104   : >> { %v755_v62 = vadd.f32 %v754_v28, %v753_v60 }
 0x106   : >> { %v756_v34 = vrot.slane %v755_v62, 1 }
 0x108   : >> { %v757_v0 = vadd.f32 %v756_v34, %v755_v62 }
 0x10a   : >> { %v759_v3 = vadd.f32 %v758_v13, %v757_v0 }
 0x10c   : >> { %v767_v39 = vmul.f32 %v766_v2, %v759_v3 }
 0x10e   : >> { %v770_v26 = vsel %vm656_vm0, %v767_v39, %v769_v15 }
 0x10f   : >> { %771 = vst [vmem:[%s768_s26] sm:$0x1] %v770_v26 }
 0x114   : > { %661 = sbr.rel (!%p659_p9) target bundleno = 94 (0x5e), region = 188 }
 0x116   : >> { %v773_v5 = vld [vmem:[%s772_s17] sm:$0x1] }
 0x117   : >> { %v774_v6 = vsel %vm656_vm0, %v773_v5, %v767_v39 }
 0x118   : >> { %775 = vst [vmem:[%s772_s17] sm:$0x1] %v774_v6 }
 0x119 PF: > { %p14_p10 = scmp.ge.s32.totalorder %s1129_s28, 4   ;;  %s1519_s24 = smov %s1054_s25 }
 0x11a   : > { %s1520_s25 = smov %s1138_s8  ;;  %s1521_s26 = smov %s1129_s28 }
 0x11b   :  { %16 = sbr.rel (!%p14_p10) target bundleno = 2 (0x2), region = 199 }

</bundles_post_ra>
